<compile_context>
chip_gen: v7x
topology: tpu7x:2x2x1
jax: 0.10.0
libtpu: 0.0.40
codegen_flags: <defaults>
</compile_context>

<pallas_src>
import jax
import jax.numpy as jnp
from jax.experimental import pallas as pl
from jax.experimental.pallas import tpu as pltpu
import numpy as np


# ----------------------------------------------------------------------------- kernel
def decoder_kernel(emb_ref,                 # (T, Bblk, H)  precomputed embeddings
                   hid0_ref,                # (Bblk, H)     initial hidden
                   enc_ref,                 # (L, H)        encoder outputs (shared)
                   w_attn_ref, b_attn_ref,  # (2H, L), (1, L)
                   w_comb_ref, b_comb_ref,  # (2H, H), (1, H)
                   w_gru_ref, b_gru_ref,    # (2H, 6H) block-diag, (1, 6H)
                   w_out_ref, b_out_ref,    # (H, O), (1, O)
                   logp_ref, hidn_ref, attn_ref):  # (T, Bblk, O/H/L) resident outputs
    f32 = jnp.float32
    T = emb_ref.shape[0]
    H = hid0_ref.shape[-1]

    def step(t, hid):                                        # hid: (Bblk, H) loop carry
        emb = emb_ref[t]                                     # (Bblk, H)
        # TODO(synk): dropout(p=0.1) on `emb` is eval-mode identity.

        # ---- attention weights: softmax([emb ; hid] @ W_attn + b_attn) ---------------
        eh = jnp.concatenate([emb, hid], axis=1)             # (Bblk, 2H) in-register
        logits = (jnp.dot(eh, w_attn_ref[...], preferred_element_type=f32)
                  + b_attn_ref[...])                         # (Bblk, L)
        m = jnp.max(logits, axis=-1, keepdims=True)
        e = jnp.exp(logits - m)
        attn_w = e / jnp.sum(e, axis=-1, keepdims=True)
        attn_ref[t] = attn_w

        # ---- attn_applied = attn_w @ encoder_outputs ---------------------------------
        applied = jnp.dot(attn_w, enc_ref[...], preferred_element_type=f32)  # (Bblk, H)

        # ---- attn_combine + relu ------------------------------------------------------
        ea = jnp.concatenate([emb, applied], axis=1)         # (Bblk, 2H)
        x = jnp.maximum(
            jnp.dot(ea, w_comb_ref[...], preferred_element_type=f32)
            + b_comb_ref[...], 0.0)                          # (Bblk, H)

        # ---- GRU cell, one fused matmul: [x ; h] @ blockdiag(W_ih, W_hh) -------------
        xh = jnp.concatenate([x, hid], axis=1)               # (Bblk, 2H)
        g = (jnp.dot(xh, w_gru_ref[...], preferred_element_type=f32)
             + b_gru_ref[...])                               # (Bblk, 6H) = [gi | gh]
        r = jax.nn.sigmoid(g[:, 0:H]     + g[:, 3 * H:4 * H])
        z = jax.nn.sigmoid(g[:, H:2 * H] + g[:, 4 * H:5 * H])
        n = jnp.tanh(g[:, 2 * H:3 * H] + r * g[:, 5 * H:6 * H])   # r-gated hidden term
        h_new = (1.0 - z) * n + z * hid
        hidn_ref[t] = h_new

        # ---- output projection + log_softmax -----------------------------------------
        out = (jnp.dot(h_new, w_out_ref[...], preferred_element_type=f32)
               + b_out_ref[...])                             # (Bblk, O)
        m2 = jnp.max(out, axis=-1, keepdims=True)
        lse = jnp.log(jnp.sum(jnp.exp(out - m2), axis=-1, keepdims=True)) + m2
        logp_ref[t] = out - lse
        return h_new

    jax.lax.fori_loop(0, T, step, hid0_ref[...], unroll=True)


# ----------------------------------------------------------------------------- wrapper
def attn_decoder_decode(tokens, hidden0, encoder_outputs, params, block_b=8):
    """Run T teacher-forced AttnDecoderRNN steps for B parallel streams in one pallas_call.

    tokens: (T, B) int32; hidden0: (1, B, H); encoder_outputs: (L, H) (shared).
    Returns (log_probs (T,B,O), hiddens (T,B,H), attn_weights (T,B,L)).
    """
    T, B = tokens.shape
    O, H = params["embedding"].shape
    L = encoder_outputs.shape[0]
    assert B % block_b == 0
    nb = B // block_b

    # Token -> embedding gather done once in the wrapper (teacher-forced ids are known).
    emb_all = params["embedding"][tokens]                    # (T, B, H)
    hid0 = hidden0.reshape(B, H)

    # Block-diagonal stacked GRU weights: [x ; h] @ W_gru == [x@W_ih | h@W_hh].
    w_gru = (jnp.zeros((2 * H, 6 * H), jnp.float32)
             .at[:H, :3 * H].set(params["w_ih"])
             .at[H:, 3 * H:].set(params["w_hh"]))
    b_gru = jnp.concatenate([params["b_ih"], params["b_hh"]])[None, :]   # (1, 6H)

    row = lambda b: b[None, :]                               # biases as lane-0-aligned rows

    def const(shape):                                        # resident across batch blocks
        return pl.BlockSpec(shape, lambda i, n=len(shape): (0,) * n)

    grid_spec = pltpu.PrefetchScalarGridSpec(
        num_scalar_prefetch=0,
        grid=(nb,),                                          # batch blocks
        in_specs=[
            pl.BlockSpec((T, block_b, H), lambda i: (0, i, 0)),   # embeddings
            pl.BlockSpec((block_b, H), lambda i: (i, 0)),         # initial hidden
            const((L, H)),                                        # encoder outputs
            const((2 * H, L)), const((1, L)),                     # attn
            const((2 * H, H)), const((1, H)),                     # attn_combine
            const((2 * H, 6 * H)), const((1, 6 * H)),             # GRU (block-diag)
            const((H, O)), const((1, O)),                         # out
        ],
        out_specs=[
            pl.BlockSpec((T, block_b, O), lambda i: (0, i, 0)),
            pl.BlockSpec((T, block_b, H), lambda i: (0, i, 0)),
            pl.BlockSpec((T, block_b, L), lambda i: (0, i, 0)),
        ],
    )

    logp, hids, attn = pl.pallas_call(
        decoder_kernel,
        out_shape=(
            jax.ShapeDtypeStruct((T, B, O), jnp.float32),
            jax.ShapeDtypeStruct((T, B, H), jnp.float32),
            jax.ShapeDtypeStruct((T, B, L), jnp.float32),
        ),
        grid_spec=grid_spec,
        compiler_params=pltpu.CompilerParams(
            dimension_semantics=("parallel",)),              # batch blocks -> v7x's 2 TCs
    )(emb_all, hid0, encoder_outputs,
      params["w_attn"], row(params["b_attn"]),
      params["w_comb"], row(params["b_comb"]),
      w_gru, b_gru,
      params["w_out"], row(params["b_out"]))

    return logp, hids, attn


# ----------------------------------------------------------------------------- params / reference
def init_params(key, H, O, L):
    """Math-layout params (y = x @ W + b). From PyTorch: W = layer.weight.T,
    GRU gate order along the 3H axis is (r, z, n)."""
    ks = jax.random.split(key, 11)
    u = lambda k, s: jax.random.uniform(k, s, jnp.float32, -0.1, 0.1)
    return {
        "embedding": u(ks[0], (O, H)),
        "w_attn": u(ks[1], (2 * H, L)), "b_attn": u(ks[2], (L,)),
        "w_comb": u(ks[3], (2 * H, H)), "b_comb": u(ks[4], (H,)),
        "w_ih": u(ks[5], (H, 3 * H)),   "b_ih": u(ks[6], (3 * H,)),
        "w_hh": u(ks[7], (H, 3 * H)),   "b_hh": u(ks[8], (3 * H,)),
        "w_out": u(ks[9], (H, O)),      "b_out": u(ks[10], (O,)),
    }


def reference_decode(tokens, hidden0, enc, p):
    """Pure-JAX reference of the same T-step, B-stream forward pass."""
    T, B = tokens.shape
    H = p["w_out"].shape[0]
    hid = hidden0.reshape(B, H)
    logps, hiddens, attns = [], [], []
    for t in range(T):
        emb = p["embedding"][tokens[t]]                      # (B, H)
        logits = jnp.concatenate([emb, hid], 1) @ p["w_attn"] + p["b_attn"][None, :]
        attn_w = jax.nn.softmax(logits, axis=-1)
        applied = attn_w @ enc
        x = jax.nn.relu(jnp.concatenate([emb, applied], 1) @ p["w_comb"]
                        + p["b_comb"][None, :])
        gi = x @ p["w_ih"] + p["b_ih"][None, :]
        gh = hid @ p["w_hh"] + p["b_hh"][None, :]
        r = jax.nn.sigmoid(gi[:, :H] + gh[:, :H])
        z = jax.nn.sigmoid(gi[:, H:2 * H] + gh[:, H:2 * H])
        n = jnp.tanh(gi[:, 2 * H:] + r * gh[:, 2 * H:])
        hid = (1.0 - z) * n + z * hid
        logps.append(jax.nn.log_softmax(hid @ p["w_out"] + p["b_out"][None, :], axis=-1))
        hiddens.append(hid)
        attns.append(attn_w)
    return jnp.stack(logps, 0), jnp.stack(hiddens, 0), jnp.stack(attns, 0)


# ----------------------------------------------------------------------------- test
if __name__ == "__main__":
    # hidden_size, output_size (vocab), max_length, decode steps, parallel streams
    H, O, L, T, B = 32, 64, 128, 8, 16
    key = jax.random.PRNGKey(0)
    pkey, tkey, hkey, ekey = jax.random.split(key, 4)

    params = init_params(pkey, H, O, L)
    tokens = jax.random.randint(tkey, (T, B), 0, O, dtype=jnp.int32)    # teacher-forced ids
    hidden0 = jax.random.normal(hkey, (1, B, H), jnp.float32)           # initial GRU hidden
    encoder_outputs = jax.random.normal(ekey, (L, H), jnp.float32)

    logp, hids, attn = attn_decoder_decode(tokens, hidden0, encoder_outputs, params)
    jax.block_until_ready((logp, hids, attn))

    r_logp, r_hids, r_attn = reference_decode(tokens, hidden0, encoder_outputs, params)
    np.testing.assert_allclose(np.asarray(logp), np.asarray(r_logp), atol=1e-3, rtol=1e-3)
    np.testing.assert_allclose(np.asarray(hids), np.asarray(r_hids), atol=1e-3, rtol=1e-3)
    np.testing.assert_allclose(np.asarray(attn), np.asarray(r_attn), atol=1e-4, rtol=1e-3)

    print("KERNEL_OK")
</pallas_src>

<mosaic_0001>
module attributes {stable_mosaic.version = 11 : i64} {
  func.func @decoder_kernel(%arg0: i32, %arg1: memref<8x8x32xf32, #tpu.memory_space<vmem>>, %arg2: memref<8x32xf32, #tpu.memory_space<vmem>>, %arg3: memref<128x32xf32, #tpu.memory_space<vmem>>, %arg4: memref<64x128xf32, #tpu.memory_space<vmem>>, %arg5: memref<1x128xf32, #tpu.memory_space<vmem>>, %arg6: memref<64x32xf32, #tpu.memory_space<vmem>>, %arg7: memref<1x32xf32, #tpu.memory_space<vmem>>, %arg8: memref<64x192xf32, #tpu.memory_space<vmem>>, %arg9: memref<1x192xf32, #tpu.memory_space<vmem>>, %arg10: memref<32x64xf32, #tpu.memory_space<vmem>>, %arg11: memref<1x64xf32, #tpu.memory_space<vmem>>, %arg12: memref<8x8x64xf32, #tpu.memory_space<vmem>>, %arg13: memref<8x8x32xf32, #tpu.memory_space<vmem>>, %arg14: memref<8x8x128xf32, #tpu.memory_space<vmem>>) attributes {dimension_semantics = [#tpu.dimension_semantics<parallel>], iteration_bounds = array<i64: 2>, scalar_prefetch = 0 : i64, scratch_operands = 0 : i64, tpu.core_type = #tpu.core_type<tc>, window_params = [{transform_indices = @transform_0, window_bounds = array<i64: 8, 8, 32>}, {transform_indices = @transform_1, window_bounds = array<i64: 8, 32>}, {pipeline_mode = #tpu.pipeline_mode<synchronous>, transform_indices = @transform_2, window_bounds = array<i64: 128, 32>}, {pipeline_mode = #tpu.pipeline_mode<synchronous>, transform_indices = @transform_3, window_bounds = array<i64: 64, 128>}, {pipeline_mode = #tpu.pipeline_mode<synchronous>, transform_indices = @transform_4, window_bounds = array<i64: 1, 128>}, {pipeline_mode = #tpu.pipeline_mode<synchronous>, transform_indices = @transform_5, window_bounds = array<i64: 64, 32>}, {pipeline_mode = #tpu.pipeline_mode<synchronous>, transform_indices = @transform_6, window_bounds = array<i64: 1, 32>}, {pipeline_mode = #tpu.pipeline_mode<synchronous>, transform_indices = @transform_7, window_bounds = array<i64: 64, 192>}, {pipeline_mode = #tpu.pipeline_mode<synchronous>, transform_indices = @transform_8, window_bounds = array<i64: 1, 192>}, {pipeline_mode = #tpu.pipeline_mode<synchronous>, transform_indices = @transform_9, window_bounds = array<i64: 32, 64>}, {pipeline_mode = #tpu.pipeline_mode<synchronous>, transform_indices = @transform_10, window_bounds = array<i64: 1, 64>}, {transform_indices = @transform_11, window_bounds = array<i64: 8, 8, 64>}, {transform_indices = @transform_12, window_bounds = array<i64: 8, 8, 32>}, {transform_indices = @transform_13, window_bounds = array<i64: 8, 8, 128>}]} {
    %c0 = arith.constant 0 : index
    %c0_0 = arith.constant 0 : index
    %0 = vector.load %arg2[%c0, %c0_0] : memref<8x32xf32, #tpu.memory_space<vmem>>, vector<8x32xf32>
    %c0_i32 = arith.constant 0 : i32
    %1 = arith.index_cast %c0_i32 : i32 to index
    %c0_1 = arith.constant 0 : index
    %c0_2 = arith.constant 0 : index
    %2 = vector.load %arg1[%1, %c0_1, %c0_2] : memref<8x8x32xf32, #tpu.memory_space<vmem>>, vector<1x8x32xf32>
    %3 = vector.shape_cast %2 : vector<1x8x32xf32> to vector<8x32xf32>
    %4 = tpu.concatenate %3, %0 in 1 : vector<8x32xf32>, vector<8x32xf32> -> vector<8x64xf32>
    %c0_3 = arith.constant 0 : index
    %c0_4 = arith.constant 0 : index
    %5 = vector.load %arg4[%c0_3, %c0_4] : memref<64x128xf32, #tpu.memory_space<vmem>>, vector<64x128xf32>
    %cst = arith.constant dense<0.000000e+00> : vector<8x128xf32>
    %6 = tpu.matmul %4, %5, %cst {dimension_numbers = #tpu.dot_dimension_numbers<[1], [0], [0], [1], [0, 0, 1, 1], [], []>} : vector<8x64xf32>, vector<64x128xf32>, vector<8x128xf32> -> vector<8x128xf32>
    %c0_5 = arith.constant 0 : index
    %c0_6 = arith.constant 0 : index
    %7 = vector.load %arg5[%c0_5, %c0_6] : memref<1x128xf32, #tpu.memory_space<vmem>>, vector<1x128xf32>
    %8 = vector.broadcast %7 : vector<1x128xf32> to vector<8x128xf32>
    %9 = arith.addf %6, %8 : vector<8x128xf32>
    %cst_7 = arith.constant dense<0xFF800000> : vector<8xf32>
    %10 = vector.multi_reduction <maximumf>, %9, %cst_7 [1] : vector<8x128xf32> to vector<8xf32>
    %11 = vector.shape_cast %10 : vector<8xf32> to vector<8x1xf32>
    %12 = vector.broadcast %11 : vector<8x1xf32> to vector<8x128xf32>
    %13 = arith.subf %9, %12 : vector<8x128xf32>
    %14 = math.exp %13 : vector<8x128xf32>
    %cst_8 = arith.constant dense<0.000000e+00> : vector<8xf32>
    %15 = vector.multi_reduction <add>, %14, %cst_8 [1] : vector<8x128xf32> to vector<8xf32>
    %16 = vector.shape_cast %15 : vector<8xf32> to vector<8x1xf32>
    %17 = vector.broadcast %16 : vector<8x1xf32> to vector<8x128xf32>
    %18 = arith.divf %14, %17 : vector<8x128xf32>
    %19 = arith.index_cast %c0_i32 : i32 to index
    %c0_9 = arith.constant 0 : index
    %c0_10 = arith.constant 0 : index
    %20 = vector.load %arg14[%19, %c0_9, %c0_10] : memref<8x8x128xf32, #tpu.memory_space<vmem>>, vector<1x8x128xf32>
    %21 = vector.shape_cast %20 : vector<1x8x128xf32> to vector<8x128xf32>
    %22 = vector.shape_cast %18 : vector<8x128xf32> to vector<1x8x128xf32>
    tpu.vector_store %arg14[%19, %c0_9, %c0_10], %22 {strides = array<i32>} : memref<8x8x128xf32, #tpu.memory_space<vmem>>, vector<1x8x128xf32>,
    %c0_11 = arith.constant 0 : index
    %c0_12 = arith.constant 0 : index
    %23 = vector.load %arg3[%c0_11, %c0_12] : memref<128x32xf32, #tpu.memory_space<vmem>>, vector<128x32xf32>
    %cst_13 = arith.constant dense<0.000000e+00> : vector<8x32xf32>
    %24 = tpu.matmul %18, %23, %cst_13 {dimension_numbers = #tpu.dot_dimension_numbers<[1], [0], [0], [1], [0, 0, 1, 1], [], []>} : vector<8x128xf32>, vector<128x32xf32>, vector<8x32xf32> -> vector<8x32xf32>
    %25 = tpu.concatenate %3, %24 in 1 : vector<8x32xf32>, vector<8x32xf32> -> vector<8x64xf32>
    %c0_14 = arith.constant 0 : index
    %c0_15 = arith.constant 0 : index
    %26 = vector.load %arg6[%c0_14, %c0_15] : memref<64x32xf32, #tpu.memory_space<vmem>>, vector<64x32xf32>
    %cst_16 = arith.constant dense<0.000000e+00> : vector<8x32xf32>
    %27 = tpu.matmul %25, %26, %cst_16 {dimension_numbers = #tpu.dot_dimension_numbers<[1], [0], [0], [1], [0, 0, 1, 1], [], []>} : vector<8x64xf32>, vector<64x32xf32>, vector<8x32xf32> -> vector<8x32xf32>
    %c0_17 = arith.constant 0 : index
    %c0_18 = arith.constant 0 : index
    %28 = vector.load %arg7[%c0_17, %c0_18] : memref<1x32xf32, #tpu.memory_space<vmem>>, vector<1x32xf32>
    %29 = vector.broadcast %28 : vector<1x32xf32> to vector<8x32xf32>
    %30 = arith.addf %27, %29 : vector<8x32xf32>
    %cst_19 = arith.constant 0.000000e+00 : f32
    %31 = vector.broadcast %cst_19 : f32 to vector<8x32xf32>
    %32 = arith.maximumf %30, %31 : vector<8x32xf32>
    %33 = tpu.concatenate %32, %0 in 1 : vector<8x32xf32>, vector<8x32xf32> -> vector<8x64xf32>
    %c0_20 = arith.constant 0 : index
    %c0_21 = arith.constant 0 : index
    %34 = vector.load %arg8[%c0_20, %c0_21] : memref<64x192xf32, #tpu.memory_space<vmem>>, vector<64x192xf32>
    %cst_22 = arith.constant dense<0.000000e+00> : vector<8x192xf32>
    %35 = tpu.matmul %33, %34, %cst_22 {dimension_numbers = #tpu.dot_dimension_numbers<[1], [0], [0], [1], [0, 0, 1, 1], [], []>} : vector<8x64xf32>, vector<64x192xf32>, vector<8x192xf32> -> vector<8x192xf32>
    %c0_23 = arith.constant 0 : index
    %c0_24 = arith.constant 0 : index
    %36 = vector.load %arg9[%c0_23, %c0_24] : memref<1x192xf32, #tpu.memory_space<vmem>>, vector<1x192xf32>
    %37 = vector.broadcast %36 : vector<1x192xf32> to vector<8x192xf32>
    %38 = arith.addf %35, %37 : vector<8x192xf32>
    %39 = vector.extract_strided_slice %38 {offsets = [0, 0], sizes = [8, 32], strides = [1, 1]} : vector<8x192xf32> to vector<8x32xf32>
    %40 = vector.extract_strided_slice %38 {offsets = [0, 96], sizes = [8, 32], strides = [1, 1]} : vector<8x192xf32> to vector<8x32xf32>
    %41 = arith.addf %39, %40 : vector<8x32xf32>
    %42 = arith.negf %41 : vector<8x32xf32>
    %43 = math.exp %42 : vector<8x32xf32>
    %cst_25 = arith.constant 1.000000e+00 : f32
    %44 = vector.broadcast %cst_25 : f32 to vector<8x32xf32>
    %45 = arith.addf %44, %43 : vector<8x32xf32>
    %46 = arith.divf %44, %45 : vector<8x32xf32>
    %47 = vector.extract_strided_slice %38 {offsets = [0, 32], sizes = [8, 32], strides = [1, 1]} : vector<8x192xf32> to vector<8x32xf32>
    %48 = vector.extract_strided_slice %38 {offsets = [0, 128], sizes = [8, 32], strides = [1, 1]} : vector<8x192xf32> to vector<8x32xf32>
    %49 = arith.addf %47, %48 : vector<8x32xf32>
    %50 = arith.negf %49 : vector<8x32xf32>
    %51 = math.exp %50 : vector<8x32xf32>
    %cst_26 = arith.constant 1.000000e+00 : f32
    %52 = vector.broadcast %cst_26 : f32 to vector<8x32xf32>
    %53 = arith.addf %52, %51 : vector<8x32xf32>
    %54 = arith.divf %52, %53 : vector<8x32xf32>
    %55 = vector.extract_strided_slice %38 {offsets = [0, 64], sizes = [8, 32], strides = [1, 1]} : vector<8x192xf32> to vector<8x32xf32>
    %56 = vector.extract_strided_slice %38 {offsets = [0, 160], sizes = [8, 32], strides = [1, 1]} : vector<8x192xf32> to vector<8x32xf32>
    %57 = arith.mulf %46, %56 : vector<8x32xf32>
    %58 = arith.addf %55, %57 : vector<8x32xf32>
    %59 = math.tanh %58 : vector<8x32xf32>
    %cst_27 = arith.constant 1.000000e+00 : f32
    %60 = vector.broadcast %cst_27 : f32 to vector<8x32xf32>
    %61 = arith.subf %60, %54 : vector<8x32xf32>
    %62 = arith.mulf %61, %59 : vector<8x32xf32>
    %63 = arith.mulf %54, %0 : vector<8x32xf32>
    %64 = arith.addf %62, %63 : vector<8x32xf32>
    %65 = arith.index_cast %c0_i32 : i32 to index
    %c0_28 = arith.constant 0 : index
    %c0_29 = arith.constant 0 : index
    %66 = vector.load %arg13[%65, %c0_28, %c0_29] : memref<8x8x32xf32, #tpu.memory_space<vmem>>, vector<1x8x32xf32>
    %67 = vector.shape_cast %66 : vector<1x8x32xf32> to vector<8x32xf32>
    %68 = vector.shape_cast %64 : vector<8x32xf32> to vector<1x8x32xf32>
    tpu.vector_store %arg13[%65, %c0_28, %c0_29], %68 {strides = array<i32>} : memref<8x8x32xf32, #tpu.memory_space<vmem>>, vector<1x8x32xf32>,
    %c0_30 = arith.constant 0 : index
    %c0_31 = arith.constant 0 : index
    %69 = vector.load %arg10[%c0_30, %c0_31] : memref<32x64xf32, #tpu.memory_space<vmem>>, vector<32x64xf32>
    %cst_32 = arith.constant dense<0.000000e+00> : vector<8x64xf32>
    %70 = tpu.matmul %64, %69, %cst_32 {dimension_numbers = #tpu.dot_dimension_numbers<[1], [0], [0], [1], [0, 0, 1, 1], [], []>} : vector<8x32xf32>, vector<32x64xf32>, vector<8x64xf32> -> vector<8x64xf32>
    %c0_33 = arith.constant 0 : index
    %c0_34 = arith.constant 0 : index
    %71 = vector.load %arg11[%c0_33, %c0_34] : memref<1x64xf32, #tpu.memory_space<vmem>>, vector<1x64xf32>
    %72 = vector.broadcast %71 : vector<1x64xf32> to vector<8x64xf32>
    %73 = arith.addf %70, %72 : vector<8x64xf32>
    %cst_35 = arith.constant dense<0xFF800000> : vector<8xf32>
    %74 = vector.multi_reduction <maximumf>, %73, %cst_35 [1] : vector<8x64xf32> to vector<8xf32>
    %75 = vector.shape_cast %74 : vector<8xf32> to vector<8x1xf32>
    %76 = vector.broadcast %75 : vector<8x1xf32> to vector<8x64xf32>
    %77 = arith.subf %73, %76 : vector<8x64xf32>
    %78 = math.exp %77 : vector<8x64xf32>
    %cst_36 = arith.constant dense<0.000000e+00> : vector<8xf32>
    %79 = vector.multi_reduction <add>, %78, %cst_36 [1] : vector<8x64xf32> to vector<8xf32>
    %80 = vector.shape_cast %79 : vector<8xf32> to vector<8x1xf32>
    %81 = math.log %80 : vector<8x1xf32>
    %82 = arith.addf %81, %75 : vector<8x1xf32>
    %83 = vector.broadcast %82 : vector<8x1xf32> to vector<8x64xf32>
    %84 = arith.subf %73, %83 : vector<8x64xf32>
    %85 = arith.index_cast %c0_i32 : i32 to index
    %c0_37 = arith.constant 0 : index
    %c0_38 = arith.constant 0 : index
    %86 = vector.load %arg12[%85, %c0_37, %c0_38] : memref<8x8x64xf32, #tpu.memory_space<vmem>>, vector<1x8x64xf32>
    %87 = vector.shape_cast %86 : vector<1x8x64xf32> to vector<8x64xf32>
    %88 = vector.shape_cast %84 : vector<8x64xf32> to vector<1x8x64xf32>
    tpu.vector_store %arg12[%85, %c0_37, %c0_38], %88 {strides = array<i32>} : memref<8x8x64xf32, #tpu.memory_space<vmem>>, vector<1x8x64xf32>,
    %c1_i32 = arith.constant 1 : i32
    %89 = arith.index_cast %c1_i32 : i32 to index
    %c0_39 = arith.constant 0 : index
    %c0_40 = arith.constant 0 : index
    %90 = vector.load %arg1[%89, %c0_39, %c0_40] : memref<8x8x32xf32, #tpu.memory_space<vmem>>, vector<1x8x32xf32>
    %91 = vector.shape_cast %90 : vector<1x8x32xf32> to vector<8x32xf32>
    %92 = tpu.concatenate %91, %64 in 1 : vector<8x32xf32>, vector<8x32xf32> -> vector<8x64xf32>
    %c0_41 = arith.constant 0 : index
    %c0_42 = arith.constant 0 : index
    %93 = vector.load %arg4[%c0_41, %c0_42] : memref<64x128xf32, #tpu.memory_space<vmem>>, vector<64x128xf32>
    %cst_43 = arith.constant dense<0.000000e+00> : vector<8x128xf32>
    %94 = tpu.matmul %92, %93, %cst_43 {dimension_numbers = #tpu.dot_dimension_numbers<[1], [0], [0], [1], [0, 0, 1, 1], [], []>} : vector<8x64xf32>, vector<64x128xf32>, vector<8x128xf32> -> vector<8x128xf32>
    %c0_44 = arith.constant 0 : index
    %c0_45 = arith.constant 0 : index
    %95 = vector.load %arg5[%c0_44, %c0_45] : memref<1x128xf32, #tpu.memory_space<vmem>>, vector<1x128xf32>
    %96 = vector.broadcast %95 : vector<1x128xf32> to vector<8x128xf32>
    %97 = arith.addf %94, %96 : vector<8x128xf32>
    %cst_46 = arith.constant dense<0xFF800000> : vector<8xf32>
    %98 = vector.multi_reduction <maximumf>, %97, %cst_46 [1] : vector<8x128xf32> to vector<8xf32>
    %99 = vector.shape_cast %98 : vector<8xf32> to vector<8x1xf32>
    %100 = vector.broadcast %99 : vector<8x1xf32> to vector<8x128xf32>
    %101 = arith.subf %97, %100 : vector<8x128xf32>
    %102 = math.exp %101 : vector<8x128xf32>
    %cst_47 = arith.constant dense<0.000000e+00> : vector<8xf32>
    %103 = vector.multi_reduction <add>, %102, %cst_47 [1] : vector<8x128xf32> to vector<8xf32>
    %104 = vector.shape_cast %103 : vector<8xf32> to vector<8x1xf32>
    %105 = vector.broadcast %104 : vector<8x1xf32> to vector<8x128xf32>
    %106 = arith.divf %102, %105 : vector<8x128xf32>
    %107 = arith.index_cast %c1_i32 : i32 to index
    %c0_48 = arith.constant 0 : index
    %c0_49 = arith.constant 0 : index
    %108 = vector.load %arg14[%107, %c0_48, %c0_49] : memref<8x8x128xf32, #tpu.memory_space<vmem>>, vector<1x8x128xf32>
    %109 = vector.shape_cast %108 : vector<1x8x128xf32> to vector<8x128xf32>
    %110 = vector.shape_cast %106 : vector<8x128xf32> to vector<1x8x128xf32>
    tpu.vector_store %arg14[%107, %c0_48, %c0_49], %110 {strides = array<i32>} : memref<8x8x128xf32, #tpu.memory_space<vmem>>, vector<1x8x128xf32>,
    %c0_50 = arith.constant 0 : index
    %c0_51 = arith.constant 0 : index
    %111 = vector.load %arg3[%c0_50, %c0_51] : memref<128x32xf32, #tpu.memory_space<vmem>>, vector<128x32xf32>
    %cst_52 = arith.constant dense<0.000000e+00> : vector<8x32xf32>
    %112 = tpu.matmul %106, %111, %cst_52 {dimension_numbers = #tpu.dot_dimension_numbers<[1], [0], [0], [1], [0, 0, 1, 1], [], []>} : vector<8x128xf32>, vector<128x32xf32>, vector<8x32xf32> -> vector<8x32xf32>
    %113 = tpu.concatenate %91, %112 in 1 : vector<8x32xf32>, vector<8x32xf32> -> vector<8x64xf32>
    %c0_53 = arith.constant 0 : index
    %c0_54 = arith.constant 0 : index
    %114 = vector.load %arg6[%c0_53, %c0_54] : memref<64x32xf32, #tpu.memory_space<vmem>>, vector<64x32xf32>
    %cst_55 = arith.constant dense<0.000000e+00> : vector<8x32xf32>
    %115 = tpu.matmul %113, %114, %cst_55 {dimension_numbers = #tpu.dot_dimension_numbers<[1], [0], [0], [1], [0, 0, 1, 1], [], []>} : vector<8x64xf32>, vector<64x32xf32>, vector<8x32xf32> -> vector<8x32xf32>
    %c0_56 = arith.constant 0 : index
    %c0_57 = arith.constant 0 : index
    %116 = vector.load %arg7[%c0_56, %c0_57] : memref<1x32xf32, #tpu.memory_space<vmem>>, vector<1x32xf32>
    %117 = vector.broadcast %116 : vector<1x32xf32> to vector<8x32xf32>
    %118 = arith.addf %115, %117 : vector<8x32xf32>
    %cst_58 = arith.constant 0.000000e+00 : f32
    %119 = vector.broadcast %cst_58 : f32 to vector<8x32xf32>
    %120 = arith.maximumf %118, %119 : vector<8x32xf32>
    %121 = tpu.concatenate %120, %64 in 1 : vector<8x32xf32>, vector<8x32xf32> -> vector<8x64xf32>
    %c0_59 = arith.constant 0 : index
    %c0_60 = arith.constant 0 : index
    %122 = vector.load %arg8[%c0_59, %c0_60] : memref<64x192xf32, #tpu.memory_space<vmem>>, vector<64x192xf32>
    %cst_61 = arith.constant dense<0.000000e+00> : vector<8x192xf32>
    %123 = tpu.matmul %121, %122, %cst_61 {dimension_numbers = #tpu.dot_dimension_numbers<[1], [0], [0], [1], [0, 0, 1, 1], [], []>} : vector<8x64xf32>, vector<64x192xf32>, vector<8x192xf32> -> vector<8x192xf32>
    %c0_62 = arith.constant 0 : index
    %c0_63 = arith.constant 0 : index
    %124 = vector.load %arg9[%c0_62, %c0_63] : memref<1x192xf32, #tpu.memory_space<vmem>>, vector<1x192xf32>
    %125 = vector.broadcast %124 : vector<1x192xf32> to vector<8x192xf32>
    %126 = arith.addf %123, %125 : vector<8x192xf32>
    %127 = vector.extract_strided_slice %126 {offsets = [0, 0], sizes = [8, 32], strides = [1, 1]} : vector<8x192xf32> to vector<8x32xf32>
    %128 = vector.extract_strided_slice %126 {offsets = [0, 96], sizes = [8, 32], strides = [1, 1]} : vector<8x192xf32> to vector<8x32xf32>
    %129 = arith.addf %127, %128 : vector<8x32xf32>
    %130 = arith.negf %129 : vector<8x32xf32>
    %131 = math.exp %130 : vector<8x32xf32>
    %cst_64 = arith.constant 1.000000e+00 : f32
    %132 = vector.broadcast %cst_64 : f32 to vector<8x32xf32>
    %133 = arith.addf %132, %131 : vector<8x32xf32>
    %134 = arith.divf %132, %133 : vector<8x32xf32>
    %135 = vector.extract_strided_slice %126 {offsets = [0, 32], sizes = [8, 32], strides = [1, 1]} : vector<8x192xf32> to vector<8x32xf32>
    %136 = vector.extract_strided_slice %126 {offsets = [0, 128], sizes = [8, 32], strides = [1, 1]} : vector<8x192xf32> to vector<8x32xf32>
    %137 = arith.addf %135, %136 : vector<8x32xf32>
    %138 = arith.negf %137 : vector<8x32xf32>
    %139 = math.exp %138 : vector<8x32xf32>
    %cst_65 = arith.constant 1.000000e+00 : f32
    %140 = vector.broadcast %cst_65 : f32 to vector<8x32xf32>
    %141 = arith.addf %140, %139 : vector<8x32xf32>
    %142 = arith.divf %140, %141 : vector<8x32xf32>
    %143 = vector.extract_strided_slice %126 {offsets = [0, 64], sizes = [8, 32], strides = [1, 1]} : vector<8x192xf32> to vector<8x32xf32>
    %144 = vector.extract_strided_slice %126 {offsets = [0, 160], sizes = [8, 32], strides = [1, 1]} : vector<8x192xf32> to vector<8x32xf32>
    %145 = arith.mulf %134, %144 : vector<8x32xf32>
    %146 = arith.addf %143, %145 : vector<8x32xf32>
    %147 = math.tanh %146 : vector<8x32xf32>
    %cst_66 = arith.constant 1.000000e+00 : f32
    %148 = vector.broadcast %cst_66 : f32 to vector<8x32xf32>
    %149 = arith.subf %148, %142 : vector<8x32xf32>
    %150 = arith.mulf %149, %147 : vector<8x32xf32>
    %151 = arith.mulf %142, %64 : vector<8x32xf32>
    %152 = arith.addf %150, %151 : vector<8x32xf32>
    %153 = arith.index_cast %c1_i32 : i32 to index
    %c0_67 = arith.constant 0 : index
    %c0_68 = arith.constant 0 : index
    %154 = vector.load %arg13[%153, %c0_67, %c0_68] : memref<8x8x32xf32, #tpu.memory_space<vmem>>, vector<1x8x32xf32>
    %155 = vector.shape_cast %154 : vector<1x8x32xf32> to vector<8x32xf32>
    %156 = vector.shape_cast %152 : vector<8x32xf32> to vector<1x8x32xf32>
    tpu.vector_store %arg13[%153, %c0_67, %c0_68], %156 {strides = array<i32>} : memref<8x8x32xf32, #tpu.memory_space<vmem>>, vector<1x8x32xf32>,
    %c0_69 = arith.constant 0 : index
    %c0_70 = arith.constant 0 : index
    %157 = vector.load %arg10[%c0_69, %c0_70] : memref<32x64xf32, #tpu.memory_space<vmem>>, vector<32x64xf32>
    %cst_71 = arith.constant dense<0.000000e+00> : vector<8x64xf32>
    %158 = tpu.matmul %152, %157, %cst_71 {dimension_numbers = #tpu.dot_dimension_numbers<[1], [0], [0], [1], [0, 0, 1, 1], [], []>} : vector<8x32xf32>, vector<32x64xf32>, vector<8x64xf32> -> vector<8x64xf32>
    %c0_72 = arith.constant 0 : index
    %c0_73 = arith.constant 0 : index
    %159 = vector.load %arg11[%c0_72, %c0_73] : memref<1x64xf32, #tpu.memory_space<vmem>>, vector<1x64xf32>
    %160 = vector.broadcast %159 : vector<1x64xf32> to vector<8x64xf32>
    %161 = arith.addf %158, %160 : vector<8x64xf32>
    %cst_74 = arith.constant dense<0xFF800000> : vector<8xf32>
    %162 = vector.multi_reduction <maximumf>, %161, %cst_74 [1] : vector<8x64xf32> to vector<8xf32>
    %163 = vector.shape_cast %162 : vector<8xf32> to vector<8x1xf32>
    %164 = vector.broadcast %163 : vector<8x1xf32> to vector<8x64xf32>
    %165 = arith.subf %161, %164 : vector<8x64xf32>
    %166 = math.exp %165 : vector<8x64xf32>
    %cst_75 = arith.constant dense<0.000000e+00> : vector<8xf32>
    %167 = vector.multi_reduction <add>, %166, %cst_75 [1] : vector<8x64xf32> to vector<8xf32>
    %168 = vector.shape_cast %167 : vector<8xf32> to vector<8x1xf32>
    %169 = math.log %168 : vector<8x1xf32>
    %170 = arith.addf %169, %163 : vector<8x1xf32>
    %171 = vector.broadcast %170 : vector<8x1xf32> to vector<8x64xf32>
    %172 = arith.subf %161, %171 : vector<8x64xf32>
    %173 = arith.index_cast %c1_i32 : i32 to index
    %c0_76 = arith.constant 0 : index
    %c0_77 = arith.constant 0 : index
    %174 = vector.load %arg12[%173, %c0_76, %c0_77] : memref<8x8x64xf32, #tpu.memory_space<vmem>>, vector<1x8x64xf32>
    %175 = vector.shape_cast %174 : vector<1x8x64xf32> to vector<8x64xf32>
    %176 = vector.shape_cast %172 : vector<8x64xf32> to vector<1x8x64xf32>
    tpu.vector_store %arg12[%173, %c0_76, %c0_77], %176 {strides = array<i32>} : memref<8x8x64xf32, #tpu.memory_space<vmem>>, vector<1x8x64xf32>,
    %c2_i32 = arith.constant 2 : i32
    %177 = arith.index_cast %c2_i32 : i32 to index
    %c0_78 = arith.constant 0 : index
    %c0_79 = arith.constant 0 : index
    %178 = vector.load %arg1[%177, %c0_78, %c0_79] : memref<8x8x32xf32, #tpu.memory_space<vmem>>, vector<1x8x32xf32>
    %179 = vector.shape_cast %178 : vector<1x8x32xf32> to vector<8x32xf32>
    %180 = tpu.concatenate %179, %152 in 1 : vector<8x32xf32>, vector<8x32xf32> -> vector<8x64xf32>
    %c0_80 = arith.constant 0 : index
    %c0_81 = arith.constant 0 : index
    %181 = vector.load %arg4[%c0_80, %c0_81] : memref<64x128xf32, #tpu.memory_space<vmem>>, vector<64x128xf32>
    %cst_82 = arith.constant dense<0.000000e+00> : vector<8x128xf32>
    %182 = tpu.matmul %180, %181, %cst_82 {dimension_numbers = #tpu.dot_dimension_numbers<[1], [0], [0], [1], [0, 0, 1, 1], [], []>} : vector<8x64xf32>, vector<64x128xf32>, vector<8x128xf32> -> vector<8x128xf32>
    %c0_83 = arith.constant 0 : index
    %c0_84 = arith.constant 0 : index
    %183 = vector.load %arg5[%c0_83, %c0_84] : memref<1x128xf32, #tpu.memory_space<vmem>>, vector<1x128xf32>
    %184 = vector.broadcast %183 : vector<1x128xf32> to vector<8x128xf32>
    %185 = arith.addf %182, %184 : vector<8x128xf32>
    %cst_85 = arith.constant dense<0xFF800000> : vector<8xf32>
    %186 = vector.multi_reduction <maximumf>, %185, %cst_85 [1] : vector<8x128xf32> to vector<8xf32>
    %187 = vector.shape_cast %186 : vector<8xf32> to vector<8x1xf32>
    %188 = vector.broadcast %187 : vector<8x1xf32> to vector<8x128xf32>
    %189 = arith.subf %185, %188 : vector<8x128xf32>
    %190 = math.exp %189 : vector<8x128xf32>
    %cst_86 = arith.constant dense<0.000000e+00> : vector<8xf32>
    %191 = vector.multi_reduction <add>, %190, %cst_86 [1] : vector<8x128xf32> to vector<8xf32>
    %192 = vector.shape_cast %191 : vector<8xf32> to vector<8x1xf32>
    %193 = vector.broadcast %192 : vector<8x1xf32> to vector<8x128xf32>
    %194 = arith.divf %190, %193 : vector<8x128xf32>
    %195 = arith.index_cast %c2_i32 : i32 to index
    %c0_87 = arith.constant 0 : index
    %c0_88 = arith.constant 0 : index
    %196 = vector.load %arg14[%195, %c0_87, %c0_88] : memref<8x8x128xf32, #tpu.memory_space<vmem>>, vector<1x8x128xf32>
    %197 = vector.shape_cast %196 : vector<1x8x128xf32> to vector<8x128xf32>
    %198 = vector.shape_cast %194 : vector<8x128xf32> to vector<1x8x128xf32>
    tpu.vector_store %arg14[%195, %c0_87, %c0_88], %198 {strides = array<i32>} : memref<8x8x128xf32, #tpu.memory_space<vmem>>, vector<1x8x128xf32>,
    %c0_89 = arith.constant 0 : index
    %c0_90 = arith.constant 0 : index
    %199 = vector.load %arg3[%c0_89, %c0_90] : memref<128x32xf32, #tpu.memory_space<vmem>>, vector<128x32xf32>
    %cst_91 = arith.constant dense<0.000000e+00> : vector<8x32xf32>
    %200 = tpu.matmul %194, %199, %cst_91 {dimension_numbers = #tpu.dot_dimension_numbers<[1], [0], [0], [1], [0, 0, 1, 1], [], []>} : vector<8x128xf32>, vector<128x32xf32>, vector<8x32xf32> -> vector<8x32xf32>
    %201 = tpu.concatenate %179, %200 in 1 : vector<8x32xf32>, vector<8x32xf32> -> vector<8x64xf32>
    %c0_92 = arith.constant 0 : index
    %c0_93 = arith.constant 0 : index
    %202 = vector.load %arg6[%c0_92, %c0_93] : memref<64x32xf32, #tpu.memory_space<vmem>>, vector<64x32xf32>
    %cst_94 = arith.constant dense<0.000000e+00> : vector<8x32xf32>
    %203 = tpu.matmul %201, %202, %cst_94 {dimension_numbers = #tpu.dot_dimension_numbers<[1], [0], [0], [1], [0, 0, 1, 1], [], []>} : vector<8x64xf32>, vector<64x32xf32>, vector<8x32xf32> -> vector<8x32xf32>
    %c0_95 = arith.constant 0 : index
    %c0_96 = arith.constant 0 : index
    %204 = vector.load %arg7[%c0_95, %c0_96] : memref<1x32xf32, #tpu.memory_space<vmem>>, vector<1x32xf32>
    %205 = vector.broadcast %204 : vector<1x32xf32> to vector<8x32xf32>
    %206 = arith.addf %203, %205 : vector<8x32xf32>
    %cst_97 = arith.constant 0.000000e+00 : f32
    %207 = vector.broadcast %cst_97 : f32 to vector<8x32xf32>
    %208 = arith.maximumf %206, %207 : vector<8x32xf32>
    %209 = tpu.concatenate %208, %152 in 1 : vector<8x32xf32>, vector<8x32xf32> -> vector<8x64xf32>
    %c0_98 = arith.constant 0 : index
    %c0_99 = arith.constant 0 : index
    %210 = vector.load %arg8[%c0_98, %c0_99] : memref<64x192xf32, #tpu.memory_space<vmem>>, vector<64x192xf32>
    %cst_100 = arith.constant dense<0.000000e+00> : vector<8x192xf32>
    %211 = tpu.matmul %209, %210, %cst_100 {dimension_numbers = #tpu.dot_dimension_numbers<[1], [0], [0], [1], [0, 0, 1, 1], [], []>} : vector<8x64xf32>, vector<64x192xf32>, vector<8x192xf32> -> vector<8x192xf32>
    %c0_101 = arith.constant 0 : index
    %c0_102 = arith.constant 0 : index
    %212 = vector.load %arg9[%c0_101, %c0_102] : memref<1x192xf32, #tpu.memory_space<vmem>>, vector<1x192xf32>
    %213 = vector.broadcast %212 : vector<1x192xf32> to vector<8x192xf32>
    %214 = arith.addf %211, %213 : vector<8x192xf32>
    %215 = vector.extract_strided_slice %214 {offsets = [0, 0], sizes = [8, 32], strides = [1, 1]} : vector<8x192xf32> to vector<8x32xf32>
    %216 = vector.extract_strided_slice %214 {offsets = [0, 96], sizes = [8, 32], strides = [1, 1]} : vector<8x192xf32> to vector<8x32xf32>
    %217 = arith.addf %215, %216 : vector<8x32xf32>
    %218 = arith.negf %217 : vector<8x32xf32>
    %219 = math.exp %218 : vector<8x32xf32>
    %cst_103 = arith.constant 1.000000e+00 : f32
    %220 = vector.broadcast %cst_103 : f32 to vector<8x32xf32>
    %221 = arith.addf %220, %219 : vector<8x32xf32>
    %222 = arith.divf %220, %221 : vector<8x32xf32>
    %223 = vector.extract_strided_slice %214 {offsets = [0, 32], sizes = [8, 32], strides = [1, 1]} : vector<8x192xf32> to vector<8x32xf32>
    %224 = vector.extract_strided_slice %214 {offsets = [0, 128], sizes = [8, 32], strides = [1, 1]} : vector<8x192xf32> to vector<8x32xf32>
    %225 = arith.addf %223, %224 : vector<8x32xf32>
    %226 = arith.negf %225 : vector<8x32xf32>
    %227 = math.exp %226 : vector<8x32xf32>
    %cst_104 = arith.constant 1.000000e+00 : f32
    %228 = vector.broadcast %cst_104 : f32 to vector<8x32xf32>
    %229 = arith.addf %228, %227 : vector<8x32xf32>
    %230 = arith.divf %228, %229 : vector<8x32xf32>
    %231 = vector.extract_strided_slice %214 {offsets = [0, 64], sizes = [8, 32], strides = [1, 1]} : vector<8x192xf32> to vector<8x32xf32>
    %232 = vector.extract_strided_slice %214 {offsets = [0, 160], sizes = [8, 32], strides = [1, 1]} : vector<8x192xf32> to vector<8x32xf32>
    %233 = arith.mulf %222, %232 : vector<8x32xf32>
    %234 = arith.addf %231, %233 : vector<8x32xf32>
    %235 = math.tanh %234 : vector<8x32xf32>
    %cst_105 = arith.constant 1.000000e+00 : f32
    %236 = vector.broadcast %cst_105 : f32 to vector<8x32xf32>
    %237 = arith.subf %236, %230 : vector<8x32xf32>
    %238 = arith.mulf %237, %235 : vector<8x32xf32>
    %239 = arith.mulf %230, %152 : vector<8x32xf32>
    %240 = arith.addf %238, %239 : vector<8x32xf32>
    %241 = arith.index_cast %c2_i32 : i32 to index
    %c0_106 = arith.constant 0 : index
    %c0_107 = arith.constant 0 : index
    %242 = vector.load %arg13[%241, %c0_106, %c0_107] : memref<8x8x32xf32, #tpu.memory_space<vmem>>, vector<1x8x32xf32>
    %243 = vector.shape_cast %242 : vector<1x8x32xf32> to vector<8x32xf32>
    %244 = vector.shape_cast %240 : vector<8x32xf32> to vector<1x8x32xf32>
    tpu.vector_store %arg13[%241, %c0_106, %c0_107], %244 {strides = array<i32>} : memref<8x8x32xf32, #tpu.memory_space<vmem>>, vector<1x8x32xf32>,
    %c0_108 = arith.constant 0 : index
    %c0_109 = arith.constant 0 : index
    %245 = vector.load %arg10[%c0_108, %c0_109] : memref<32x64xf32, #tpu.memory_space<vmem>>, vector<32x64xf32>
    %cst_110 = arith.constant dense<0.000000e+00> : vector<8x64xf32>
    %246 = tpu.matmul %240, %245, %cst_110 {dimension_numbers = #tpu.dot_dimension_numbers<[1], [0], [0], [1], [0, 0, 1, 1], [], []>} : vector<8x32xf32>, vector<32x64xf32>, vector<8x64xf32> -> vector<8x64xf32>
    %c0_111 = arith.constant 0 : index
    %c0_112 = arith.constant 0 : index
    %247 = vector.load %arg11[%c0_111, %c0_112] : memref<1x64xf32, #tpu.memory_space<vmem>>, vector<1x64xf32>
    %248 = vector.broadcast %247 : vector<1x64xf32> to vector<8x64xf32>
    %249 = arith.addf %246, %248 : vector<8x64xf32>
    %cst_113 = arith.constant dense<0xFF800000> : vector<8xf32>
    %250 = vector.multi_reduction <maximumf>, %249, %cst_113 [1] : vector<8x64xf32> to vector<8xf32>
    %251 = vector.shape_cast %250 : vector<8xf32> to vector<8x1xf32>
    %252 = vector.broadcast %251 : vector<8x1xf32> to vector<8x64xf32>
    %253 = arith.subf %249, %252 : vector<8x64xf32>
    %254 = math.exp %253 : vector<8x64xf32>
    %cst_114 = arith.constant dense<0.000000e+00> : vector<8xf32>
    %255 = vector.multi_reduction <add>, %254, %cst_114 [1] : vector<8x64xf32> to vector<8xf32>
    %256 = vector.shape_cast %255 : vector<8xf32> to vector<8x1xf32>
    %257 = math.log %256 : vector<8x1xf32>
    %258 = arith.addf %257, %251 : vector<8x1xf32>
    %259 = vector.broadcast %258 : vector<8x1xf32> to vector<8x64xf32>
    %260 = arith.subf %249, %259 : vector<8x64xf32>
    %261 = arith.index_cast %c2_i32 : i32 to index
    %c0_115 = arith.constant 0 : index
    %c0_116 = arith.constant 0 : index
    %262 = vector.load %arg12[%261, %c0_115, %c0_116] : memref<8x8x64xf32, #tpu.memory_space<vmem>>, vector<1x8x64xf32>
    %263 = vector.shape_cast %262 : vector<1x8x64xf32> to vector<8x64xf32>
    %264 = vector.shape_cast %260 : vector<8x64xf32> to vector<1x8x64xf32>
    tpu.vector_store %arg12[%261, %c0_115, %c0_116], %264 {strides = array<i32>} : memref<8x8x64xf32, #tpu.memory_space<vmem>>, vector<1x8x64xf32>,
    %c3_i32 = arith.constant 3 : i32
    %265 = arith.index_cast %c3_i32 : i32 to index
    %c0_117 = arith.constant 0 : index
    %c0_118 = arith.constant 0 : index
    %266 = vector.load %arg1[%265, %c0_117, %c0_118] : memref<8x8x32xf32, #tpu.memory_space<vmem>>, vector<1x8x32xf32>
    %267 = vector.shape_cast %266 : vector<1x8x32xf32> to vector<8x32xf32>
    %268 = tpu.concatenate %267, %240 in 1 : vector<8x32xf32>, vector<8x32xf32> -> vector<8x64xf32>
    %c0_119 = arith.constant 0 : index
    %c0_120 = arith.constant 0 : index
    %269 = vector.load %arg4[%c0_119, %c0_120] : memref<64x128xf32, #tpu.memory_space<vmem>>, vector<64x128xf32>
    %cst_121 = arith.constant dense<0.000000e+00> : vector<8x128xf32>
    %270 = tpu.matmul %268, %269, %cst_121 {dimension_numbers = #tpu.dot_dimension_numbers<[1], [0], [0], [1], [0, 0, 1, 1], [], []>} : vector<8x64xf32>, vector<64x128xf32>, vector<8x128xf32> -> vector<8x128xf32>
    %c0_122 = arith.constant 0 : index
    %c0_123 = arith.constant 0 : index
    %271 = vector.load %arg5[%c0_122, %c0_123] : memref<1x128xf32, #tpu.memory_space<vmem>>, vector<1x128xf32>
    %272 = vector.broadcast %271 : vector<1x128xf32> to vector<8x128xf32>
    %273 = arith.addf %270, %272 : vector<8x128xf32>
    %cst_124 = arith.constant dense<0xFF800000> : vector<8xf32>
    %274 = vector.multi_reduction <maximumf>, %273, %cst_124 [1] : vector<8x128xf32> to vector<8xf32>
    %275 = vector.shape_cast %274 : vector<8xf32> to vector<8x1xf32>
    %276 = vector.broadcast %275 : vector<8x1xf32> to vector<8x128xf32>
    %277 = arith.subf %273, %276 : vector<8x128xf32>
    %278 = math.exp %277 : vector<8x128xf32>
    %cst_125 = arith.constant dense<0.000000e+00> : vector<8xf32>
    %279 = vector.multi_reduction <add>, %278, %cst_125 [1] : vector<8x128xf32> to vector<8xf32>
    %280 = vector.shape_cast %279 : vector<8xf32> to vector<8x1xf32>
    %281 = vector.broadcast %280 : vector<8x1xf32> to vector<8x128xf32>
    %282 = arith.divf %278, %281 : vector<8x128xf32>
    %283 = arith.index_cast %c3_i32 : i32 to index
    %c0_126 = arith.constant 0 : index
    %c0_127 = arith.constant 0 : index
    %284 = vector.load %arg14[%283, %c0_126, %c0_127] : memref<8x8x128xf32, #tpu.memory_space<vmem>>, vector<1x8x128xf32>
    %285 = vector.shape_cast %284 : vector<1x8x128xf32> to vector<8x128xf32>
    %286 = vector.shape_cast %282 : vector<8x128xf32> to vector<1x8x128xf32>
    tpu.vector_store %arg14[%283, %c0_126, %c0_127], %286 {strides = array<i32>} : memref<8x8x128xf32, #tpu.memory_space<vmem>>, vector<1x8x128xf32>,
    %c0_128 = arith.constant 0 : index
    %c0_129 = arith.constant 0 : index
    %287 = vector.load %arg3[%c0_128, %c0_129] : memref<128x32xf32, #tpu.memory_space<vmem>>, vector<128x32xf32>
    %cst_130 = arith.constant dense<0.000000e+00> : vector<8x32xf32>
    %288 = tpu.matmul %282, %287, %cst_130 {dimension_numbers = #tpu.dot_dimension_numbers<[1], [0], [0], [1], [0, 0, 1, 1], [], []>} : vector<8x128xf32>, vector<128x32xf32>, vector<8x32xf32> -> vector<8x32xf32>
    %289 = tpu.concatenate %267, %288 in 1 : vector<8x32xf32>, vector<8x32xf32> -> vector<8x64xf32>
    %c0_131 = arith.constant 0 : index
    %c0_132 = arith.constant 0 : index
    %290 = vector.load %arg6[%c0_131, %c0_132] : memref<64x32xf32, #tpu.memory_space<vmem>>, vector<64x32xf32>
    %cst_133 = arith.constant dense<0.000000e+00> : vector<8x32xf32>
    %291 = tpu.matmul %289, %290, %cst_133 {dimension_numbers = #tpu.dot_dimension_numbers<[1], [0], [0], [1], [0, 0, 1, 1], [], []>} : vector<8x64xf32>, vector<64x32xf32>, vector<8x32xf32> -> vector<8x32xf32>
    %c0_134 = arith.constant 0 : index
    %c0_135 = arith.constant 0 : index
    %292 = vector.load %arg7[%c0_134, %c0_135] : memref<1x32xf32, #tpu.memory_space<vmem>>, vector<1x32xf32>
    %293 = vector.broadcast %292 : vector<1x32xf32> to vector<8x32xf32>
    %294 = arith.addf %291, %293 : vector<8x32xf32>
    %cst_136 = arith.constant 0.000000e+00 : f32
    %295 = vector.broadcast %cst_136 : f32 to vector<8x32xf32>
    %296 = arith.maximumf %294, %295 : vector<8x32xf32>
    %297 = tpu.concatenate %296, %240 in 1 : vector<8x32xf32>, vector<8x32xf32> -> vector<8x64xf32>
    %c0_137 = arith.constant 0 : index
    %c0_138 = arith.constant 0 : index
    %298 = vector.load %arg8[%c0_137, %c0_138] : memref<64x192xf32, #tpu.memory_space<vmem>>, vector<64x192xf32>
    %cst_139 = arith.constant dense<0.000000e+00> : vector<8x192xf32>
    %299 = tpu.matmul %297, %298, %cst_139 {dimension_numbers = #tpu.dot_dimension_numbers<[1], [0], [0], [1], [0, 0, 1, 1], [], []>} : vector<8x64xf32>, vector<64x192xf32>, vector<8x192xf32> -> vector<8x192xf32>
    %c0_140 = arith.constant 0 : index
    %c0_141 = arith.constant 0 : index
    %300 = vector.load %arg9[%c0_140, %c0_141] : memref<1x192xf32, #tpu.memory_space<vmem>>, vector<1x192xf32>
    %301 = vector.broadcast %300 : vector<1x192xf32> to vector<8x192xf32>
    %302 = arith.addf %299, %301 : vector<8x192xf32>
    %303 = vector.extract_strided_slice %302 {offsets = [0, 0], sizes = [8, 32], strides = [1, 1]} : vector<8x192xf32> to vector<8x32xf32>
    %304 = vector.extract_strided_slice %302 {offsets = [0, 96], sizes = [8, 32], strides = [1, 1]} : vector<8x192xf32> to vector<8x32xf32>
    %305 = arith.addf %303, %304 : vector<8x32xf32>
    %306 = arith.negf %305 : vector<8x32xf32>
    %307 = math.exp %306 : vector<8x32xf32>
    %cst_142 = arith.constant 1.000000e+00 : f32
    %308 = vector.broadcast %cst_142 : f32 to vector<8x32xf32>
    %309 = arith.addf %308, %307 : vector<8x32xf32>
    %310 = arith.divf %308, %309 : vector<8x32xf32>
    %311 = vector.extract_strided_slice %302 {offsets = [0, 32], sizes = [8, 32], strides = [1, 1]} : vector<8x192xf32> to vector<8x32xf32>
    %312 = vector.extract_strided_slice %302 {offsets = [0, 128], sizes = [8, 32], strides = [1, 1]} : vector<8x192xf32> to vector<8x32xf32>
    %313 = arith.addf %311, %312 : vector<8x32xf32>
    %314 = arith.negf %313 : vector<8x32xf32>
    %315 = math.exp %314 : vector<8x32xf32>
    %cst_143 = arith.constant 1.000000e+00 : f32
    %316 = vector.broadcast %cst_143 : f32 to vector<8x32xf32>
    %317 = arith.addf %316, %315 : vector<8x32xf32>
    %318 = arith.divf %316, %317 : vector<8x32xf32>
    %319 = vector.extract_strided_slice %302 {offsets = [0, 64], sizes = [8, 32], strides = [1, 1]} : vector<8x192xf32> to vector<8x32xf32>
    %320 = vector.extract_strided_slice %302 {offsets = [0, 160], sizes = [8, 32], strides = [1, 1]} : vector<8x192xf32> to vector<8x32xf32>
    %321 = arith.mulf %310, %320 : vector<8x32xf32>
    %322 = arith.addf %319, %321 : vector<8x32xf32>
    %323 = math.tanh %322 : vector<8x32xf32>
    %cst_144 = arith.constant 1.000000e+00 : f32
    %324 = vector.broadcast %cst_144 : f32 to vector<8x32xf32>
    %325 = arith.subf %324, %318 : vector<8x32xf32>
    %326 = arith.mulf %325, %323 : vector<8x32xf32>
    %327 = arith.mulf %318, %240 : vector<8x32xf32>
    %328 = arith.addf %326, %327 : vector<8x32xf32>
    %329 = arith.index_cast %c3_i32 : i32 to index
    %c0_145 = arith.constant 0 : index
    %c0_146 = arith.constant 0 : index
    %330 = vector.load %arg13[%329, %c0_145, %c0_146] : memref<8x8x32xf32, #tpu.memory_space<vmem>>, vector<1x8x32xf32>
    %331 = vector.shape_cast %330 : vector<1x8x32xf32> to vector<8x32xf32>
    %332 = vector.shape_cast %328 : vector<8x32xf32> to vector<1x8x32xf32>
    tpu.vector_store %arg13[%329, %c0_145, %c0_146], %332 {strides = array<i32>} : memref<8x8x32xf32, #tpu.memory_space<vmem>>, vector<1x8x32xf32>,
    %c0_147 = arith.constant 0 : index
    %c0_148 = arith.constant 0 : index
    %333 = vector.load %arg10[%c0_147, %c0_148] : memref<32x64xf32, #tpu.memory_space<vmem>>, vector<32x64xf32>
    %cst_149 = arith.constant dense<0.000000e+00> : vector<8x64xf32>
    %334 = tpu.matmul %328, %333, %cst_149 {dimension_numbers = #tpu.dot_dimension_numbers<[1], [0], [0], [1], [0, 0, 1, 1], [], []>} : vector<8x32xf32>, vector<32x64xf32>, vector<8x64xf32> -> vector<8x64xf32>
    %c0_150 = arith.constant 0 : index
    %c0_151 = arith.constant 0 : index
    %335 = vector.load %arg11[%c0_150, %c0_151] : memref<1x64xf32, #tpu.memory_space<vmem>>, vector<1x64xf32>
    %336 = vector.broadcast %335 : vector<1x64xf32> to vector<8x64xf32>
    %337 = arith.addf %334, %336 : vector<8x64xf32>
    %cst_152 = arith.constant dense<0xFF800000> : vector<8xf32>
    %338 = vector.multi_reduction <maximumf>, %337, %cst_152 [1] : vector<8x64xf32> to vector<8xf32>
    %339 = vector.shape_cast %338 : vector<8xf32> to vector<8x1xf32>
    %340 = vector.broadcast %339 : vector<8x1xf32> to vector<8x64xf32>
    %341 = arith.subf %337, %340 : vector<8x64xf32>
    %342 = math.exp %341 : vector<8x64xf32>
    %cst_153 = arith.constant dense<0.000000e+00> : vector<8xf32>
    %343 = vector.multi_reduction <add>, %342, %cst_153 [1] : vector<8x64xf32> to vector<8xf32>
    %344 = vector.shape_cast %343 : vector<8xf32> to vector<8x1xf32>
    %345 = math.log %344 : vector<8x1xf32>
    %346 = arith.addf %345, %339 : vector<8x1xf32>
    %347 = vector.broadcast %346 : vector<8x1xf32> to vector<8x64xf32>
    %348 = arith.subf %337, %347 : vector<8x64xf32>
    %349 = arith.index_cast %c3_i32 : i32 to index
    %c0_154 = arith.constant 0 : index
    %c0_155 = arith.constant 0 : index
    %350 = vector.load %arg12[%349, %c0_154, %c0_155] : memref<8x8x64xf32, #tpu.memory_space<vmem>>, vector<1x8x64xf32>
    %351 = vector.shape_cast %350 : vector<1x8x64xf32> to vector<8x64xf32>
    %352 = vector.shape_cast %348 : vector<8x64xf32> to vector<1x8x64xf32>
    tpu.vector_store %arg12[%349, %c0_154, %c0_155], %352 {strides = array<i32>} : memref<8x8x64xf32, #tpu.memory_space<vmem>>, vector<1x8x64xf32>,
    %c4_i32 = arith.constant 4 : i32
    %353 = arith.index_cast %c4_i32 : i32 to index
    %c0_156 = arith.constant 0 : index
    %c0_157 = arith.constant 0 : index
    %354 = vector.load %arg1[%353, %c0_156, %c0_157] : memref<8x8x32xf32, #tpu.memory_space<vmem>>, vector<1x8x32xf32>
    %355 = vector.shape_cast %354 : vector<1x8x32xf32> to vector<8x32xf32>
    %356 = tpu.concatenate %355, %328 in 1 : vector<8x32xf32>, vector<8x32xf32> -> vector<8x64xf32>
    %c0_158 = arith.constant 0 : index
    %c0_159 = arith.constant 0 : index
    %357 = vector.load %arg4[%c0_158, %c0_159] : memref<64x128xf32, #tpu.memory_space<vmem>>, vector<64x128xf32>
    %cst_160 = arith.constant dense<0.000000e+00> : vector<8x128xf32>
    %358 = tpu.matmul %356, %357, %cst_160 {dimension_numbers = #tpu.dot_dimension_numbers<[1], [0], [0], [1], [0, 0, 1, 1], [], []>} : vector<8x64xf32>, vector<64x128xf32>, vector<8x128xf32> -> vector<8x128xf32>
    %c0_161 = arith.constant 0 : index
    %c0_162 = arith.constant 0 : index
    %359 = vector.load %arg5[%c0_161, %c0_162] : memref<1x128xf32, #tpu.memory_space<vmem>>, vector<1x128xf32>
    %360 = vector.broadcast %359 : vector<1x128xf32> to vector<8x128xf32>
    %361 = arith.addf %358, %360 : vector<8x128xf32>
    %cst_163 = arith.constant dense<0xFF800000> : vector<8xf32>
    %362 = vector.multi_reduction <maximumf>, %361, %cst_163 [1] : vector<8x128xf32> to vector<8xf32>
    %363 = vector.shape_cast %362 : vector<8xf32> to vector<8x1xf32>
    %364 = vector.broadcast %363 : vector<8x1xf32> to vector<8x128xf32>
    %365 = arith.subf %361, %364 : vector<8x128xf32>
    %366 = math.exp %365 : vector<8x128xf32>
    %cst_164 = arith.constant dense<0.000000e+00> : vector<8xf32>
    %367 = vector.multi_reduction <add>, %366, %cst_164 [1] : vector<8x128xf32> to vector<8xf32>
    %368 = vector.shape_cast %367 : vector<8xf32> to vector<8x1xf32>
    %369 = vector.broadcast %368 : vector<8x1xf32> to vector<8x128xf32>
    %370 = arith.divf %366, %369 : vector<8x128xf32>
    %371 = arith.index_cast %c4_i32 : i32 to index
    %c0_165 = arith.constant 0 : index
    %c0_166 = arith.constant 0 : index
    %372 = vector.load %arg14[%371, %c0_165, %c0_166] : memref<8x8x128xf32, #tpu.memory_space<vmem>>, vector<1x8x128xf32>
    %373 = vector.shape_cast %372 : vector<1x8x128xf32> to vector<8x128xf32>
    %374 = vector.shape_cast %370 : vector<8x128xf32> to vector<1x8x128xf32>
    tpu.vector_store %arg14[%371, %c0_165, %c0_166], %374 {strides = array<i32>} : memref<8x8x128xf32, #tpu.memory_space<vmem>>, vector<1x8x128xf32>,
    %c0_167 = arith.constant 0 : index
    %c0_168 = arith.constant 0 : index
    %375 = vector.load %arg3[%c0_167, %c0_168] : memref<128x32xf32, #tpu.memory_space<vmem>>, vector<128x32xf32>
    %cst_169 = arith.constant dense<0.000000e+00> : vector<8x32xf32>
    %376 = tpu.matmul %370, %375, %cst_169 {dimension_numbers = #tpu.dot_dimension_numbers<[1], [0], [0], [1], [0, 0, 1, 1], [], []>} : vector<8x128xf32>, vector<128x32xf32>, vector<8x32xf32> -> vector<8x32xf32>
    %377 = tpu.concatenate %355, %376 in 1 : vector<8x32xf32>, vector<8x32xf32> -> vector<8x64xf32>
    %c0_170 = arith.constant 0 : index
    %c0_171 = arith.constant 0 : index
    %378 = vector.load %arg6[%c0_170, %c0_171] : memref<64x32xf32, #tpu.memory_space<vmem>>, vector<64x32xf32>
    %cst_172 = arith.constant dense<0.000000e+00> : vector<8x32xf32>
    %379 = tpu.matmul %377, %378, %cst_172 {dimension_numbers = #tpu.dot_dimension_numbers<[1], [0], [0], [1], [0, 0, 1, 1], [], []>} : vector<8x64xf32>, vector<64x32xf32>, vector<8x32xf32> -> vector<8x32xf32>
    %c0_173 = arith.constant 0 : index
    %c0_174 = arith.constant 0 : index
    %380 = vector.load %arg7[%c0_173, %c0_174] : memref<1x32xf32, #tpu.memory_space<vmem>>, vector<1x32xf32>
    %381 = vector.broadcast %380 : vector<1x32xf32> to vector<8x32xf32>
    %382 = arith.addf %379, %381 : vector<8x32xf32>
    %cst_175 = arith.constant 0.000000e+00 : f32
    %383 = vector.broadcast %cst_175 : f32 to vector<8x32xf32>
    %384 = arith.maximumf %382, %383 : vector<8x32xf32>
    %385 = tpu.concatenate %384, %328 in 1 : vector<8x32xf32>, vector<8x32xf32> -> vector<8x64xf32>
    %c0_176 = arith.constant 0 : index
    %c0_177 = arith.constant 0 : index
    %386 = vector.load %arg8[%c0_176, %c0_177] : memref<64x192xf32, #tpu.memory_space<vmem>>, vector<64x192xf32>
    %cst_178 = arith.constant dense<0.000000e+00> : vector<8x192xf32>
    %387 = tpu.matmul %385, %386, %cst_178 {dimension_numbers = #tpu.dot_dimension_numbers<[1], [0], [0], [1], [0, 0, 1, 1], [], []>} : vector<8x64xf32>, vector<64x192xf32>, vector<8x192xf32> -> vector<8x192xf32>
    %c0_179 = arith.constant 0 : index
    %c0_180 = arith.constant 0 : index
    %388 = vector.load %arg9[%c0_179, %c0_180] : memref<1x192xf32, #tpu.memory_space<vmem>>, vector<1x192xf32>
    %389 = vector.broadcast %388 : vector<1x192xf32> to vector<8x192xf32>
    %390 = arith.addf %387, %389 : vector<8x192xf32>
    %391 = vector.extract_strided_slice %390 {offsets = [0, 0], sizes = [8, 32], strides = [1, 1]} : vector<8x192xf32> to vector<8x32xf32>
    %392 = vector.extract_strided_slice %390 {offsets = [0, 96], sizes = [8, 32], strides = [1, 1]} : vector<8x192xf32> to vector<8x32xf32>
    %393 = arith.addf %391, %392 : vector<8x32xf32>
    %394 = arith.negf %393 : vector<8x32xf32>
    %395 = math.exp %394 : vector<8x32xf32>
    %cst_181 = arith.constant 1.000000e+00 : f32
    %396 = vector.broadcast %cst_181 : f32 to vector<8x32xf32>
    %397 = arith.addf %396, %395 : vector<8x32xf32>
    %398 = arith.divf %396, %397 : vector<8x32xf32>
    %399 = vector.extract_strided_slice %390 {offsets = [0, 32], sizes = [8, 32], strides = [1, 1]} : vector<8x192xf32> to vector<8x32xf32>
    %400 = vector.extract_strided_slice %390 {offsets = [0, 128], sizes = [8, 32], strides = [1, 1]} : vector<8x192xf32> to vector<8x32xf32>
    %401 = arith.addf %399, %400 : vector<8x32xf32>
    %402 = arith.negf %401 : vector<8x32xf32>
    %403 = math.exp %402 : vector<8x32xf32>
    %cst_182 = arith.constant 1.000000e+00 : f32
    %404 = vector.broadcast %cst_182 : f32 to vector<8x32xf32>
    %405 = arith.addf %404, %403 : vector<8x32xf32>
    %406 = arith.divf %404, %405 : vector<8x32xf32>
    %407 = vector.extract_strided_slice %390 {offsets = [0, 64], sizes = [8, 32], strides = [1, 1]} : vector<8x192xf32> to vector<8x32xf32>
    %408 = vector.extract_strided_slice %390 {offsets = [0, 160], sizes = [8, 32], strides = [1, 1]} : vector<8x192xf32> to vector<8x32xf32>
    %409 = arith.mulf %398, %408 : vector<8x32xf32>
    %410 = arith.addf %407, %409 : vector<8x32xf32>
    %411 = math.tanh %410 : vector<8x32xf32>
    %cst_183 = arith.constant 1.000000e+00 : f32
    %412 = vector.broadcast %cst_183 : f32 to vector<8x32xf32>
    %413 = arith.subf %412, %406 : vector<8x32xf32>
    %414 = arith.mulf %413, %411 : vector<8x32xf32>
    %415 = arith.mulf %406, %328 : vector<8x32xf32>
    %416 = arith.addf %414, %415 : vector<8x32xf32>
    %417 = arith.index_cast %c4_i32 : i32 to index
    %c0_184 = arith.constant 0 : index
    %c0_185 = arith.constant 0 : index
    %418 = vector.load %arg13[%417, %c0_184, %c0_185] : memref<8x8x32xf32, #tpu.memory_space<vmem>>, vector<1x8x32xf32>
    %419 = vector.shape_cast %418 : vector<1x8x32xf32> to vector<8x32xf32>
    %420 = vector.shape_cast %416 : vector<8x32xf32> to vector<1x8x32xf32>
    tpu.vector_store %arg13[%417, %c0_184, %c0_185], %420 {strides = array<i32>} : memref<8x8x32xf32, #tpu.memory_space<vmem>>, vector<1x8x32xf32>,
    %c0_186 = arith.constant 0 : index
    %c0_187 = arith.constant 0 : index
    %421 = vector.load %arg10[%c0_186, %c0_187] : memref<32x64xf32, #tpu.memory_space<vmem>>, vector<32x64xf32>
    %cst_188 = arith.constant dense<0.000000e+00> : vector<8x64xf32>
    %422 = tpu.matmul %416, %421, %cst_188 {dimension_numbers = #tpu.dot_dimension_numbers<[1], [0], [0], [1], [0, 0, 1, 1], [], []>} : vector<8x32xf32>, vector<32x64xf32>, vector<8x64xf32> -> vector<8x64xf32>
    %c0_189 = arith.constant 0 : index
    %c0_190 = arith.constant 0 : index
    %423 = vector.load %arg11[%c0_189, %c0_190] : memref<1x64xf32, #tpu.memory_space<vmem>>, vector<1x64xf32>
    %424 = vector.broadcast %423 : vector<1x64xf32> to vector<8x64xf32>
    %425 = arith.addf %422, %424 : vector<8x64xf32>
    %cst_191 = arith.constant dense<0xFF800000> : vector<8xf32>
    %426 = vector.multi_reduction <maximumf>, %425, %cst_191 [1] : vector<8x64xf32> to vector<8xf32>
    %427 = vector.shape_cast %426 : vector<8xf32> to vector<8x1xf32>
    %428 = vector.broadcast %427 : vector<8x1xf32> to vector<8x64xf32>
    %429 = arith.subf %425, %428 : vector<8x64xf32>
    %430 = math.exp %429 : vector<8x64xf32>
    %cst_192 = arith.constant dense<0.000000e+00> : vector<8xf32>
    %431 = vector.multi_reduction <add>, %430, %cst_192 [1] : vector<8x64xf32> to vector<8xf32>
    %432 = vector.shape_cast %431 : vector<8xf32> to vector<8x1xf32>
    %433 = math.log %432 : vector<8x1xf32>
    %434 = arith.addf %433, %427 : vector<8x1xf32>
    %435 = vector.broadcast %434 : vector<8x1xf32> to vector<8x64xf32>
    %436 = arith.subf %425, %435 : vector<8x64xf32>
    %437 = arith.index_cast %c4_i32 : i32 to index
    %c0_193 = arith.constant 0 : index
    %c0_194 = arith.constant 0 : index
    %438 = vector.load %arg12[%437, %c0_193, %c0_194] : memref<8x8x64xf32, #tpu.memory_space<vmem>>, vector<1x8x64xf32>
    %439 = vector.shape_cast %438 : vector<1x8x64xf32> to vector<8x64xf32>
    %440 = vector.shape_cast %436 : vector<8x64xf32> to vector<1x8x64xf32>
    tpu.vector_store %arg12[%437, %c0_193, %c0_194], %440 {strides = array<i32>} : memref<8x8x64xf32, #tpu.memory_space<vmem>>, vector<1x8x64xf32>,
    %c5_i32 = arith.constant 5 : i32
    %441 = arith.index_cast %c5_i32 : i32 to index
    %c0_195 = arith.constant 0 : index
    %c0_196 = arith.constant 0 : index
    %442 = vector.load %arg1[%441, %c0_195, %c0_196] : memref<8x8x32xf32, #tpu.memory_space<vmem>>, vector<1x8x32xf32>
    %443 = vector.shape_cast %442 : vector<1x8x32xf32> to vector<8x32xf32>
    %444 = tpu.concatenate %443, %416 in 1 : vector<8x32xf32>, vector<8x32xf32> -> vector<8x64xf32>
    %c0_197 = arith.constant 0 : index
    %c0_198 = arith.constant 0 : index
    %445 = vector.load %arg4[%c0_197, %c0_198] : memref<64x128xf32, #tpu.memory_space<vmem>>, vector<64x128xf32>
    %cst_199 = arith.constant dense<0.000000e+00> : vector<8x128xf32>
    %446 = tpu.matmul %444, %445, %cst_199 {dimension_numbers = #tpu.dot_dimension_numbers<[1], [0], [0], [1], [0, 0, 1, 1], [], []>} : vector<8x64xf32>, vector<64x128xf32>, vector<8x128xf32> -> vector<8x128xf32>
    %c0_200 = arith.constant 0 : index
    %c0_201 = arith.constant 0 : index
    %447 = vector.load %arg5[%c0_200, %c0_201] : memref<1x128xf32, #tpu.memory_space<vmem>>, vector<1x128xf32>
    %448 = vector.broadcast %447 : vector<1x128xf32> to vector<8x128xf32>
    %449 = arith.addf %446, %448 : vector<8x128xf32>
    %cst_202 = arith.constant dense<0xFF800000> : vector<8xf32>
    %450 = vector.multi_reduction <maximumf>, %449, %cst_202 [1] : vector<8x128xf32> to vector<8xf32>
    %451 = vector.shape_cast %450 : vector<8xf32> to vector<8x1xf32>
    %452 = vector.broadcast %451 : vector<8x1xf32> to vector<8x128xf32>
    %453 = arith.subf %449, %452 : vector<8x128xf32>
    %454 = math.exp %453 : vector<8x128xf32>
    %cst_203 = arith.constant dense<0.000000e+00> : vector<8xf32>
    %455 = vector.multi_reduction <add>, %454, %cst_203 [1] : vector<8x128xf32> to vector<8xf32>
    %456 = vector.shape_cast %455 : vector<8xf32> to vector<8x1xf32>
    %457 = vector.broadcast %456 : vector<8x1xf32> to vector<8x128xf32>
    %458 = arith.divf %454, %457 : vector<8x128xf32>
    %459 = arith.index_cast %c5_i32 : i32 to index
    %c0_204 = arith.constant 0 : index
    %c0_205 = arith.constant 0 : index
    %460 = vector.load %arg14[%459, %c0_204, %c0_205] : memref<8x8x128xf32, #tpu.memory_space<vmem>>, vector<1x8x128xf32>
    %461 = vector.shape_cast %460 : vector<1x8x128xf32> to vector<8x128xf32>
    %462 = vector.shape_cast %458 : vector<8x128xf32> to vector<1x8x128xf32>
    tpu.vector_store %arg14[%459, %c0_204, %c0_205], %462 {strides = array<i32>} : memref<8x8x128xf32, #tpu.memory_space<vmem>>, vector<1x8x128xf32>,
    %c0_206 = arith.constant 0 : index
    %c0_207 = arith.constant 0 : index
    %463 = vector.load %arg3[%c0_206, %c0_207] : memref<128x32xf32, #tpu.memory_space<vmem>>, vector<128x32xf32>
    %cst_208 = arith.constant dense<0.000000e+00> : vector<8x32xf32>
    %464 = tpu.matmul %458, %463, %cst_208 {dimension_numbers = #tpu.dot_dimension_numbers<[1], [0], [0], [1], [0, 0, 1, 1], [], []>} : vector<8x128xf32>, vector<128x32xf32>, vector<8x32xf32> -> vector<8x32xf32>
    %465 = tpu.concatenate %443, %464 in 1 : vector<8x32xf32>, vector<8x32xf32> -> vector<8x64xf32>
    %c0_209 = arith.constant 0 : index
    %c0_210 = arith.constant 0 : index
    %466 = vector.load %arg6[%c0_209, %c0_210] : memref<64x32xf32, #tpu.memory_space<vmem>>, vector<64x32xf32>
    %cst_211 = arith.constant dense<0.000000e+00> : vector<8x32xf32>
    %467 = tpu.matmul %465, %466, %cst_211 {dimension_numbers = #tpu.dot_dimension_numbers<[1], [0], [0], [1], [0, 0, 1, 1], [], []>} : vector<8x64xf32>, vector<64x32xf32>, vector<8x32xf32> -> vector<8x32xf32>
    %c0_212 = arith.constant 0 : index
    %c0_213 = arith.constant 0 : index
    %468 = vector.load %arg7[%c0_212, %c0_213] : memref<1x32xf32, #tpu.memory_space<vmem>>, vector<1x32xf32>
    %469 = vector.broadcast %468 : vector<1x32xf32> to vector<8x32xf32>
    %470 = arith.addf %467, %469 : vector<8x32xf32>
    %cst_214 = arith.constant 0.000000e+00 : f32
    %471 = vector.broadcast %cst_214 : f32 to vector<8x32xf32>
    %472 = arith.maximumf %470, %471 : vector<8x32xf32>
    %473 = tpu.concatenate %472, %416 in 1 : vector<8x32xf32>, vector<8x32xf32> -> vector<8x64xf32>
    %c0_215 = arith.constant 0 : index
    %c0_216 = arith.constant 0 : index
    %474 = vector.load %arg8[%c0_215, %c0_216] : memref<64x192xf32, #tpu.memory_space<vmem>>, vector<64x192xf32>
    %cst_217 = arith.constant dense<0.000000e+00> : vector<8x192xf32>
    %475 = tpu.matmul %473, %474, %cst_217 {dimension_numbers = #tpu.dot_dimension_numbers<[1], [0], [0], [1], [0, 0, 1, 1], [], []>} : vector<8x64xf32>, vector<64x192xf32>, vector<8x192xf32> -> vector<8x192xf32>
    %c0_218 = arith.constant 0 : index
    %c0_219 = arith.constant 0 : index
    %476 = vector.load %arg9[%c0_218, %c0_219] : memref<1x192xf32, #tpu.memory_space<vmem>>, vector<1x192xf32>
    %477 = vector.broadcast %476 : vector<1x192xf32> to vector<8x192xf32>
    %478 = arith.addf %475, %477 : vector<8x192xf32>
    %479 = vector.extract_strided_slice %478 {offsets = [0, 0], sizes = [8, 32], strides = [1, 1]} : vector<8x192xf32> to vector<8x32xf32>
    %480 = vector.extract_strided_slice %478 {offsets = [0, 96], sizes = [8, 32], strides = [1, 1]} : vector<8x192xf32> to vector<8x32xf32>
    %481 = arith.addf %479, %480 : vector<8x32xf32>
    %482 = arith.negf %481 : vector<8x32xf32>
    %483 = math.exp %482 : vector<8x32xf32>
    %cst_220 = arith.constant 1.000000e+00 : f32
    %484 = vector.broadcast %cst_220 : f32 to vector<8x32xf32>
    %485 = arith.addf %484, %483 : vector<8x32xf32>
    %486 = arith.divf %484, %485 : vector<8x32xf32>
    %487 = vector.extract_strided_slice %478 {offsets = [0, 32], sizes = [8, 32], strides = [1, 1]} : vector<8x192xf32> to vector<8x32xf32>
    %488 = vector.extract_strided_slice %478 {offsets = [0, 128], sizes = [8, 32], strides = [1, 1]} : vector<8x192xf32> to vector<8x32xf32>
    %489 = arith.addf %487, %488 : vector<8x32xf32>
    %490 = arith.negf %489 : vector<8x32xf32>
    %491 = math.exp %490 : vector<8x32xf32>
    %cst_221 = arith.constant 1.000000e+00 : f32
    %492 = vector.broadcast %cst_221 : f32 to vector<8x32xf32>
    %493 = arith.addf %492, %491 : vector<8x32xf32>
    %494 = arith.divf %492, %493 : vector<8x32xf32>
    %495 = vector.extract_strided_slice %478 {offsets = [0, 64], sizes = [8, 32], strides = [1, 1]} : vector<8x192xf32> to vector<8x32xf32>
    %496 = vector.extract_strided_slice %478 {offsets = [0, 160], sizes = [8, 32], strides = [1, 1]} : vector<8x192xf32> to vector<8x32xf32>
    %497 = arith.mulf %486, %496 : vector<8x32xf32>
    %498 = arith.addf %495, %497 : vector<8x32xf32>
    %499 = math.tanh %498 : vector<8x32xf32>
    %cst_222 = arith.constant 1.000000e+00 : f32
    %500 = vector.broadcast %cst_222 : f32 to vector<8x32xf32>
    %501 = arith.subf %500, %494 : vector<8x32xf32>
    %502 = arith.mulf %501, %499 : vector<8x32xf32>
    %503 = arith.mulf %494, %416 : vector<8x32xf32>
    %504 = arith.addf %502, %503 : vector<8x32xf32>
    %505 = arith.index_cast %c5_i32 : i32 to index
    %c0_223 = arith.constant 0 : index
    %c0_224 = arith.constant 0 : index
    %506 = vector.load %arg13[%505, %c0_223, %c0_224] : memref<8x8x32xf32, #tpu.memory_space<vmem>>, vector<1x8x32xf32>
    %507 = vector.shape_cast %506 : vector<1x8x32xf32> to vector<8x32xf32>
    %508 = vector.shape_cast %504 : vector<8x32xf32> to vector<1x8x32xf32>
    tpu.vector_store %arg13[%505, %c0_223, %c0_224], %508 {strides = array<i32>} : memref<8x8x32xf32, #tpu.memory_space<vmem>>, vector<1x8x32xf32>,
    %c0_225 = arith.constant 0 : index
    %c0_226 = arith.constant 0 : index
    %509 = vector.load %arg10[%c0_225, %c0_226] : memref<32x64xf32, #tpu.memory_space<vmem>>, vector<32x64xf32>
    %cst_227 = arith.constant dense<0.000000e+00> : vector<8x64xf32>
    %510 = tpu.matmul %504, %509, %cst_227 {dimension_numbers = #tpu.dot_dimension_numbers<[1], [0], [0], [1], [0, 0, 1, 1], [], []>} : vector<8x32xf32>, vector<32x64xf32>, vector<8x64xf32> -> vector<8x64xf32>
    %c0_228 = arith.constant 0 : index
    %c0_229 = arith.constant 0 : index
    %511 = vector.load %arg11[%c0_228, %c0_229] : memref<1x64xf32, #tpu.memory_space<vmem>>, vector<1x64xf32>
    %512 = vector.broadcast %511 : vector<1x64xf32> to vector<8x64xf32>
    %513 = arith.addf %510, %512 : vector<8x64xf32>
    %cst_230 = arith.constant dense<0xFF800000> : vector<8xf32>
    %514 = vector.multi_reduction <maximumf>, %513, %cst_230 [1] : vector<8x64xf32> to vector<8xf32>
    %515 = vector.shape_cast %514 : vector<8xf32> to vector<8x1xf32>
    %516 = vector.broadcast %515 : vector<8x1xf32> to vector<8x64xf32>
    %517 = arith.subf %513, %516 : vector<8x64xf32>
    %518 = math.exp %517 : vector<8x64xf32>
    %cst_231 = arith.constant dense<0.000000e+00> : vector<8xf32>
    %519 = vector.multi_reduction <add>, %518, %cst_231 [1] : vector<8x64xf32> to vector<8xf32>
    %520 = vector.shape_cast %519 : vector<8xf32> to vector<8x1xf32>
    %521 = math.log %520 : vector<8x1xf32>
    %522 = arith.addf %521, %515 : vector<8x1xf32>
    %523 = vector.broadcast %522 : vector<8x1xf32> to vector<8x64xf32>
    %524 = arith.subf %513, %523 : vector<8x64xf32>
    %525 = arith.index_cast %c5_i32 : i32 to index
    %c0_232 = arith.constant 0 : index
    %c0_233 = arith.constant 0 : index
    %526 = vector.load %arg12[%525, %c0_232, %c0_233] : memref<8x8x64xf32, #tpu.memory_space<vmem>>, vector<1x8x64xf32>
    %527 = vector.shape_cast %526 : vector<1x8x64xf32> to vector<8x64xf32>
    %528 = vector.shape_cast %524 : vector<8x64xf32> to vector<1x8x64xf32>
    tpu.vector_store %arg12[%525, %c0_232, %c0_233], %528 {strides = array<i32>} : memref<8x8x64xf32, #tpu.memory_space<vmem>>, vector<1x8x64xf32>,
    %c6_i32 = arith.constant 6 : i32
    %529 = arith.index_cast %c6_i32 : i32 to index
    %c0_234 = arith.constant 0 : index
    %c0_235 = arith.constant 0 : index
    %530 = vector.load %arg1[%529, %c0_234, %c0_235] : memref<8x8x32xf32, #tpu.memory_space<vmem>>, vector<1x8x32xf32>
    %531 = vector.shape_cast %530 : vector<1x8x32xf32> to vector<8x32xf32>
    %532 = tpu.concatenate %531, %504 in 1 : vector<8x32xf32>, vector<8x32xf32> -> vector<8x64xf32>
    %c0_236 = arith.constant 0 : index
    %c0_237 = arith.constant 0 : index
    %533 = vector.load %arg4[%c0_236, %c0_237] : memref<64x128xf32, #tpu.memory_space<vmem>>, vector<64x128xf32>
    %cst_238 = arith.constant dense<0.000000e+00> : vector<8x128xf32>
    %534 = tpu.matmul %532, %533, %cst_238 {dimension_numbers = #tpu.dot_dimension_numbers<[1], [0], [0], [1], [0, 0, 1, 1], [], []>} : vector<8x64xf32>, vector<64x128xf32>, vector<8x128xf32> -> vector<8x128xf32>
    %c0_239 = arith.constant 0 : index
    %c0_240 = arith.constant 0 : index
    %535 = vector.load %arg5[%c0_239, %c0_240] : memref<1x128xf32, #tpu.memory_space<vmem>>, vector<1x128xf32>
    %536 = vector.broadcast %535 : vector<1x128xf32> to vector<8x128xf32>
    %537 = arith.addf %534, %536 : vector<8x128xf32>
    %cst_241 = arith.constant dense<0xFF800000> : vector<8xf32>
    %538 = vector.multi_reduction <maximumf>, %537, %cst_241 [1] : vector<8x128xf32> to vector<8xf32>
    %539 = vector.shape_cast %538 : vector<8xf32> to vector<8x1xf32>
    %540 = vector.broadcast %539 : vector<8x1xf32> to vector<8x128xf32>
    %541 = arith.subf %537, %540 : vector<8x128xf32>
    %542 = math.exp %541 : vector<8x128xf32>
    %cst_242 = arith.constant dense<0.000000e+00> : vector<8xf32>
    %543 = vector.multi_reduction <add>, %542, %cst_242 [1] : vector<8x128xf32> to vector<8xf32>
    %544 = vector.shape_cast %543 : vector<8xf32> to vector<8x1xf32>
    %545 = vector.broadcast %544 : vector<8x1xf32> to vector<8x128xf32>
    %546 = arith.divf %542, %545 : vector<8x128xf32>
    %547 = arith.index_cast %c6_i32 : i32 to index
    %c0_243 = arith.constant 0 : index
    %c0_244 = arith.constant 0 : index
    %548 = vector.load %arg14[%547, %c0_243, %c0_244] : memref<8x8x128xf32, #tpu.memory_space<vmem>>, vector<1x8x128xf32>
    %549 = vector.shape_cast %548 : vector<1x8x128xf32> to vector<8x128xf32>
    %550 = vector.shape_cast %546 : vector<8x128xf32> to vector<1x8x128xf32>
    tpu.vector_store %arg14[%547, %c0_243, %c0_244], %550 {strides = array<i32>} : memref<8x8x128xf32, #tpu.memory_space<vmem>>, vector<1x8x128xf32>,
    %c0_245 = arith.constant 0 : index
    %c0_246 = arith.constant 0 : index
    %551 = vector.load %arg3[%c0_245, %c0_246] : memref<128x32xf32, #tpu.memory_space<vmem>>, vector<128x32xf32>
    %cst_247 = arith.constant dense<0.000000e+00> : vector<8x32xf32>
    %552 = tpu.matmul %546, %551, %cst_247 {dimension_numbers = #tpu.dot_dimension_numbers<[1], [0], [0], [1], [0, 0, 1, 1], [], []>} : vector<8x128xf32>, vector<128x32xf32>, vector<8x32xf32> -> vector<8x32xf32>
    %553 = tpu.concatenate %531, %552 in 1 : vector<8x32xf32>, vector<8x32xf32> -> vector<8x64xf32>
    %c0_248 = arith.constant 0 : index
    %c0_249 = arith.constant 0 : index
    %554 = vector.load %arg6[%c0_248, %c0_249] : memref<64x32xf32, #tpu.memory_space<vmem>>, vector<64x32xf32>
    %cst_250 = arith.constant dense<0.000000e+00> : vector<8x32xf32>
    %555 = tpu.matmul %553, %554, %cst_250 {dimension_numbers = #tpu.dot_dimension_numbers<[1], [0], [0], [1], [0, 0, 1, 1], [], []>} : vector<8x64xf32>, vector<64x32xf32>, vector<8x32xf32> -> vector<8x32xf32>
    %c0_251 = arith.constant 0 : index
    %c0_252 = arith.constant 0 : index
    %556 = vector.load %arg7[%c0_251, %c0_252] : memref<1x32xf32, #tpu.memory_space<vmem>>, vector<1x32xf32>
    %557 = vector.broadcast %556 : vector<1x32xf32> to vector<8x32xf32>
    %558 = arith.addf %555, %557 : vector<8x32xf32>
    %cst_253 = arith.constant 0.000000e+00 : f32
    %559 = vector.broadcast %cst_253 : f32 to vector<8x32xf32>
    %560 = arith.maximumf %558, %559 : vector<8x32xf32>
    %561 = tpu.concatenate %560, %504 in 1 : vector<8x32xf32>, vector<8x32xf32> -> vector<8x64xf32>
    %c0_254 = arith.constant 0 : index
    %c0_255 = arith.constant 0 : index
    %562 = vector.load %arg8[%c0_254, %c0_255] : memref<64x192xf32, #tpu.memory_space<vmem>>, vector<64x192xf32>
    %cst_256 = arith.constant dense<0.000000e+00> : vector<8x192xf32>
    %563 = tpu.matmul %561, %562, %cst_256 {dimension_numbers = #tpu.dot_dimension_numbers<[1], [0], [0], [1], [0, 0, 1, 1], [], []>} : vector<8x64xf32>, vector<64x192xf32>, vector<8x192xf32> -> vector<8x192xf32>
    %c0_257 = arith.constant 0 : index
    %c0_258 = arith.constant 0 : index
    %564 = vector.load %arg9[%c0_257, %c0_258] : memref<1x192xf32, #tpu.memory_space<vmem>>, vector<1x192xf32>
    %565 = vector.broadcast %564 : vector<1x192xf32> to vector<8x192xf32>
    %566 = arith.addf %563, %565 : vector<8x192xf32>
    %567 = vector.extract_strided_slice %566 {offsets = [0, 0], sizes = [8, 32], strides = [1, 1]} : vector<8x192xf32> to vector<8x32xf32>
    %568 = vector.extract_strided_slice %566 {offsets = [0, 96], sizes = [8, 32], strides = [1, 1]} : vector<8x192xf32> to vector<8x32xf32>
    %569 = arith.addf %567, %568 : vector<8x32xf32>
    %570 = arith.negf %569 : vector<8x32xf32>
    %571 = math.exp %570 : vector<8x32xf32>
    %cst_259 = arith.constant 1.000000e+00 : f32
    %572 = vector.broadcast %cst_259 : f32 to vector<8x32xf32>
    %573 = arith.addf %572, %571 : vector<8x32xf32>
    %574 = arith.divf %572, %573 : vector<8x32xf32>
    %575 = vector.extract_strided_slice %566 {offsets = [0, 32], sizes = [8, 32], strides = [1, 1]} : vector<8x192xf32> to vector<8x32xf32>
    %576 = vector.extract_strided_slice %566 {offsets = [0, 128], sizes = [8, 32], strides = [1, 1]} : vector<8x192xf32> to vector<8x32xf32>
    %577 = arith.addf %575, %576 : vector<8x32xf32>
    %578 = arith.negf %577 : vector<8x32xf32>
    %579 = math.exp %578 : vector<8x32xf32>
    %cst_260 = arith.constant 1.000000e+00 : f32
    %580 = vector.broadcast %cst_260 : f32 to vector<8x32xf32>
    %581 = arith.addf %580, %579 : vector<8x32xf32>
    %582 = arith.divf %580, %581 : vector<8x32xf32>
    %583 = vector.extract_strided_slice %566 {offsets = [0, 64], sizes = [8, 32], strides = [1, 1]} : vector<8x192xf32> to vector<8x32xf32>
    %584 = vector.extract_strided_slice %566 {offsets = [0, 160], sizes = [8, 32], strides = [1, 1]} : vector<8x192xf32> to vector<8x32xf32>
    %585 = arith.mulf %574, %584 : vector<8x32xf32>
    %586 = arith.addf %583, %585 : vector<8x32xf32>
    %587 = math.tanh %586 : vector<8x32xf32>
    %cst_261 = arith.constant 1.000000e+00 : f32
    %588 = vector.broadcast %cst_261 : f32 to vector<8x32xf32>
    %589 = arith.subf %588, %582 : vector<8x32xf32>
    %590 = arith.mulf %589, %587 : vector<8x32xf32>
    %591 = arith.mulf %582, %504 : vector<8x32xf32>
    %592 = arith.addf %590, %591 : vector<8x32xf32>
    %593 = arith.index_cast %c6_i32 : i32 to index
    %c0_262 = arith.constant 0 : index
    %c0_263 = arith.constant 0 : index
    %594 = vector.load %arg13[%593, %c0_262, %c0_263] : memref<8x8x32xf32, #tpu.memory_space<vmem>>, vector<1x8x32xf32>
    %595 = vector.shape_cast %594 : vector<1x8x32xf32> to vector<8x32xf32>
    %596 = vector.shape_cast %592 : vector<8x32xf32> to vector<1x8x32xf32>
    tpu.vector_store %arg13[%593, %c0_262, %c0_263], %596 {strides = array<i32>} : memref<8x8x32xf32, #tpu.memory_space<vmem>>, vector<1x8x32xf32>,
    %c0_264 = arith.constant 0 : index
    %c0_265 = arith.constant 0 : index
    %597 = vector.load %arg10[%c0_264, %c0_265] : memref<32x64xf32, #tpu.memory_space<vmem>>, vector<32x64xf32>
    %cst_266 = arith.constant dense<0.000000e+00> : vector<8x64xf32>
    %598 = tpu.matmul %592, %597, %cst_266 {dimension_numbers = #tpu.dot_dimension_numbers<[1], [0], [0], [1], [0, 0, 1, 1], [], []>} : vector<8x32xf32>, vector<32x64xf32>, vector<8x64xf32> -> vector<8x64xf32>
    %c0_267 = arith.constant 0 : index
    %c0_268 = arith.constant 0 : index
    %599 = vector.load %arg11[%c0_267, %c0_268] : memref<1x64xf32, #tpu.memory_space<vmem>>, vector<1x64xf32>
    %600 = vector.broadcast %599 : vector<1x64xf32> to vector<8x64xf32>
    %601 = arith.addf %598, %600 : vector<8x64xf32>
    %cst_269 = arith.constant dense<0xFF800000> : vector<8xf32>
    %602 = vector.multi_reduction <maximumf>, %601, %cst_269 [1] : vector<8x64xf32> to vector<8xf32>
    %603 = vector.shape_cast %602 : vector<8xf32> to vector<8x1xf32>
    %604 = vector.broadcast %603 : vector<8x1xf32> to vector<8x64xf32>
    %605 = arith.subf %601, %604 : vector<8x64xf32>
    %606 = math.exp %605 : vector<8x64xf32>
    %cst_270 = arith.constant dense<0.000000e+00> : vector<8xf32>
    %607 = vector.multi_reduction <add>, %606, %cst_270 [1] : vector<8x64xf32> to vector<8xf32>
    %608 = vector.shape_cast %607 : vector<8xf32> to vector<8x1xf32>
    %609 = math.log %608 : vector<8x1xf32>
    %610 = arith.addf %609, %603 : vector<8x1xf32>
    %611 = vector.broadcast %610 : vector<8x1xf32> to vector<8x64xf32>
    %612 = arith.subf %601, %611 : vector<8x64xf32>
    %613 = arith.index_cast %c6_i32 : i32 to index
    %c0_271 = arith.constant 0 : index
    %c0_272 = arith.constant 0 : index
    %614 = vector.load %arg12[%613, %c0_271, %c0_272] : memref<8x8x64xf32, #tpu.memory_space<vmem>>, vector<1x8x64xf32>
    %615 = vector.shape_cast %614 : vector<1x8x64xf32> to vector<8x64xf32>
    %616 = vector.shape_cast %612 : vector<8x64xf32> to vector<1x8x64xf32>
    tpu.vector_store %arg12[%613, %c0_271, %c0_272], %616 {strides = array<i32>} : memref<8x8x64xf32, #tpu.memory_space<vmem>>, vector<1x8x64xf32>,
    %c7_i32 = arith.constant 7 : i32
    %617 = arith.index_cast %c7_i32 : i32 to index
    %c0_273 = arith.constant 0 : index
    %c0_274 = arith.constant 0 : index
    %618 = vector.load %arg1[%617, %c0_273, %c0_274] : memref<8x8x32xf32, #tpu.memory_space<vmem>>, vector<1x8x32xf32>
    %619 = vector.shape_cast %618 : vector<1x8x32xf32> to vector<8x32xf32>
    %620 = tpu.concatenate %619, %592 in 1 : vector<8x32xf32>, vector<8x32xf32> -> vector<8x64xf32>
    %c0_275 = arith.constant 0 : index
    %c0_276 = arith.constant 0 : index
    %621 = vector.load %arg4[%c0_275, %c0_276] : memref<64x128xf32, #tpu.memory_space<vmem>>, vector<64x128xf32>
    %cst_277 = arith.constant dense<0.000000e+00> : vector<8x128xf32>
    %622 = tpu.matmul %620, %621, %cst_277 {dimension_numbers = #tpu.dot_dimension_numbers<[1], [0], [0], [1], [0, 0, 1, 1], [], []>} : vector<8x64xf32>, vector<64x128xf32>, vector<8x128xf32> -> vector<8x128xf32>
    %c0_278 = arith.constant 0 : index
    %c0_279 = arith.constant 0 : index
    %623 = vector.load %arg5[%c0_278, %c0_279] : memref<1x128xf32, #tpu.memory_space<vmem>>, vector<1x128xf32>
    %624 = vector.broadcast %623 : vector<1x128xf32> to vector<8x128xf32>
    %625 = arith.addf %622, %624 : vector<8x128xf32>
    %cst_280 = arith.constant dense<0xFF800000> : vector<8xf32>
    %626 = vector.multi_reduction <maximumf>, %625, %cst_280 [1] : vector<8x128xf32> to vector<8xf32>
    %627 = vector.shape_cast %626 : vector<8xf32> to vector<8x1xf32>
    %628 = vector.broadcast %627 : vector<8x1xf32> to vector<8x128xf32>
    %629 = arith.subf %625, %628 : vector<8x128xf32>
    %630 = math.exp %629 : vector<8x128xf32>
    %cst_281 = arith.constant dense<0.000000e+00> : vector<8xf32>
    %631 = vector.multi_reduction <add>, %630, %cst_281 [1] : vector<8x128xf32> to vector<8xf32>
    %632 = vector.shape_cast %631 : vector<8xf32> to vector<8x1xf32>
    %633 = vector.broadcast %632 : vector<8x1xf32> to vector<8x128xf32>
    %634 = arith.divf %630, %633 : vector<8x128xf32>
    %635 = arith.index_cast %c7_i32 : i32 to index
    %c0_282 = arith.constant 0 : index
    %c0_283 = arith.constant 0 : index
    %636 = vector.load %arg14[%635, %c0_282, %c0_283] : memref<8x8x128xf32, #tpu.memory_space<vmem>>, vector<1x8x128xf32>
    %637 = vector.shape_cast %636 : vector<1x8x128xf32> to vector<8x128xf32>
    %638 = vector.shape_cast %634 : vector<8x128xf32> to vector<1x8x128xf32>
    tpu.vector_store %arg14[%635, %c0_282, %c0_283], %638 {strides = array<i32>} : memref<8x8x128xf32, #tpu.memory_space<vmem>>, vector<1x8x128xf32>,
    %c0_284 = arith.constant 0 : index
    %c0_285 = arith.constant 0 : index
    %639 = vector.load %arg3[%c0_284, %c0_285] : memref<128x32xf32, #tpu.memory_space<vmem>>, vector<128x32xf32>
    %cst_286 = arith.constant dense<0.000000e+00> : vector<8x32xf32>
    %640 = tpu.matmul %634, %639, %cst_286 {dimension_numbers = #tpu.dot_dimension_numbers<[1], [0], [0], [1], [0, 0, 1, 1], [], []>} : vector<8x128xf32>, vector<128x32xf32>, vector<8x32xf32> -> vector<8x32xf32>
    %641 = tpu.concatenate %619, %640 in 1 : vector<8x32xf32>, vector<8x32xf32> -> vector<8x64xf32>
    %c0_287 = arith.constant 0 : index
    %c0_288 = arith.constant 0 : index
    %642 = vector.load %arg6[%c0_287, %c0_288] : memref<64x32xf32, #tpu.memory_space<vmem>>, vector<64x32xf32>
    %cst_289 = arith.constant dense<0.000000e+00> : vector<8x32xf32>
    %643 = tpu.matmul %641, %642, %cst_289 {dimension_numbers = #tpu.dot_dimension_numbers<[1], [0], [0], [1], [0, 0, 1, 1], [], []>} : vector<8x64xf32>, vector<64x32xf32>, vector<8x32xf32> -> vector<8x32xf32>
    %c0_290 = arith.constant 0 : index
    %c0_291 = arith.constant 0 : index
    %644 = vector.load %arg7[%c0_290, %c0_291] : memref<1x32xf32, #tpu.memory_space<vmem>>, vector<1x32xf32>
    %645 = vector.broadcast %644 : vector<1x32xf32> to vector<8x32xf32>
    %646 = arith.addf %643, %645 : vector<8x32xf32>
    %cst_292 = arith.constant 0.000000e+00 : f32
    %647 = vector.broadcast %cst_292 : f32 to vector<8x32xf32>
    %648 = arith.maximumf %646, %647 : vector<8x32xf32>
    %649 = tpu.concatenate %648, %592 in 1 : vector<8x32xf32>, vector<8x32xf32> -> vector<8x64xf32>
    %c0_293 = arith.constant 0 : index
    %c0_294 = arith.constant 0 : index
    %650 = vector.load %arg8[%c0_293, %c0_294] : memref<64x192xf32, #tpu.memory_space<vmem>>, vector<64x192xf32>
    %cst_295 = arith.constant dense<0.000000e+00> : vector<8x192xf32>
    %651 = tpu.matmul %649, %650, %cst_295 {dimension_numbers = #tpu.dot_dimension_numbers<[1], [0], [0], [1], [0, 0, 1, 1], [], []>} : vector<8x64xf32>, vector<64x192xf32>, vector<8x192xf32> -> vector<8x192xf32>
    %c0_296 = arith.constant 0 : index
    %c0_297 = arith.constant 0 : index
    %652 = vector.load %arg9[%c0_296, %c0_297] : memref<1x192xf32, #tpu.memory_space<vmem>>, vector<1x192xf32>
    %653 = vector.broadcast %652 : vector<1x192xf32> to vector<8x192xf32>
    %654 = arith.addf %651, %653 : vector<8x192xf32>
    %655 = vector.extract_strided_slice %654 {offsets = [0, 0], sizes = [8, 32], strides = [1, 1]} : vector<8x192xf32> to vector<8x32xf32>
    %656 = vector.extract_strided_slice %654 {offsets = [0, 96], sizes = [8, 32], strides = [1, 1]} : vector<8x192xf32> to vector<8x32xf32>
    %657 = arith.addf %655, %656 : vector<8x32xf32>
    %658 = arith.negf %657 : vector<8x32xf32>
    %659 = math.exp %658 : vector<8x32xf32>
    %cst_298 = arith.constant 1.000000e+00 : f32
    %660 = vector.broadcast %cst_298 : f32 to vector<8x32xf32>
    %661 = arith.addf %660, %659 : vector<8x32xf32>
    %662 = arith.divf %660, %661 : vector<8x32xf32>
    %663 = vector.extract_strided_slice %654 {offsets = [0, 32], sizes = [8, 32], strides = [1, 1]} : vector<8x192xf32> to vector<8x32xf32>
    %664 = vector.extract_strided_slice %654 {offsets = [0, 128], sizes = [8, 32], strides = [1, 1]} : vector<8x192xf32> to vector<8x32xf32>
    %665 = arith.addf %663, %664 : vector<8x32xf32>
    %666 = arith.negf %665 : vector<8x32xf32>
    %667 = math.exp %666 : vector<8x32xf32>
    %cst_299 = arith.constant 1.000000e+00 : f32
    %668 = vector.broadcast %cst_299 : f32 to vector<8x32xf32>
    %669 = arith.addf %668, %667 : vector<8x32xf32>
    %670 = arith.divf %668, %669 : vector<8x32xf32>
    %671 = vector.extract_strided_slice %654 {offsets = [0, 64], sizes = [8, 32], strides = [1, 1]} : vector<8x192xf32> to vector<8x32xf32>
    %672 = vector.extract_strided_slice %654 {offsets = [0, 160], sizes = [8, 32], strides = [1, 1]} : vector<8x192xf32> to vector<8x32xf32>
    %673 = arith.mulf %662, %672 : vector<8x32xf32>
    %674 = arith.addf %671, %673 : vector<8x32xf32>
    %675 = math.tanh %674 : vector<8x32xf32>
    %cst_300 = arith.constant 1.000000e+00 : f32
    %676 = vector.broadcast %cst_300 : f32 to vector<8x32xf32>
    %677 = arith.subf %676, %670 : vector<8x32xf32>
    %678 = arith.mulf %677, %675 : vector<8x32xf32>
    %679 = arith.mulf %670, %592 : vector<8x32xf32>
    %680 = arith.addf %678, %679 : vector<8x32xf32>
    %681 = arith.index_cast %c7_i32 : i32 to index
    %c0_301 = arith.constant 0 : index
    %c0_302 = arith.constant 0 : index
    %682 = vector.load %arg13[%681, %c0_301, %c0_302] : memref<8x8x32xf32, #tpu.memory_space<vmem>>, vector<1x8x32xf32>
    %683 = vector.shape_cast %682 : vector<1x8x32xf32> to vector<8x32xf32>
    %684 = vector.shape_cast %680 : vector<8x32xf32> to vector<1x8x32xf32>
    tpu.vector_store %arg13[%681, %c0_301, %c0_302], %684 {strides = array<i32>} : memref<8x8x32xf32, #tpu.memory_space<vmem>>, vector<1x8x32xf32>,
    %c0_303 = arith.constant 0 : index
    %c0_304 = arith.constant 0 : index
    %685 = vector.load %arg10[%c0_303, %c0_304] : memref<32x64xf32, #tpu.memory_space<vmem>>, vector<32x64xf32>
    %cst_305 = arith.constant dense<0.000000e+00> : vector<8x64xf32>
    %686 = tpu.matmul %680, %685, %cst_305 {dimension_numbers = #tpu.dot_dimension_numbers<[1], [0], [0], [1], [0, 0, 1, 1], [], []>} : vector<8x32xf32>, vector<32x64xf32>, vector<8x64xf32> -> vector<8x64xf32>
    %c0_306 = arith.constant 0 : index
    %c0_307 = arith.constant 0 : index
    %687 = vector.load %arg11[%c0_306, %c0_307] : memref<1x64xf32, #tpu.memory_space<vmem>>, vector<1x64xf32>
    %688 = vector.broadcast %687 : vector<1x64xf32> to vector<8x64xf32>
    %689 = arith.addf %686, %688 : vector<8x64xf32>
    %cst_308 = arith.constant dense<0xFF800000> : vector<8xf32>
    %690 = vector.multi_reduction <maximumf>, %689, %cst_308 [1] : vector<8x64xf32> to vector<8xf32>
    %691 = vector.shape_cast %690 : vector<8xf32> to vector<8x1xf32>
    %692 = vector.broadcast %691 : vector<8x1xf32> to vector<8x64xf32>
    %693 = arith.subf %689, %692 : vector<8x64xf32>
    %694 = math.exp %693 : vector<8x64xf32>
    %cst_309 = arith.constant dense<0.000000e+00> : vector<8xf32>
    %695 = vector.multi_reduction <add>, %694, %cst_309 [1] : vector<8x64xf32> to vector<8xf32>
    %696 = vector.shape_cast %695 : vector<8xf32> to vector<8x1xf32>
    %697 = math.log %696 : vector<8x1xf32>
    %698 = arith.addf %697, %691 : vector<8x1xf32>
    %699 = vector.broadcast %698 : vector<8x1xf32> to vector<8x64xf32>
    %700 = arith.subf %689, %699 : vector<8x64xf32>
    %701 = arith.index_cast %c7_i32 : i32 to index
    %c0_310 = arith.constant 0 : index
    %c0_311 = arith.constant 0 : index
    %702 = vector.load %arg12[%701, %c0_310, %c0_311] : memref<8x8x64xf32, #tpu.memory_space<vmem>>, vector<1x8x64xf32>
    %703 = vector.shape_cast %702 : vector<1x8x64xf32> to vector<8x64xf32>
    %704 = vector.shape_cast %700 : vector<8x64xf32> to vector<1x8x64xf32>
    tpu.vector_store %arg12[%701, %c0_310, %c0_311], %704 {strides = array<i32>} : memref<8x8x64xf32, #tpu.memory_space<vmem>>, vector<1x8x64xf32>,
    %c8_i32 = arith.constant 8 : i32
    return
  }
  func.func @transform_0(%arg0: i32) -> (i32, i32, i32) {
    %c0_i32 = arith.constant 0 : i32
    %c0_i32_0 = arith.constant 0 : i32
    %c0_i32_1 = arith.constant 0 : i32
    return %c0_i32, %arg0, %c0_i32_0 : i32, i32, i32
  }
  func.func @transform_1(%arg0: i32) -> (i32, i32) {
    %c0_i32 = arith.constant 0 : i32
    %c0_i32_0 = arith.constant 0 : i32
    return %arg0, %c0_i32 : i32, i32
  }
  func.func @transform_2(%arg0: i32) -> (i32, i32) {
    %c0_i32 = arith.constant 0 : i32
    %c0_i32_0 = arith.constant 0 : i32
    %c0_i32_1 = arith.constant 0 : i32
    return %c0_i32, %c0_i32_0 : i32, i32
  }
  func.func @transform_3(%arg0: i32) -> (i32, i32) {
    %c0_i32 = arith.constant 0 : i32
    %c0_i32_0 = arith.constant 0 : i32
    %c0_i32_1 = arith.constant 0 : i32
    return %c0_i32, %c0_i32_0 : i32, i32
  }
  func.func @transform_4(%arg0: i32) -> (i32, i32) {
    %c0_i32 = arith.constant 0 : i32
    %c0_i32_0 = arith.constant 0 : i32
    %c0_i32_1 = arith.constant 0 : i32
    return %c0_i32, %c0_i32_0 : i32, i32
  }
  func.func @transform_5(%arg0: i32) -> (i32, i32) {
    %c0_i32 = arith.constant 0 : i32
    %c0_i32_0 = arith.constant 0 : i32
    %c0_i32_1 = arith.constant 0 : i32
    return %c0_i32, %c0_i32_0 : i32, i32
  }
  func.func @transform_6(%arg0: i32) -> (i32, i32) {
    %c0_i32 = arith.constant 0 : i32
    %c0_i32_0 = arith.constant 0 : i32
    %c0_i32_1 = arith.constant 0 : i32
    return %c0_i32, %c0_i32_0 : i32, i32
  }
  func.func @transform_7(%arg0: i32) -> (i32, i32) {
    %c0_i32 = arith.constant 0 : i32
    %c0_i32_0 = arith.constant 0 : i32
    %c0_i32_1 = arith.constant 0 : i32
    return %c0_i32, %c0_i32_0 : i32, i32
  }
  func.func @transform_8(%arg0: i32) -> (i32, i32) {
    %c0_i32 = arith.constant 0 : i32
    %c0_i32_0 = arith.constant 0 : i32
    %c0_i32_1 = arith.constant 0 : i32
    return %c0_i32, %c0_i32_0 : i32, i32
  }
  func.func @transform_9(%arg0: i32) -> (i32, i32) {
    %c0_i32 = arith.constant 0 : i32
    %c0_i32_0 = arith.constant 0 : i32
    %c0_i32_1 = arith.constant 0 : i32
    return %c0_i32, %c0_i32_0 : i32, i32
  }
  func.func @transform_10(%arg0: i32) -> (i32, i32) {
    %c0_i32 = arith.constant 0 : i32
    %c0_i32_0 = arith.constant 0 : i32
    %c0_i32_1 = arith.constant 0 : i32
    return %c0_i32, %c0_i32_0 : i32, i32
  }
  func.func @transform_11(%arg0: i32) -> (i32, i32, i32) {
    %c0_i32 = arith.constant 0 : i32
    %c0_i32_0 = arith.constant 0 : i32
    %c0_i32_1 = arith.constant 0 : i32
    return %c0_i32, %arg0, %c0_i32_0 : i32, i32, i32
  }
  func.func @transform_12(%arg0: i32) -> (i32, i32, i32) {
    %c0_i32 = arith.constant 0 : i32
    %c0_i32_0 = arith.constant 0 : i32
    %c0_i32_1 = arith.constant 0 : i32
    return %c0_i32, %arg0, %c0_i32_0 : i32, i32, i32
  }
  func.func @transform_13(%arg0: i32) -> (i32, i32, i32) {
    %c0_i32 = arith.constant 0 : i32
    %c0_i32_0 = arith.constant 0 : i32
    %c0_i32_1 = arith.constant 0 : i32
    return %c0_i32, %arg0, %c0_i32_0 : i32, i32, i32
  }
}

</mosaic_0001>

<bundles_post_ra>
// kernel: tpu_custom_call.1
= control target key start
LH: loop header
LB: loop body
LE: loop exit
PB: predicated region body
PF: predicated region fallthrough
CT: control target
= control target key end

     0   :  { %s9035_s0 = inlined_call_operand.vmem [shape: f32[8,16,32], index: 0, kind: input, shape index: {}]   ;;  %s9036_s1 = inlined_call_operand.hbm [shape: f32[16,32], index: 1, kind: input, shape index: {}]   ;;  %s9037_s2 = inlined_call_operand.vmem [shape: f32[128,32], index: 2, kind: input, shape index: {}]   ;;  %s9038_s3 = inlined_call_operand.hbm [shape: f32[64,128], index: 3, kind: input, shape index: {}]   ;;  %s9039_s4 = inlined_call_operand.hbm [shape: f32[1,128], index: 4, kind: input, shape index: {}]   ;;  %s9040_s5 = inlined_call_operand.vmem [shape: f32[64,32], index: 5, kind: input, shape index: {}]   ;;  %s9041_s6 = inlined_call_operand.hbm [shape: f32[1,32], index: 6, kind: input, shape index: {}]   ;;  %s9042_s7 = inlined_call_operand.vmem [shape: f32[64,192], index: 7, kind: input, shape index: {}]   ;;  %s9043_s8 = inlined_call_operand.vmem [shape: f32[1,192], index: 8, kind: input, shape index: {}]   ;;  %s9044_s9 = inlined_call_operand.vmem [shape: f32[32,64], index: 9, kind: input, shape index: {}]   ;;  %s9045_s10 = inlined_call_operand.vmem [shape: f32[1,64], index: 10, kind: input, shape index: {}]   ;;  %s9046_s11 = inlined_call_operand.hbm [shape: f32[8,16,64], index: 11, kind: output, shape index: {0}]   ;;  %s9047_s12 = inlined_call_operand.hbm [shape: f32[8,16,32], index: 12, kind: output, shape index: {1}]   ;;  %s9048_s13 = inlined_call_operand.hbm [shape: f32[8,16,128], index: 13, kind: output, shape index: {2}]  }
   0x1   :  { %9067 = sst [smem:[#allocation25_spill]] %s9035_s0 }
   0x2   :  { %9068 = sst [smem:[#allocation26_spill]] %s9036_s1 }
   0x3   :  { %9069 = sst [smem:[#allocation27_spill]] %s9037_s2 }
   0x4   :  { %9070 = sst [smem:[#allocation28_spill]] %s9044_s9 }
   0x5   :  { %9071 = sst [smem:[#allocation29_spill]] %s9045_s10 }
   0x6   :  { %9072 = sst [smem:[#allocation30_spill]] %s9046_s11 }
   0x7   :  { %9073 = sst [smem:[#allocation31_spill]] %s9047_s12 }
   0x8   :  { %9074 = sst [smem:[#allocation32_spill]] %s9048_s13 }
   0x9   :  { %19 = vsyncpa [#allocation4], 0 }
   0xa   :  { %21 = vsyncpa [#allocation4 + $0x1], 0 }
   0xb   :  { %22 = vsyncpa [#allocation7], 0 }
   0xc   :  { %23 = vsyncpa [#allocation10], 0 }
   0xd   :  { %24 = vsyncpa [#allocation5], 0 }
   0xe   :  { %26 = vsyncpa [#allocation5 + $0x1], 0 }
   0xf   :  { %27 = vsyncpa [#allocation13], 0 }
  0x10   :  { %29 = vsyncpa [#allocation13 + $0x1], 0  ;;  %s7317_s25 = smov 0   ;;  %s7319_s26 = smov 0  }
  0x11   :  { %s7321_s27 = smov 0   ;;  %s7323_s28 = smov 0  }
  0x12 LB: > { %9075 = sst [smem:[#allocation20_spill]] %s7215_s25  ;;  %s7338_s29 = sadd.s32 4294967295, %s7227_s28   ;;  %s7227_s28 = sphi %s7323_s28, %s9110_s28   ;;  %s7223_s27 = sphi %s7321_s27, %s9114_s27   ;;  %s7219_s26 = sphi %s7319_s26, %s9113_s26   ;;  %s7215_s25 = sphi %s7317_s25, %s9112_s25  }
  0x13   : > { %s9049_s30 = sadd.s32 4294967294, %s7227_s28   ;;  %s7342_s14 = sadd.s32 1, %s7227_s28  }
  0x14   : > { %9076 = sst [smem:[#allocation21_spill]] %s7342_s14  ;;  %s42_s15 = sadd.s32 1, %s7223_s27 }
  0x15   : > { %s39_s16 = ssub.s32 %s7227_s28, %s7342_s14  ;;  %p49_p0 = scmp.ne.s32.totalorder %s7223_s27, %s7219_s26 }
  0x16   : > { %p40_p1 = scmp.eq.s32.totalorder %s39_s16, 0  ;;  %p50_p2 = scmp.eq.s32.totalorder %s7227_s28, 0 }
  0x17   : > { %p81_p3 = scmp.ne.s32.totalorder %s7219_s26, %s7215_s25  ;;  %p9056_p4 = scmp.eq.s32.totalorder %s7338_s29, 0 }
  0x18   : > { %s7354_s17 = scalar_select %p40_p1, %s7223_s27, %s42_s15  }
  0x19   : > { %p7356_p5 = por %p50_p2, %p49_p0  ;;  %p7362_p6 = por %p9056_p4, %p81_p3 }
  0x1a   : > { %9077 = sst [smem:[#allocation22_spill]] %s7354_s17  ;;  %p294_p7 = scmp.eq.s32.totalorder %s7338_s29, 1 }
  0x1b   : > { %s9078_s18 = scalar_select %p7356_p5, 1, 0 }
  0x1c   : > { %s9079_s19 = scalar_select %p7362_p6, 1, 0 }
  0x1d   : > { %p300_p8 = scmp.eq.s32.totalorder %s9049_s30, 1  ;;  %p5066_p9 = scmp.ge.s32.totalorder %s7227_s28, 1 }
  0x1e   : > { %p359_p10 = scmp.lt.s32.totalorder %s7227_s28, 3  ;;  %p7371_p11 = por %p294_p7, %p49_p0 }
  0x1f   : > { %p7375_p12 = por %p300_p8, %p81_p3  ;;  %s7229_s23 = smov [#allocation6]  }
  0x20   : > { %s9080_s20 = scalar_select %p7371_p11, 1, 0 }
  0x21   : > { %s9082_s21 = scalar_select %p7375_p12, 1, 0 }
  0x22   : > { %9081 = sst [smem:[#allocation23_spill]] %s9080_s20  ;;  %p7379_p13 = pnand %p5066_p9, %p359_p10 }
  0x23   : > { %9083 = sst [smem:[#allocation24_spill]] %s9082_s21  ;;  %s374_s24 = sshll.u32 %s7229_s23, 4  ;;  %s375_s24 = int_to_ptr.vmem [resolvable:$true] %s374_s24 }
  0x24   : > { %s9084_s22 = scalar_select %p7379_p13, 1, 0 }
  0x25   : > { %p6764_p1 = pneg %p7379_p13  ;;  %s7230_s16 = smov [#allocation8]  }
  0x26   : > { %s388_s30 = sshll.u32 %s7230_s16, 4  ;;  %s6981_s21 = scalar_lea.hbm %s9038_s3, 1024  ;;  %s7391_s30 = int_to_ptr.vmem [resolvable:$true] %s388_s30 }
  0x27   : > { %p7387_p2 = pnand %p6764_p1, %p9056_p4  ;;  %p6982_p0 = scmp.ne.s32.totalorder %s9038_s3, %s6981_s21 }
  0x28   : > { %p6988_p9 = scmp.lt.u32.totalorder %s6981_s21, %s9038_s3 }
  0x29   : > { %p7401_p3 = pneg %p7387_p2 }
  0x2b   : > { %p6984_p7 = pnand %p7401_p3, %p6982_p0 }
  0x2d   : > { %p6985_p8 = pneg %p6984_p7 }
  0x2f   : > { %p6990_p10 = pnand %p6988_p9, %p6985_p8 }
  0x31   : > { %6993 = shalt.err (!%p6990_p10)
}
  0x32   : > { %s6994_s14 = scalar_lea.vmem %s375_s24, 1024  ;;  %p7002_p11 = scmp.lt.s32.totalorder %s375_s24, %s375_s24 }
  0x33   : > { %p6995_p1 = scmp.ne.s32.totalorder %s375_s24, %s6994_s14  ;;  %p7003_p6 = scmp.lt.s32.totalorder %s6994_s14, %s6994_s14 }
  0x35   : > { %p6997_p4 = pnand %p6995_p1, %p7401_p3  ;;  %p7004_p13 = por %p7003_p6, %p7002_p11 }
  0x37   : > { %p6998_p12 = pneg %p6997_p4 }
  0x39   : > { %p7005_p5 = pnand %p7004_p13, %p6998_p12 }
  0x3b   : > { %7008 = shalt.err (!%p7005_p5)
}
  0x3c   : > { %s7231_s11 = smov 128   ;;  %s7232_s25 = smov 8  }
  0x3d   : > { %6767 = dma.hbm_to_vmem [thread:$0]  (!%p7387_p2), %s9038_s3, 1024, %s375_s24, [#allocation7], %s7231_s11, %s7231_s11, %s7232_s25  }
  0x3e   : > { %s7009_s12 = scalar_lea.hbm %s9039_s4, 16 }
  0x3f   : > { %p7010_p4 = scmp.ne.s32.totalorder %s9039_s4, %s7009_s12  ;;  %p7016_p11 = scmp.lt.u32.totalorder %s7009_s12, %s9039_s4 }
  0x41   : > { %p7012_p6 = pnand %p7010_p4, %p7401_p3 }
  0x43   : > { %p7013_p5 = pneg %p7012_p6 }
  0x45   : > { %p7018_p12 = pnand %p7016_p11, %p7013_p5 }
  0x47   : > { %7021 = shalt.err (!%p7018_p12)
}
  0x48   : > { %s7022_s24 = scalar_lea.vmem %s7391_s30, 16  ;;  %s7029_s10 = scalar_lea.vmem %s7391_s30, 32 }
  0x49   : > { %p7023_p13 = scmp.ne.s32.totalorder %s7391_s30, %s7022_s24  ;;  %p7030_p8 = scmp.lt.s32.totalorder %s7391_s30, %s7391_s30 }
  0x4a   : > { %p7031_p9 = scmp.lt.s32.totalorder %s7029_s10, %s7022_s24 }
  0x4b   : > { %p7025_p0 = pnand %p7023_p13, %p7401_p3 }
  0x4c   : > { %p7032_p10 = por %p7031_p9, %p7030_p8 }
  0x4d   : > { %p7026_p7 = pneg %p7025_p0 }
  0x4f   : > { %p7033_p1 = pnand %p7032_p10, %p7026_p7 }
  0x51   : > { %7036 = shalt.err (!%p7033_p1)
}
  0x52   : > { %6770 = dma.hbm_to_vmem [thread:$0]  (!%p7387_p2), %s9039_s4, 16, %s7391_s30, [#allocation7]  }
  0x53   : > { %s7233_s20 = smov [#allocation9]   ;;  %s7037_s17 = scalar_lea.hbm %s9041_s6, 16 }
  0x54   : > { %s402_s11 = sshll.u32 %s7233_s20, 4  ;;  %p7038_p4 = scmp.ne.s32.totalorder %s9041_s6, %s7037_s17  ;;  %s403_s11 = int_to_ptr.vmem [resolvable:$true] %s402_s11 }
  0x55   : > { %p7044_p11 = scmp.lt.u32.totalorder %s7037_s17, %s9041_s6 }
  0x56   : > { %p7040_p6 = pnand %p7038_p4, %p7401_p3 }
  0x58   : > { %p7041_p5 = pneg %p7040_p6 }
  0x5a   : > { %p7046_p12 = pnand %p7044_p11, %p7041_p5 }
  0x5c   : > { %7049 = shalt.err (!%p7046_p12)
}
  0x5d   : > { %s7050_s30 = scalar_lea.vmem %s403_s11, 16  ;;  %s7057_s10 = scalar_lea.vmem %s403_s11, 32 }
  0x5e   : > { %p7051_p13 = scmp.ne.s32.totalorder %s403_s11, %s7050_s30  ;;  %p7058_p8 = scmp.lt.s32.totalorder %s403_s11, %s403_s11 }
  0x5f   : > { %p7059_p9 = scmp.lt.s32.totalorder %s7057_s10, %s7050_s30 }
  0x60   : > { %p7053_p0 = pnand %p7051_p13, %p7401_p3 }
  0x61   : > { %p7060_p10 = por %p7059_p9, %p7058_p8 }
  0x62   : > { %p7054_p7 = pneg %p7053_p0 }
  0x64   : > { %p7061_p1 = pnand %p7060_p10, %p7054_p7 }
  0x66   : > { %7064 = shalt.err (!%p7061_p1)
}
  0x67   : > { %6773 = dma.hbm_to_vmem [thread:$0]  (!%p7387_p2), %s9041_s6, 16, %s403_s11, [#allocation10]  }
  0x68   : > { %p9066_p4 = scmp.ge.s32.totalorder %s7227_s28, 2 }
  0x69   : > { %p9087_p3 = scmp.ne.s32.totalorder (!%p9066_p4), %s9078_s18, 0 }
  0x6a   : > { %421 = sbr.rel (%p9066_p4) target bundleno = 156 (0x9c), region = 52 }
  0x71   : > { %424 = sbr.rel (!%p9087_p3) target bundleno = 127 (0x7f), region = 56  ;;  %s426_s23 = sand.u32 (%p9087_p3), 1, %s7223_s27  }
  0x72   : > { %s5072_s20 = sshll.u32 (%p9087_p3), %s7227_s28, 3  ;;  %s5071_s25 = sshll.u32 (%p9087_p3), %s426_s23, 6 }
  0x73   : > { %s9088_s0 = sld [smem:[#allocation25_spill]] (%p9087_p3)  ;;  %s428_s11 = scalar_lea.vmem (%p9087_p3), [#allocation2], %s5071_s25 }
  0x79   : > { %s430_s15 = scalar_lea.vmem %s9088_s0, %s5072_s20 }
  0x7a   : > { %v472_v0 = vld [vmem:[%s430_s15] sm:$0xff]  ;;  %v474_v1 = vld [vmem:[%s430_s15 + $0x10] sm:$0xff] }
  0x7b   : > { %v476_v2 = vld [vmem:[%s430_s15 + $0x20] sm:$0xff]  ;;  %473 = vst [vmem:[%s428_s11] sm:$0xff] %v472_v0  ;;  %475 = vst [vmem:[%s428_s11 + $0x8] sm:$0xff] %v474_v1  ;;  %v478_v3 = vld [vmem:[%s430_s15 + $0x30] sm:$0xff] }
  0x7c   : > { %477 = vst [vmem:[%s428_s11 + $0x10] sm:$0xff] %v476_v2  ;;  %v480_v4 = vld [vmem:[%s430_s15 + $0x40] sm:$0xff]  ;;  %v482_v5 = vld [vmem:[%s430_s15 + $0x50] sm:$0xff]  ;;  %479 = vst [vmem:[%s428_s11 + $0x18] sm:$0xff] %v478_v3 }
  0x7d   : > { %481 = vst [vmem:[%s428_s11 + $0x20] sm:$0xff] %v480_v4  ;;  %483 = vst [vmem:[%s428_s11 + $0x28] sm:$0xff] %v482_v5  ;;  %v484_v6 = vld [vmem:[%s430_s15 + $0x60] sm:$0xff]  ;;  %v486_v7 = vld [vmem:[%s430_s15 + $0x70] sm:$0xff] }
  0x7e   : > { %485 = vst [vmem:[%s428_s11 + $0x30] sm:$0xff] %v484_v6  ;;  %487 = vst [vmem:[%s428_s11 + $0x38] sm:$0xff] %v486_v7 }
  0x7f PF: > { %s494_s21 = sand.u32 1, %s7223_s27   ;;  %s5074_s16 = sshll.u32 %s7227_s28, 7 }
  0x80   : > { %s5073_s14 = sshll.u32 %s494_s21, 3  ;;  %s9089_s1 = sld [smem:[#allocation26_spill]] }
  0x81   : > { %s498_s9 = scalar_lea.vmem [#allocation3], %s5073_s14  ;;  %s495_s23 = scalar_lea.sflag [#allocation4], %s494_s21 }
  0x82   : > { %s505_s12 = sshll.u32 %s498_s9, 4  ;;  %p9090_p6 = scmp.ne.s32.totalorder %s9078_s18, 0  ;;  %s506_s12 = int_to_ptr.vmem [resolvable:$true] %s505_s12 }
  0x86   : > { %s7474_s10 = scalar_lea.hbm %s9089_s1, %s5074_s16  ;;  %s7069_s17 = scalar_lea.hbm %s9089_s1, 256 }
  0x87   : > { %s7065_s20 = scalar_lea.hbm %s7474_s10, 128  ;;  %p7070_p12 = scmp.lt.u32.totalorder %s7474_s10, %s9089_s1 }
  0x88   : > { %p7066_p2 = scmp.ne.s32.totalorder %s7474_s10, %s7065_s20  ;;  %p7071_p13 = scmp.lt.u32.totalorder %s7069_s17, %s7065_s20 }
  0x89   : > { %p7073_p7 = scmp.lt.u32.totalorder %s7065_s20, %s7474_s10 }
  0x8a   : > { %p7067_p5 = pnand %p7066_p2, %p9090_p6  ;;  %p7072_p0 = por %p7071_p13, %p7070_p12 }
  0x8c   : > { %p7068_p11 = pneg %p7067_p5  ;;  %p7074_p8 = por %p7073_p7, %p7072_p0 }
  0x8e   : > { %p7075_p9 = pnand %p7074_p8, %p7068_p11 }
  0x90   : > { %7078 = shalt.err (!%p7075_p9)
}
  0x91   : > { %s7079_s21 = scalar_lea.vmem %s506_s12, 128  ;;  %s7234_s16 = smov [#allocation3]  }
  0x92   : > { %p7080_p10 = scmp.ne.s32.totalorder %s506_s12, %s7079_s21  ;;  %s7083_s14 = sshll.u32 %s7234_s16, 4  ;;  %s7084_s14 = int_to_ptr.vmem [resolvable:$false] %s7083_s14 }
  0x93   : > { %s7085_s24 = scalar_lea.vmem %s7084_s14, 256  ;;  %p7086_p2 = scmp.lt.s32.totalorder %s506_s12, %s7084_s14 }
  0x94   : > { %p7081_p1 = pnand %p7080_p10, %p9090_p6  ;;  %p7087_p5 = scmp.lt.s32.totalorder %s7085_s24, %s7079_s21 }
  0x96   : > { %p7082_p3 = pneg %p7081_p1  ;;  %p7088_p4 = por %p7087_p5, %p7086_p2 }
  0x98   : > { %p7089_p12 = pnand %p7088_p4, %p7082_p3 }
  0x9a   : > { %7092 = shalt.err (!%p7089_p12)
}
  0x9b   : > { %6750 = dma.hbm_to_vmem [thread:$0]  (%p9090_p6), %s7474_s10, 128, %s506_s12, %s495_s23  }
  0x9c PF: > { %p9091_p11 = scmp.ne.s32.totalorder %s9084_s22, 0 }
  0x9d   : > { %s7496_s30 = sand.u32 (!%p9091_p11), 1, %s7219_s26   ;;  %p9092_p4 = scmp.ne.s32.totalorder (!%p9091_p11), %s9079_s19, 0 }
  0x9e   : > { %514 = sbr.rel (%p9091_p11) target bundleno = 15285 (0x3bb5), region = 98  ;;  %s7499_s9 = sshll.u32 (!%p9091_p11), %s7496_s30, 6 }
  0x9f   : > { %s5077_s20 = sshll.u32 (!%p9091_p11), %s7496_s30, 3  ;;  %s7503_s25 = scalar_lea.vmem (!%p9091_p11), [#allocation2], %s7499_s9 }
  0xa0   : > { %s524_s18 = scalar_lea.sflag (!%p9091_p11), [#allocation4], %s7496_s30  ;;  %s527_s13 = scalar_lea.vmem (!%p9091_p11), [#allocation3], %s5077_s20 }
  0xa5   : > { %7194 = dma.done.wait (%p9092_p4), %s524_s18, 128  }
  0xa6   : > { %7196 = vsyncadd (%p9092_p4), %s524_s18, 4294967168  ;;  %p9093_p6 = scmp.eq.s32.totalorder %s7338_s29, 0 }
  0xa8   : > { %7198 = dma.done.wait (%p9093_p6), [#allocation7], 1040   ;;  %p9094_p13 = pmov %p9093_p6 }
  0xa9   : > { %p9095_p0 = pmov %p9093_p6 }
  0xaa   : > { %7200 = vsyncadd (%p9094_p13), [#allocation7], 4294966256 }
  0xab   : > { %7202 = dma.done.wait (%p9095_p0), [#allocation10], 16   ;;  %p9096_p7 = pmov %p9095_p0 }
  0xac   : > { %v7235_v8 = vmov 0.0|0.0   ;;  %vm7236_vm0 = vmmov 0   ;;  %v7237_v9 = vmov 0.0   ;;  %v596_v10 = vld [vmem:[%s527_s13] sm:$0xff]  ;;  %v604_v11 = vld [vmem:[#allocation6] sm:$0xff]  ;;  %v605_v12 = vld [vmem:[#allocation6 + $0x8] sm:$0xff] }
  0xad   : > { %7204 = vsyncadd (%p9096_p7), [#allocation10], 4294967280  ;;  %6184 = vmatprep.subr.bf16.mxu0 %v7235_v8  ;;  %5528 = vmatprep.mubr.msk.f32.mxu0 %vm7236_vm0, %v7237_v9  ;;  %s7238_s19 = smov 32   ;;  %v7525_v13 = vpack.c.bf16 %v605_v12, %v604_v11  ;;  %v606_v14 = vld [vmem:[#allocation6 + $0x10] sm:$0xff]  ;;  %v607_v15 = vld [vmem:[#allocation6 + $0x18] sm:$0xff]  ;;  %vm602_vm1 = vcmask 261120  }
  0xae   : > { %6196 = vmatprep.subr.bf16.mxu1 %v7235_v8  ;;  %5563 = vmatprep.mubr.msk.f32.mxu1 %vm7236_vm0, %v7237_v9  ;;  %v7528_v16 = vpack.c.bf16 %v607_v15, %v606_v14  ;;  %v608_v17 = vld [vmem:[#allocation6 + $0x20] sm:$0xff]  ;;  %v609_v18 = vld [vmem:[#allocation6 + $0x28] sm:$0xff]  ;;  %v610_v20 = vld [vmem:[#allocation6 + $0x30] sm:$0xff]  ;;  %vm619_vm2 = vcmask 523264   ;;  %s9097_s2 = sld [smem:[#allocation27_spill]]  ;;  %s7636_s17 = scalar_lea.vmem [#allocation14], %s7499_s9 }
  0xaf   : > { %599 = vrot.lane.b32.xlu0 %v596_v10, %s7238_s19  ;;  %6186 = vmatpush3.bf16.msra.mxu0 %v7525_v13  ;;  %v7532_v19 = vpack.c.bf16 %v609_v18, %v608_v17  ;;  %v611_v21 = vld [vmem:[#allocation6 + $0x38] sm:$0xff]  ;;  %v7542_v23 = vld [vmem:[%s7503_s25] sm:$0xff]  ;;  %v7552_v26 = vld [vmem:[#allocation8] ss:$0 sm:$0xff]  ;;  %s7239_s12 = smov 96   ;;  %s7240_s23 = smov 64  }
  0xb0   : > { %6187 = vmatprep.subr.bf16.mxu0 %v7235_v8  ;;  %v7536_v22 = vpack.c.bf16 %v611_v21, %v610_v20  ;;  %v794_v61 = vld [vmem:[%s9040_s5] sm:$0xff]  ;;  %v795_v62 = vld [vmem:[%s9040_s5 + $0x8] sm:$0xff]  ;;  %v796_v63 = vld [vmem:[%s9040_s5 + $0x10] sm:$0xff]  ;;  %s9098_s21 = sld [smem:[#allocation28_spill]]  ;;  %s7822_s22 = scalar_lea.vmem [#allocation12], %s7499_s9 }
  0xb1   : > { %v7650_v0 = vpack.c.bf16 %v795_v62, %v794_v61  ;;  %v797_v1 = vld [vmem:[%s9040_s5 + $0x18] sm:$0xff]  ;;  %v798_v3 = vld [vmem:[%s9040_s5 + $0x20] sm:$0xff]  ;;  %v799_v4 = vld [vmem:[%s9040_s5 + $0x28] sm:$0xff]  ;;  %s9099_s15 = sld [smem:[#allocation29_spill]]  ;;  %s4884_s24 = sshll.u32 %s7636_s17, 4  ;;  %s8903_s24 = int_to_ptr.vmem [resolvable:$true] %s4884_s24 }
  0xb2   : > { %v7656_v2 = vpack.c.bf16 %v797_v1, %v796_v63  ;;  %v7666_v5 = vpack.c.bf16 %v799_v4, %v798_v3  ;;  %v800_v6 = vld [vmem:[%s9040_s5 + $0x30] sm:$0xff]  ;;  %v801_v7 = vld [vmem:[%s9040_s5 + $0x38] sm:$0xff]  ;;  %v885_v11 = vld [vmem:[%s9042_s7 + $0x8] sm:$0xff]  ;;  %s4869_s20 = sshll.u32 %s7822_s22, 4  ;;  %s4836_s18 = sand.u32 1, %s7338_s29   ;;  %s8905_s20 = int_to_ptr.vmem [resolvable:$true] %s4869_s20 }
  0xb3   : > { %6189 = vmatpush3.bf16.msra.mxu0 %v7528_v16  ;;  %v7676_v10 = vpack.c.bf16 %v801_v7, %v800_v6  ;;  %v887_v12 = vld [vmem:[%s9042_s7 + $0x18] sm:$0xff]  ;;  %v884_v18 = vld [vmem:[%s9042_s7] sm:$0xff]  ;;  %v886_v20 = vld [vmem:[%s9042_s7 + $0x10] sm:$0xff]  ;;  %s8923_s14 = scalar_lea.sflag [#allocation13], %s4836_s18  ;;  %s7093_s0 = scalar_lea.vmem %s8905_s20, 1024 }
  0xb4   : > { %6190 = vmatprep.subr.bf16.mxu0 %v7235_v8  ;;  %v703_v30 = vld [vmem:[%s9097_s2] sm:$0xff]  ;;  %v704_v31 = vld [vmem:[%s9097_s2 + $0x8] sm:$0xff]  ;;  %v705_v32 = vld [vmem:[%s9097_s2 + $0x10] sm:$0xff]  ;;  %v7686_v14 = vpack.c.bf16 %v887_v12, %v885_v11  ;;  %p7094_p8 = scmp.ne.s32.totalorder %s8905_s20, %s7093_s0 }
  0xb5   : > { %v7564_v33 = vpack.c.bf16 %v704_v31, %v703_v30  ;;  %v706_v34 = vld [vmem:[%s9097_s2 + $0x18] sm:$0xff]  ;;  %v707_v36 = vld [vmem:[%s9097_s2 + $0x20] sm:$0xff]  ;;  %v708_v37 = vld [vmem:[%s9097_s2 + $0x28] sm:$0xff] }
  0xb6   : > { %v7570_v35 = vpack.c.bf16 %v706_v34, %v705_v32  ;;  %v7580_v38 = vpack.c.bf16 %v708_v37, %v707_v36  ;;  %v709_v39 = vld [vmem:[%s9097_s2 + $0x30] sm:$0xff]  ;;  %v710_v40 = vld [vmem:[%s9097_s2 + $0x38] sm:$0xff]  ;;  %v711_v42 = vld [vmem:[%s9097_s2 + $0x40] sm:$0xff] }
  0xb7   : > { %6192 = vmatpush3.bf16.msra.mxu0 %v7532_v19  ;;  %6198 = vmatpush3.bf16.msra.mxu1 %v7564_v33  ;;  %v7590_v41 = vpack.c.bf16 %v710_v40, %v709_v39  ;;  %v712_v43 = vld [vmem:[%s9097_s2 + $0x48] sm:$0xff]  ;;  %v713_v49 = vld [vmem:[%s9097_s2 + $0x50] sm:$0xff]  ;;  %v714_v50 = vld [vmem:[%s9097_s2 + $0x58] sm:$0xff] }
  0xb8   : > { %6193 = vmatprep.subr.bf16.mxu0 %v7235_v8  ;;  %6199 = vmatprep.subr.bf16.mxu1 %v7235_v8  ;;  %v7600_v44 = vpack.c.bf16 %v712_v43, %v711_v42  ;;  %v7611_v51 = vpack.c.bf16 %v714_v50, %v713_v49  ;;  %v715_v52 = vld [vmem:[%s9097_s2 + $0x60] sm:$0xff]  ;;  %v716_v53 = vld [vmem:[%s9097_s2 + $0x68] sm:$0xff]  ;;  %v717_v55 = vld [vmem:[%s9097_s2 + $0x70] sm:$0xff] }
  0xb9   : > { %v7620_v54 = vpack.c.bf16 %v716_v53, %v715_v52  ;;  %v718_v56 = vld [vmem:[%s9097_s2 + $0x78] sm:$0xff]  ;;  %v889_v21 = vld [vmem:[%s9042_s7 + $0x28] sm:$0xff]  ;;  %v888_v30 = vld [vmem:[%s9042_s7 + $0x20] sm:$0xff] }
  0xba   : > { %v7630_v57 = vpack.c.bf16 %v718_v56, %v717_v55  ;;  %v890_v31 = vld [vmem:[%s9042_s7 + $0x30] sm:$0xff]  ;;  %v893_v34 = vld [vmem:[%s9042_s7 + $0x48] sm:$0xff]  ;;  %v895_v36 = vld [vmem:[%s9042_s7 + $0x58] sm:$0xff] }
  0xbb   : > { %6195 = vmatpush3.bf16.msra.mxu0 %v7536_v22  ;;  %6201 = vmatpush3.bf16.msra.mxu1 %v7570_v35  ;;  %v7722_v37 = vpack.c.bf16 %v890_v31, %v888_v30  ;;  %v7726_v39 = vpack.c.bf16 %v895_v36, %v893_v34  ;;  %v894_v40 = vld [vmem:[%s9042_s7 + $0x50] sm:$0xff]  ;;  %v897_v43 = vld [vmem:[%s9042_s7 + $0x68] sm:$0xff]  ;;  %v900_v62 = vld [vmem:[%s9043_s8] sm:$0x3] }
  0xbc   : > { %6220 = vmatprep.subr.bf16.mxu0 %v7235_v8  ;;  %6202 = vmatprep.subr.bf16.mxu1 %v7235_v8  ;;  %v7758_v50 = vld [vmem:[#allocation9] ss:$0 sm:$0xff]  ;;  %v1032_v34 = vld [vmem:[%s9098_s21 + $0x8] sm:$0xff] }
  0xbd   : > { %v1033_v36 = vld [vmem:[%s9098_s21 + $0x10] sm:$0xff] }
  0xbf   : > { %6204 = vmatpush3.bf16.msra.mxu1 %v7580_v38 }
  0xc0   : > { %6205 = vmatprep.subr.bf16.mxu1 %v7235_v8 }
  0xc3   : > { %6207 = vmatpush3.bf16.msra.mxu1 %v7590_v41 }
  0xc4   : > { %6208 = vmatprep.subr.bf16.mxu1 %v7235_v8 }
  0xc7   : > { %6210 = vmatpush3.bf16.msra.mxu1 %v7600_v44 }
  0xc8   : > { %6211 = vmatprep.subr.bf16.mxu1 %v7235_v8 }
  0xcb   : > { %6213 = vmatpush3.bf16.msra.mxu1 %v7611_v51 }
  0xcc   : > { %6214 = vmatprep.subr.bf16.mxu1 %v7235_v8 }
  0xcf   : > { %6216 = vmatpush3.bf16.msra.mxu1 %v7620_v54 }
  0xd0   : > { %6217 = vmatprep.subr.bf16.mxu1 %v7235_v8 }
  0xd3   : > { %6219 = vmatpush3.bf16.msra.mxu1 %v7630_v57 }
  0xd4   : > { %6248 = vmatprep.subr.bf16.mxu1 %v7235_v8 }
 0x121   : > { %v7544_v24 = vpop.permute.xlu0 %599 }
 0x122   : > { %v603_v25 = vsel %vm602_vm1, %v7542_v23, %v7544_v24 }
 0x123   : > { %5529 = vmatmul.mubr.msk.f32.vlgmr.msra.gmra.mrb[0].mxu0 %vm619_vm2, %v603_v25  ;;  %v891_v25 = vld [vmem:[%s9042_s7 + $0x38] sm:$0xff] }
 0x124   : > { %5582 = vmatprep.mubr.msk.f32.mxu0 %vm7236_vm0, %v7237_v9  ;;  %6222 = vmatpush3.bf16.msra.mxu0 %v7650_v0 }
 0x125   : > { %6223 = vmatprep.subr.bf16.mxu0 %v7235_v8 }
 0x128   : > { %6225 = vmatpush3.bf16.msra.mxu0 %v7656_v2 }
 0x129   : > { %6226 = vmatprep.subr.bf16.mxu0 %v7235_v8 }
 0x12c   : > { %6228 = vmatpush3.bf16.msra.mxu0 %v7666_v5 }
 0x12d   : > { %6229 = vmatprep.subr.bf16.mxu0 %v7235_v8 }
 0x130   : > { %6231 = vmatpush3.bf16.msra.mxu0 %v7676_v10 }
 0x131   : > { %6233 = vmatprep.subr.bf16.mxu0 %v7686_v14 }
 0x1f6   : > { %v689_v27 = vpop.f32.mrb[0].mxu0 }
 0x1f7   : > { %v690_v28 = vadd.f32 %v7552_v26, %v689_v27  ;;  %v5530_v29 = vpop.f32.mrb[1].mxu0  ;;  %v7702_v27 = vpack.c.bf16 %v886_v20, %v884_v18 }
 0x1f8   : > { %v7704_v29 = vpack.c.bf16 %v891_v25, %v889_v21 }
 0x1f9   : > { %693 = vmax.xlane.f32.xlu0 %v690_v28 }
 0x286   : > { %v694_v45 = vpop.xlane.xlu0 %693 }
 0x287   : > { %v695_v46 = vsub.f32 %v690_v28, %v694_v45  ;;  %v899_v45 = vld [vmem:[%s9042_s7 + $0x78] sm:$0xff] }
 0x289   : > { %v696_v47 = vmul.f32 1.442695, %v695_v46  ;;  %v7745_v46 = vpack.c.bf16 %v899_v45, %v897_v43 }
 0x28b   : > { %6837 = vpow2.f32 %v696_v47  ;;  %v896_v47 = vld [vmem:[%s9042_s7 + $0x60] sm:$0xff] }
 0x295   : > { %v6838_v48 = vpop.eup %6837 }
 0x296   : > { %698 = vadd.xlane.f32.xlu1 %v6838_v48 }
 0x323   : > { %v699_v58 = vpop.xlane.xlu1 %698 }
 0x324   : > { %6839 = vrcp.f32 %v699_v58 }
 0x32e   : > { %v6840_v59 = vpop.eup %6839 }
 0x32f   : > { %v701_v60 = vmul.f32 %v6840_v59, %v6838_v48  ;;  %v898_v48 = vld [vmem:[%s9042_s7 + $0x70] sm:$0xff]  ;;  %v902_v59 = vlaneseq }
 0x330   : > { %v7753_v49 = vpack.c.bf16 %v898_v48, %v896_v47 }
 0x331   : > { %702 = vst [vmem:[%s7636_s17] sm:$0xff] %v701_v60  ;;  %5564 = vmatmul.mubr.f32.vlgmr.msra.gmra.mrb[0].mxu1 %v701_v60  ;;  %v903_v60 = vshrl.u32 %v902_v59, 7 }
 0x332   : > { %5593 = vmatprep.mubr.msk.f32.mxu1 %vm7236_vm0, %v7237_v9 }
 0x333   : > { %v7782_v61 = vsub.s32 0, %v903_v60  ;;  %v7788_v1 = vsub.s32 1, %v903_v60 }
 0x335   : > { %v905_v63 = vrot.slane %v900_v62, %v7782_v61  ;;  %v909_v6 = vrot.slane %v900_v62, %v7788_v1 }
 0x404   : > { %v785_v15 = vpop.f32.mrb[0].mxu1 }
 0x405   : > { %790 = vrot.lane.b32.xlu1 %v785_v15, %s7238_s19  ;;  %v5565_v17 = vpop.f32.mrb[1].mxu1 }
 0x477   : > { %v791_v28 = vpop.permute.xlu1 %790 }
 0x478   : > { %v793_v32 = vsel %vm602_vm1, %v7542_v23, %v791_v28  ;;  %v892_v23 = vld [vmem:[%s9042_s7 + $0x40] sm:$0xff] }
 0x479   : > { %5583 = vmatmul.mubr.msk.f32.vlgmr.msra.gmra.mrb[2].mxu0 %vm619_vm2, %v793_v32  ;;  %v7735_v42 = vpack.c.bf16 %v894_v40, %v892_v23  ;;  %v1031_v32 = vld [vmem:[%s9098_s21] sm:$0xff]  ;;  %v1034_v40 = vld [vmem:[%s9098_s21 + $0x18] sm:$0xff] }
 0x47a   : > { %6235 = vmatpush1.bf16.msra.mxu0 %v7702_v27  ;;  %979 = vmatprep.mubr.f32.mxu0 %v7237_v9  ;;  %v7804_v23 = vpack.c.bf16 %v1032_v34, %v1031_v32  ;;  %v7810_v43 = vpack.c.bf16 %v1034_v40, %v1033_v36 }
 0x47b   : > { %6237 = vmatprep.subr.bf16.mxu0 %v7704_v29 }
 0x47c   : > { %6250 = vmatpush3.bf16.msra.mxu1 %v7804_v23 }
 0x47d   : > { %6251 = vmatprep.subr.bf16.mxu1 %v7235_v8 }
 0x47e   : > { %6239 = vmatpush1.bf16.msra.mxu0 %v7722_v37 }
 0x47f   : > { %6241 = vmatprep.subr.bf16.mxu0 %v7726_v39 }
 0x480   : > { %6253 = vmatpush3.bf16.msra.mxu1 %v7810_v43 }
 0x481   : > { %6254 = vmatprep.subr.bf16.mxu1 %v7235_v8 }
 0x482   : > { %6243 = vmatpush1.bf16.msra.mxu0 %v7735_v42 }
 0x483   : > { %6245 = vmatprep.subr.bf16.mxu0 %v7745_v46 }
 0x486   : > { %6247 = vmatpush1.bf16.msra.mxu0 %v7753_v49 }
 0x487   : > { %6266 = vmatprep.subr.bf16.mxu0 %v7235_v8 }
 0x54c   : > { %v878_v52 = vpop.f32.mrb[2].mxu0 }
 0x54d   : > { %v879_v53 = vadd.f32 %v7758_v50, %v878_v52  ;;  %v5584_v55 = vpop.f32.mrb[3].mxu0 }
 0x54f   : > { %v882_v56 = vmax.f32 %v879_v53, 0.0 }
 0x551   : > { %v883_v58 = vsel %vm602_vm1, %v882_v56, %v7544_v24 }
 0x552   : > { %5088 = vmatmul.mubr.msk.f32.vlgmr.msra.gmra.mrb[4].mxu0 %vm619_vm2, %v883_v58 }
 0x553   : > { %6268 = vmatpush3.bf16.msra.mxu0 %v7564_v33  ;;  %5647 = vmatprep.mubr.msk.f32.mxu0 %vm7236_vm0, %v7237_v9 }
 0x554   : > { %6269 = vmatprep.subr.bf16.mxu0 %v7235_v8 }
 0x557   : > { %6271 = vmatpush3.bf16.msra.mxu0 %v7570_v35 }
 0x558   : > { %6272 = vmatprep.subr.bf16.mxu0 %v7235_v8 }
 0x55b   : > { %6274 = vmatpush3.bf16.msra.mxu0 %v7580_v38 }
 0x55c   : > { %6275 = vmatprep.subr.bf16.mxu0 %v7235_v8 }
 0x55f   : > { %6277 = vmatpush3.bf16.msra.mxu0 %v7590_v41 }
 0x560   : > { %6278 = vmatprep.subr.bf16.mxu0 %v7235_v8 }
 0x563   : > { %6280 = vmatpush3.bf16.msra.mxu0 %v7600_v44 }
 0x564   : > { %6281 = vmatprep.subr.bf16.mxu0 %v7235_v8 }
 0x567   : > { %6283 = vmatpush3.bf16.msra.mxu0 %v7611_v51 }
 0x568   : > { %6284 = vmatprep.subr.bf16.mxu0 %v7235_v8 }
 0x56b   : > { %6286 = vmatpush3.bf16.msra.mxu0 %v7620_v54 }
 0x56c   : > { %6287 = vmatprep.subr.bf16.mxu0 %v7235_v8 }
 0x56f   : > { %6289 = vmatpush3.bf16.msra.mxu0 %v7630_v57 }
 0x570   : > { %6318 = vmatprep.subr.bf16.mxu0 %v7235_v8 }
 0x625   : > { %v981_v3 = vpop.f32.mrb[4].mxu0 }
 0x626   : > { %v982_v4 = vadd.f32 %v981_v3, %v905_v63  ;;  %v983_v7 = vpop.f32.mrb[5].mxu0 }
 0x627   : > { %v984_v11 = vadd.f32 %v983_v7, %v909_v6 }
 0x628   : > { %987 = vrot.lane.b32.xlu1 %v982_v4, %s7238_s19 }
 0x62c   : > { %1008 = vrot.lane.b32.xlu1 %v984_v11, %s7239_s12 }
 0x69a   : > { %v988_v12 = vpop.permute.xlu1 %987 }
 0x69b   : > { %v990_v15 = vadd.f32 %v988_v12, %v982_v4 }
 0x69d   : > { %v5089_v17 = vmul.f32 -1.442695, %v990_v15 }
 0x69e   : > { %v1009_v25 = vpop.permute.xlu1 %1008 }
 0x69f   : > { %6841 = vpow2.f32 %v5089_v17 }
 0x6a9   : > { %v6842_v18 = vpop.eup %6841 }
 0x6aa   : > { %v994_v20 = vadd.f32 1.0, %v6842_v18 }
 0x6ac   : > { %6843 = vrcp.f32 %v994_v20 }
 0x6b6   : > { %v6844_v21 = vpop.eup %6843 }
 0x6b7   : > { %v1011_v28 = vmul.f32 %v6844_v21, %v1009_v25 }
 0x6b9   : > { %1013 = vrot.lane.b32.xlu1 %v1011_v28, %s7240_s23 }
 0x6bd   : > { %998 = vrot.lane.b32.xlu1 %v984_v11, %s7238_s19 }
 0x72b   : > { %v1014_v30 = vpop.permute.xlu1 %1013 }
 0x72c   : > { %v1016_v31 = vadd.f32 %v1014_v30, %v982_v4 }
 0x72e   : > { %6845 = vtanh.f32 %v1016_v31 }
 0x72f   : > { %v999_v47 = vpop.permute.xlu1 %998 }
 0x730   : > { %v1001_v48 = vadd.f32 %v999_v47, %v982_v4 }
 0x732   : > { %v5090_v52 = vmul.f32 -1.442695, %v1001_v48 }
 0x734   : > { %6847 = vpow2.f32 %v5090_v52 }
 0x738   : > { %v6846_v45 = vpop.eup %6845 }
 0x739   : > { %1020 = vrot.lane.b32.xlu0 %v6846_v45, %s7239_s12 }
 0x73e   : > { %v6848_v53 = vpop.eup %6847 }
 0x73f   : > { %v1005_v55 = vadd.f32 1.0, %v6848_v53 }
 0x741   : > { %6849 = vrcp.f32 %v1005_v55 }
 0x74b   : > { %v6850_v56 = vpop.eup %6849 }
 0x74c   : > { %v1018_v58 = vsub.f32 1.0, %v6850_v56  ;;  %v1024_v62 = vmul.f32 %v6850_v56, %v7544_v24  ;;  %v5093_v24 = vld [vmem:[%s7503_s25 + $0x8] sm:$0xff] }
 0x7ab   : > { %v1021_v59 = vpop.permute.xlu0 %1020 }
 0x7ac   : > { %v1023_v60 = vmul.f32 %v1021_v59, %v1018_v58 }
 0x7ae   : > { %v7817_v63 = vadd.f32 %v1024_v62, %v1023_v60 }
 0x7b0   : > { %1027 = vrot.lane.b32.xlu1 %v7817_v63, %s7239_s12  ;;  %v1130_v4 = vsel %vm602_vm1, %v5093_v24, %v7817_v63 }
 0x822   : > { %v1028_v3 = vpop.permute.xlu1 %1027 }
 0x823   : > { %1030 = vst.msk [vmem:[%s7822_s22] sm:$0xff] %vm602_vm1, %v1028_v3  ;;  %5594 = vmatmul.mubr.msk.f32.vlgmr.msra.gmra.mrb[2].mxu1 %vm602_vm1, %v1028_v3 }
 0x824   : > { %6256 = vmatpush3.bf16.msra.mxu1 %v7525_v13  ;;  %5612 = vmatprep.mubr.msk.f32.mxu1 %vm7236_vm0, %v7237_v9 }
 0x825   : > { %6257 = vmatprep.subr.bf16.mxu1 %v7235_v8 }
 0x828   : > { %6259 = vmatpush3.bf16.msra.mxu1 %v7528_v16 }
 0x829   : > { %6260 = vmatprep.subr.bf16.mxu1 %v7235_v8 }
 0x82c   : > { %6262 = vmatpush3.bf16.msra.mxu1 %v7532_v19 }
 0x82d   : > { %6263 = vmatprep.subr.bf16.mxu1 %v7235_v8 }
 0x830   : > { %6265 = vmatpush3.bf16.msra.mxu1 %v7536_v22 }
 0x831   : > { %6290 = vmatprep.subr.bf16.mxu1 %v7235_v8 }
 0x833   : > { %5613 = vmatmul.mubr.msk.f32.vlgmr.msra.gmra.mrb[4].mxu1 %vm619_vm2, %v1130_v4 }
 0x834   : > { %6292 = vmatpush3.bf16.msra.mxu1 %v7650_v0  ;;  %5666 = vmatprep.mubr.msk.f32.mxu1 %vm7236_vm0, %v7237_v9 }
 0x835   : > { %6293 = vmatprep.subr.bf16.mxu1 %v7235_v8 }
 0x838   : > { %6295 = vmatpush3.bf16.msra.mxu1 %v7656_v2 }
 0x839   : > { %6296 = vmatprep.subr.bf16.mxu1 %v7235_v8 }
 0x83c   : > { %6298 = vmatpush3.bf16.msra.mxu1 %v7666_v5 }
 0x83d   : > { %6299 = vmatprep.subr.bf16.mxu1 %v7235_v8 }
 0x840   : > { %6301 = vmatpush3.bf16.msra.mxu1 %v7676_v10 }
 0x841   : > { %6303 = vmatprep.subr.bf16.mxu1 %v7686_v14 }
 0x8f6   : > { %v7851_v6 = vpop.f32.mrb[2].mxu1 }
 0x8f7   : > { %v5595_v7 = vpop.f32.mrb[3].mxu1 }
 0x906   : > { %v1215_v11 = vpop.f32.mrb[4].mxu1 }
 0x907   : > { %v1216_v12 = vadd.f32 %v7552_v26, %v1215_v11  ;;  %v5614_v15 = vpop.f32.mrb[5].mxu1 }
 0x909   : > { %1219 = vmax.xlane.f32.xlu1 %v1216_v12 }
 0x996   : > { %v1220_v17 = vpop.xlane.xlu1 %1219 }
 0x997   : > { %v1221_v18 = vsub.f32 %v1216_v12, %v1220_v17 }
 0x999   : > { %v1222_v20 = vmul.f32 1.442695, %v1221_v18 }
 0x99b   : > { %6851 = vpow2.f32 %v1222_v20 }
 0x9a5   : > { %v6852_v21 = vpop.eup %6851 }
 0x9a6   : > { %1224 = vadd.xlane.f32.xlu0 %v6852_v21 }
 0xa33   : > { %v1225_v25 = vpop.xlane.xlu0 %1224 }
 0xa34   : > { %6853 = vrcp.f32 %v1225_v25 }
 0xa3e   : > { %v6854_v28 = vpop.eup %6853 }
 0xa3f   : > { %v1227_v30 = vmul.f32 %v6854_v28, %v6852_v21 }
 0xa41   : > { %5096 = vst [vmem:[%s7636_s17 + $0x8] sm:$0xff] %v1227_v30  ;;  %5648 = vmatmul.mubr.f32.vlgmr.msra.gmra.mrb[6].mxu0 %v1227_v30 }
 0xa42   : > { %6320 = vmatpush3.bf16.msra.mxu0 %v7804_v23  ;;  %5677 = vmatprep.mubr.msk.f32.mxu0 %vm7236_vm0, %v7237_v9 }
 0xa43   : > { %6321 = vmatprep.subr.bf16.mxu0 %v7235_v8 }
 0xa46   : > { %6323 = vmatpush3.bf16.msra.mxu0 %v7810_v43 }
 0xa47   : > { %6324 = vmatprep.subr.bf16.mxu0 %v7235_v8 }
 0xb14   : > { %v1312_v31 = vpop.f32.mrb[6].mxu0 }
 0xb15   : > { %1317 = vrot.lane.b32.xlu1 %v1312_v31, %s7238_s19  ;;  %v5649_v32 = vpop.f32.mrb[7].mxu0 }
 0xb87   : > { %v1318_v34 = vpop.permute.xlu1 %1317 }
 0xb88   : > { %v1320_v36 = vsel %vm602_vm1, %v5093_v24, %v1318_v34 }
 0xb89   : > { %5667 = vmatmul.mubr.msk.f32.vlgmr.msra.gmra.mrb[6].mxu1 %vm619_vm2, %v1320_v36 }
 0xb8a   : > { %6305 = vmatpush1.bf16.msra.mxu1 %v7702_v27  ;;  %1506 = vmatprep.mubr.f32.mxu1 %v7237_v9 }
 0xb8b   : > { %6307 = vmatprep.subr.bf16.mxu1 %v7704_v29 }
 0xb8e   : > { %6309 = vmatpush1.bf16.msra.mxu1 %v7722_v37 }
 0xb8f   : > { %6311 = vmatprep.subr.bf16.mxu1 %v7726_v39 }
 0xb92   : > { %6313 = vmatpush1.bf16.msra.mxu1 %v7735_v42 }
 0xb93   : > { %6315 = vmatprep.subr.bf16.mxu1 %v7745_v46 }
 0xb96   : > { %6317 = vmatpush1.bf16.msra.mxu1 %v7753_v49 }
 0xb97   : > { %6336 = vmatprep.subr.bf16.mxu1 %v7235_v8 }
 0xc5c   : > { %v1405_v40 = vpop.f32.mrb[6].mxu1 }
 0xc5d   : > { %v1406_v45 = vadd.f32 %v7758_v50, %v1405_v40  ;;  %v5668_v47 = vpop.f32.mrb[7].mxu1 }
 0xc5f   : > { %v1409_v48 = vmax.f32 %v1406_v45, 0.0 }
 0xc61   : > { %v1410_v52 = vsel %vm602_vm1, %v1409_v48, %v7817_v63 }
 0xc62   : > { %5099 = vmatmul.mubr.msk.f32.vlgmr.msra.gmra.mrb[8].mxu1 %vm619_vm2, %v1410_v52 }
 0xc63   : > { %6338 = vmatpush3.bf16.msra.mxu1 %v7564_v33  ;;  %5731 = vmatprep.mubr.msk.f32.mxu1 %vm7236_vm0, %v7237_v9  ;;  %v1427_v33 = vld [vmem:[%s9043_s8] sm:$0x3] }
 0xc64   : > { %6339 = vmatprep.subr.bf16.mxu1 %v7235_v8 }
 0xc67   : > { %6341 = vmatpush3.bf16.msra.mxu1 %v7570_v35  ;;  %v1432_v35 = vrot.slane %v1427_v33, %v7782_v61 }
 0xc68   : > { %6342 = vmatprep.subr.bf16.mxu1 %v7235_v8 }
 0xc6b   : > { %6344 = vmatpush3.bf16.msra.mxu1 %v7580_v38  ;;  %v1436_v38 = vrot.slane %v1427_v33, %v7788_v1 }
 0xc6c   : > { %6345 = vmatprep.subr.bf16.mxu1 %v7235_v8 }
 0xc6f   : > { %6347 = vmatpush3.bf16.msra.mxu1 %v7590_v41 }
 0xc70   : > { %6348 = vmatprep.subr.bf16.mxu1 %v7235_v8 }
 0xc73   : > { %6350 = vmatpush3.bf16.msra.mxu1 %v7600_v44 }
 0xc74   : > { %6351 = vmatprep.subr.bf16.mxu1 %v7235_v8 }
 0xc77   : > { %6353 = vmatpush3.bf16.msra.mxu1 %v7611_v51 }
 0xc78   : > { %6354 = vmatprep.subr.bf16.mxu1 %v7235_v8 }
 0xc7b   : > { %6356 = vmatpush3.bf16.msra.mxu1 %v7620_v54 }
 0xc7c   : > { %6357 = vmatprep.subr.bf16.mxu1 %v7235_v8 }
 0xc7f   : > { %6359 = vmatpush3.bf16.msra.mxu1 %v7630_v57 }
 0xc80   : > { %6388 = vmatprep.subr.bf16.mxu1 %v7235_v8 }
 0xd35   : > { %v1508_v41 = vpop.f32.mrb[8].mxu1 }
 0xd36   : > { %v1509_v44 = vadd.f32 %v1508_v41, %v1432_v35  ;;  %v1510_v51 = vpop.f32.mrb[9].mxu1 }
 0xd37   : > { %v1511_v53 = vadd.f32 %v1510_v51, %v1436_v38 }
 0xd38   : > { %1514 = vrot.lane.b32.xlu0 %v1509_v44, %s7238_s19 }
 0xd39   : > { %1535 = vrot.lane.b32.xlu1 %v1511_v53, %s7239_s12 }
 0xdaa   : > { %v1515_v54 = vpop.permute.xlu0 %1514 }
 0xdab   : > { %v1517_v57 = vadd.f32 %v1515_v54, %v1509_v44  ;;  %v1536_v60 = vpop.permute.xlu1 %1535 }
 0xdad   : > { %v5100_v55 = vmul.f32 -1.442695, %v1517_v57 }
 0xdaf   : > { %6855 = vpow2.f32 %v5100_v55 }
 0xdb9   : > { %v6856_v56 = vpop.eup %6855 }
 0xdba   : > { %v1521_v58 = vadd.f32 1.0, %v6856_v56 }
 0xdbc   : > { %6857 = vrcp.f32 %v1521_v58 }
 0xdc6   : > { %v6858_v59 = vpop.eup %6857 }
 0xdc7   : > { %v1538_v62 = vmul.f32 %v6858_v59, %v1536_v60 }
 0xdc9   : > { %1540 = vrot.lane.b32.xlu1 %v1538_v62, %s7240_s23 }
 0xdcd   : > { %1525 = vrot.lane.b32.xlu1 %v1511_v53, %s7238_s19 }
 0xe3b   : > { %v1541_v3 = vpop.permute.xlu1 %1540 }
 0xe3c   : > { %v1543_v24 = vadd.f32 %v1541_v3, %v1509_v44 }
 0xe3e   : > { %6859 = vtanh.f32 %v1543_v24 }
 0xe3f   : > { %v1526_v7 = vpop.permute.xlu1 %1525 }
 0xe40   : > { %v1528_v11 = vadd.f32 %v1526_v7, %v1509_v44 }
 0xe42   : > { %v5101_v12 = vmul.f32 -1.442695, %v1528_v11 }
 0xe44   : > { %6861 = vpow2.f32 %v5101_v12 }
 0xe48   : > { %v6860_v4 = vpop.eup %6859 }
 0xe49   : > { %1547 = vrot.lane.b32.xlu1 %v6860_v4, %s7239_s12 }
 0xe4e   : > { %v6862_v15 = vpop.eup %6861 }
 0xe4f   : > { %v1532_v17 = vadd.f32 1.0, %v6862_v15 }
 0xe51   : > { %6863 = vrcp.f32 %v1532_v17 }
 0xe5b   : > { %v6864_v18 = vpop.eup %6863 }
 0xe5c   : > { %v1545_v20 = vsub.f32 1.0, %v6864_v18  ;;  %v1551_v25 = vmul.f32 %v6864_v18, %v7817_v63  ;;  %v5106_v63 = vld [vmem:[%s7503_s25 + $0x10] sm:$0xff] }
 0xe5d   : > { %v2189_v18 = vld [vmem:[#allocation6] sm:$0xff] }
 0xebb   : > { %v1548_v21 = vpop.permute.xlu1 %1547 }
 0xebc   : > { %v1550_v28 = vmul.f32 %v1548_v21, %v1545_v20  ;;  %v2190_v20 = vld [vmem:[#allocation6 + $0x8] sm:$0xff] }
 0xebd   : > { %v7980_v21 = vpack.c.bf16 %v2190_v20, %v2189_v18  ;;  %v2383_v20 = vld [vmem:[%s9040_s5 + $0x20] sm:$0xff] }
 0xebe   : > { %v7906_v30 = vadd.f32 %v1551_v25, %v1550_v28  ;;  %v2191_v25 = vld [vmem:[#allocation6 + $0x10] sm:$0xff]  ;;  %v2192_v28 = vld [vmem:[#allocation6 + $0x18] sm:$0xff] }
 0xec0   : > { %1554 = vrot.lane.b32.xlu0 %v7906_v30, %s7239_s12 }
 0xf32   : > { %v1555_v31 = vpop.permute.xlu0 %1554 }
 0xf33   : > { %5102 = vst.msk [vmem:[%s7822_s22 + $0x8] sm:$0xff] %vm602_vm1, %v1555_v31  ;;  %5678 = vmatmul.mubr.msk.f32.vlgmr.msra.gmra.mrb[8].mxu0 %vm602_vm1, %v1555_v31 }
 0xf34   : > { %6326 = vmatpush3.bf16.msra.mxu0 %v7525_v13  ;;  %5696 = vmatprep.mubr.msk.f32.mxu0 %vm7236_vm0, %v7237_v9  ;;  %v1659_v13 = vsel %vm602_vm1, %v5106_v63, %v7906_v30 }
 0xf35   : > { %6327 = vmatprep.subr.bf16.mxu0 %v7235_v8 }
 0xf38   : > { %6329 = vmatpush3.bf16.msra.mxu0 %v7528_v16 }
 0xf39   : > { %6330 = vmatprep.subr.bf16.mxu0 %v7235_v8 }
 0xf3c   : > { %6332 = vmatpush3.bf16.msra.mxu0 %v7532_v19 }
 0xf3d   : > { %6333 = vmatprep.subr.bf16.mxu0 %v7235_v8 }
 0xf40   : > { %6335 = vmatpush3.bf16.msra.mxu0 %v7536_v22 }
 0xf41   : > { %6360 = vmatprep.subr.bf16.mxu0 %v7235_v8 }
 0xf43   : > { %5697 = vmatmul.mubr.msk.f32.vlgmr.msra.gmra.mrb[10].mxu0 %vm619_vm2, %v1659_v13  ;;  %v2194_v13 = vld [vmem:[#allocation6 + $0x28] sm:$0xff] }
 0xf44   : > { %6362 = vmatpush3.bf16.msra.mxu0 %v7650_v0  ;;  %5750 = vmatprep.mubr.msk.f32.mxu0 %vm7236_vm0, %v7237_v9 }
 0xf45   : > { %6363 = vmatprep.subr.bf16.mxu0 %v7235_v8 }
 0xf48   : > { %6365 = vmatpush3.bf16.msra.mxu0 %v7656_v2 }
 0xf49   : > { %6366 = vmatprep.subr.bf16.mxu0 %v7235_v8 }
 0xf4c   : > { %6368 = vmatpush3.bf16.msra.mxu0 %v7666_v5 }
 0xf4d   : > { %6369 = vmatprep.subr.bf16.mxu0 %v7235_v8 }
 0xf50   : > { %6371 = vmatpush3.bf16.msra.mxu0 %v7676_v10 }
 0xf51   : > { %6373 = vmatprep.subr.bf16.mxu0 %v7686_v14 }
0x1006   : > { %v7937_v16 = vpop.f32.mrb[8].mxu0 }
0x1007   : > { %v5679_v19 = vpop.f32.mrb[9].mxu0 }
0x1016   : > { %v1744_v22 = vpop.f32.mrb[10].mxu0 }
0x1017   : > { %v1745_v0 = vadd.f32 %v7552_v26, %v1744_v22  ;;  %v5698_v32 = vpop.f32.mrb[11].mxu0  ;;  %v2195_v22 = vld [vmem:[#allocation6 + $0x30] sm:$0xff] }
0x1019   : > { %1748 = vmax.xlane.f32.xlu1 %v1745_v0 }
0x10a6   : > { %v1749_v2 = vpop.xlane.xlu1 %1748 }
0x10a7   : > { %v1750_v34 = vsub.f32 %v1745_v0, %v1749_v2  ;;  %v2196_v0 = vld [vmem:[#allocation6 + $0x38] sm:$0xff]  ;;  %v8000_v2 = vld [vmem:[%s7503_s25 + $0x18] sm:$0xff] }
0x10a8   : > { %v7996_v32 = vpack.c.bf16 %v2196_v0, %v2195_v22  ;;  %v2470_v22 = vld [vmem:[%s9042_s7 + $0x8] sm:$0xff]  ;;  %v2472_v0 = vld [vmem:[%s9042_s7 + $0x18] sm:$0xff] }
0x10a9   : > { %v1751_v36 = vmul.f32 1.442695, %v1750_v34 }
0x10ab   : > { %6865 = vpow2.f32 %v1751_v36 }
0x10b5   : > { %v6866_v5 = vpop.eup %6865 }
0x10b6   : > { %1753 = vadd.xlane.f32.xlu0 %v6866_v5 }
0x1143   : > { %v1754_v40 = vpop.xlane.xlu0 %1753 }
0x1144   : > { %6867 = vrcp.f32 %v1754_v40  ;;  %v8012_v40 = vld [vmem:[#allocation8] ss:$0 sm:$0xff] }
0x114e   : > { %v6868_v10 = vpop.eup %6867 }
0x114f   : > { %v1756_v45 = vmul.f32 %v6868_v10, %v6866_v5 }
0x1151   : > { %5109 = vst [vmem:[%s7636_s17 + $0x10] sm:$0xff] %v1756_v45  ;;  %5732 = vmatmul.mubr.f32.vlgmr.msra.gmra.mrb[10].mxu1 %v1756_v45 }
0x1152   : > { %6390 = vmatpush3.bf16.msra.mxu1 %v7804_v23  ;;  %5761 = vmatprep.mubr.msk.f32.mxu1 %vm7236_vm0, %v7237_v9 }
0x1153   : > { %6391 = vmatprep.subr.bf16.mxu1 %v7235_v8 }
0x1156   : > { %6393 = vmatpush3.bf16.msra.mxu1 %v7810_v43 }
0x1157   : > { %6394 = vmatprep.subr.bf16.mxu1 %v7235_v8 }
0x1224   : > { %v1841_v26 = vpop.f32.mrb[10].mxu1 }
0x1225   : > { %1846 = vrot.lane.b32.xlu0 %v1841_v26, %s7238_s19  ;;  %v5733_v14 = vpop.f32.mrb[11].mxu1 }
0x1226   : > { %v2288_v14 = vld [vmem:[%s9097_s2] sm:$0xff] }
0x1297   : > { %v1847_v47 = vpop.permute.xlu0 %1846 }
0x1298   : > { %v1849_v48 = vsel %vm602_vm1, %v5106_v63, %v1847_v47  ;;  %v2193_v63 = vld [vmem:[#allocation6 + $0x20] sm:$0xff]  ;;  %v2289_v47 = vld [vmem:[%s9097_s2 + $0x8] sm:$0xff] }
0x1299   : > { %5751 = vmatmul.mubr.msk.f32.vlgmr.msra.gmra.mrb[12].mxu0 %vm619_vm2, %v1849_v48  ;;  %v7992_v19 = vpack.c.bf16 %v2194_v13, %v2193_v63  ;;  %v2290_v48 = vld [vmem:[%s9097_s2 + $0x10] sm:$0xff]  ;;  %v2386_v63 = vld [vmem:[%s9040_s5 + $0x38] sm:$0xff] }
0x129a   : > { %6375 = vmatpush1.bf16.msra.mxu0 %v7702_v27  ;;  %2035 = vmatprep.mubr.f32.mxu0 %v7237_v9 }
0x129b   : > { %6377 = vmatprep.subr.bf16.mxu0 %v7704_v29 }
0x129e   : > { %6379 = vmatpush1.bf16.msra.mxu0 %v7722_v37  ;;  %v1956_v37 = vld [vmem:[%s9043_s8] sm:$0x3] }
0x129f   : > { %6381 = vmatprep.subr.bf16.mxu0 %v7726_v39  ;;  %v1961_v39 = vrot.slane %v1956_v37, %v7782_v61 }
0x12a2   : > { %6383 = vmatpush1.bf16.msra.mxu0 %v7735_v42 }
0x12a3   : > { %6385 = vmatprep.subr.bf16.mxu0 %v7745_v46 }
0x12a6   : > { %6387 = vmatpush1.bf16.msra.mxu0 %v7753_v49  ;;  %v1965_v49 = vrot.slane %v1956_v37, %v7788_v1 }
0x12a7   : > { %6406 = vmatprep.subr.bf16.mxu0 %v7235_v8 }
0x136c   : > { %v1934_v23 = vpop.f32.mrb[12].mxu0 }
0x136d   : > { %v1935_v43 = vadd.f32 %v7758_v50, %v1934_v23  ;;  %v5752_v27 = vpop.f32.mrb[13].mxu0  ;;  %v8024_v23 = vpack.c.bf16 %v2289_v47, %v2288_v14  ;;  %v2474_v14 = vld [vmem:[%s9042_s7 + $0x28] sm:$0xff]  ;;  %v2476_v47 = vld [vmem:[%s9042_s7 + $0x38] sm:$0xff] }
0x136f   : > { %v1938_v52 = vmax.f32 %v1935_v43, 0.0  ;;  %v2291_v43 = vld [vmem:[%s9097_s2 + $0x18] sm:$0xff] }
0x1370   : > { %v8030_v27 = vpack.c.bf16 %v2291_v43, %v2290_v48 }
0x1371   : > { %v1939_v29 = vsel %vm602_vm1, %v1938_v52, %v7906_v30  ;;  %v2292_v52 = vld [vmem:[%s9097_s2 + $0x20] sm:$0xff] }
0x1372   : > { %5112 = vmatmul.mubr.msk.f32.vlgmr.msra.gmra.mrb[14].mxu0 %vm619_vm2, %v1939_v29  ;;  %v2293_v29 = vld [vmem:[%s9097_s2 + $0x28] sm:$0xff] }
0x1373   : > { %5815 = vmatprep.mubr.msk.f32.mxu0 %vm7236_vm0, %v7237_v9  ;;  %6408 = vmatpush3.bf16.msra.mxu0 %v8024_v23  ;;  %v8040_v37 = vpack.c.bf16 %v2293_v29, %v2292_v52  ;;  %v8161_v52 = vpack.c.bf16 %v2476_v47, %v2474_v14  ;;  %v2473_v29 = vld [vmem:[%s9042_s7 + $0x20] sm:$0xff] }
0x1374   : > { %6409 = vmatprep.subr.bf16.mxu0 %v7235_v8 }
0x1377   : > { %6411 = vmatpush3.bf16.msra.mxu0 %v8030_v27 }
0x1378   : > { %6412 = vmatprep.subr.bf16.mxu0 %v7235_v8 }
0x137b   : > { %6414 = vmatpush3.bf16.msra.mxu0 %v8040_v37 }
0x137c   : > { %6415 = vmatprep.subr.bf16.mxu0 %v7235_v8 }
0x1445   : > { %v2037_v42 = vpop.f32.mrb[14].mxu0 }
0x1446   : > { %v2038_v46 = vadd.f32 %v2037_v42, %v1961_v39  ;;  %v2039_v50 = vpop.f32.mrb[15].mxu0  ;;  %v2294_v39 = vld [vmem:[%s9097_s2 + $0x30] sm:$0xff]  ;;  %v2295_v42 = vld [vmem:[%s9097_s2 + $0x38] sm:$0xff] }
0x1447   : > { %v2040_v33 = vadd.f32 %v2039_v50, %v1965_v49  ;;  %v2296_v49 = vld [vmem:[%s9097_s2 + $0x40] sm:$0xff]  ;;  %v2297_v50 = vld [vmem:[%s9097_s2 + $0x48] sm:$0xff] }
0x1448   : > { %2043 = vrot.lane.b32.xlu1 %v2038_v46, %s7238_s19 }
0x144c   : > { %2064 = vrot.lane.b32.xlu1 %v2040_v33, %s7239_s12 }
0x1450   : > { %2054 = vrot.lane.b32.xlu1 %v2040_v33, %s7238_s19  ;;  %v8060_v33 = vpack.c.bf16 %v2297_v50, %v2296_v49  ;;  %v2478_v49 = vld [vmem:[%s9042_s7 + $0x48] sm:$0xff]  ;;  %v2480_v50 = vld [vmem:[%s9042_s7 + $0x58] sm:$0xff] }
0x14ba   : > { %v2044_v35 = vpop.permute.xlu1 %2043 }
0x14bb   : > { %v2046_v38 = vadd.f32 %v2044_v35, %v2038_v46 }
0x14bd   : > { %v5113_v41 = vmul.f32 -1.442695, %v2046_v38 }
0x14be   : > { %v2065_v54 = vpop.permute.xlu1 %2064 }
0x14bf   : > { %6869 = vpow2.f32 %v5113_v41 }
0x14c2   : > { %v2055_v59 = vpop.permute.xlu1 %2054 }
0x14c3   : > { %v2057_v60 = vadd.f32 %v2055_v59, %v2038_v46  ;;  %v2303_v59 = vld [vmem:[%s9097_s2 + $0x78] sm:$0xff] }
0x14c5   : > { %v5114_v62 = vmul.f32 -1.442695, %v2057_v60 }
0x14c9   : > { %v6870_v44 = vpop.eup %6869 }
0x14ca   : > { %v2050_v51 = vadd.f32 1.0, %v6870_v44 }
0x14cc   : > { %6871 = vrcp.f32 %v2050_v51  ;;  %v2298_v51 = vld [vmem:[%s9097_s2 + $0x50] sm:$0xff] }
0x14d6   : > { %v6872_v53 = vpop.eup %6871 }
0x14d7   : > { %v2067_v57 = vmul.f32 %v6872_v53, %v2065_v54  ;;  %v2299_v53 = vld [vmem:[%s9097_s2 + $0x58] sm:$0xff] }
0x14d8   : > { %v8071_v54 = vpack.c.bf16 %v2299_v53, %v2298_v51  ;;  %v2482_v51 = vld [vmem:[%s9042_s7 + $0x68] sm:$0xff]  ;;  %v2484_v53 = vld [vmem:[%s9042_s7 + $0x78] sm:$0xff] }
0x14d9   : > { %2069 = vrot.lane.b32.xlu0 %v2067_v57, %s7240_s23  ;;  %v2300_v57 = vld [vmem:[%s9097_s2 + $0x60] sm:$0xff] }
0x154b   : > { %v2070_v55 = vpop.permute.xlu0 %2069 }
0x154c   : > { %v2072_v56 = vadd.f32 %v2070_v55, %v2038_v46  ;;  %v8050_v46 = vpack.c.bf16 %v2295_v42, %v2294_v39  ;;  %v2301_v55 = vld [vmem:[%s9097_s2 + $0x68] sm:$0xff]  ;;  %v2475_v39 = vld [vmem:[%s9042_s7 + $0x30] sm:$0xff] }
0x154e   : > { %6873 = vtanh.f32 %v2072_v56  ;;  %6417 = vmatpush3.bf16.msra.mxu0 %v8050_v46  ;;  %v8080_v56 = vpack.c.bf16 %v2301_v55, %v2300_v57  ;;  %v8202_v57 = vpack.c.bf16 %v2484_v53, %v2482_v51  ;;  %v2481_v55 = vld [vmem:[%s9042_s7 + $0x60] sm:$0xff]  ;;  %v2620_v51 = vld [vmem:[%s9098_s21 + $0x18] sm:$0xff] }
0x154f   : > { %6875 = vpow2.f32 %v5114_v62  ;;  %6418 = vmatprep.subr.bf16.mxu0 %v7235_v8 }
0x1552   : > { %6420 = vmatpush3.bf16.msra.mxu0 %v8060_v33 }
0x1553   : > { %6421 = vmatprep.subr.bf16.mxu0 %v7235_v8 }
0x1556   : > { %6423 = vmatpush3.bf16.msra.mxu0 %v8071_v54 }
0x1557   : > { %6424 = vmatprep.subr.bf16.mxu0 %v7235_v8 }
0x1558   : > { %v6874_v58 = vpop.eup %6873 }
0x1559   : > { %2076 = vrot.lane.b32.xlu0 %v6874_v58, %s7239_s12  ;;  %v6876_v3 = vpop.eup %6875  ;;  %v2302_v58 = vld [vmem:[%s9097_s2 + $0x70] sm:$0xff] }
0x155a   : > { %v2061_v24 = vadd.f32 1.0, %v6876_v3  ;;  %6426 = vmatpush3.bf16.msra.mxu0 %v8080_v56  ;;  %v8090_v60 = vpack.c.bf16 %v2303_v59, %v2302_v58  ;;  %v2483_v58 = vld [vmem:[%s9042_s7 + $0x70] sm:$0xff] }
0x155b   : > { %6427 = vmatprep.subr.bf16.mxu0 %v7235_v8  ;;  %v8210_v59 = vpack.c.bf16 %v2483_v58, %v2481_v55 }
0x155c   : > { %6877 = vrcp.f32 %v2061_v24 }
0x155e   : > { %6429 = vmatpush3.bf16.msra.mxu0 %v8090_v60 }
0x155f   : > { %6458 = vmatprep.subr.bf16.mxu0 %v7235_v8 }
0x1566   : > { %v6878_v4 = vpop.eup %6877 }
0x1567   : > { %v2074_v7 = vsub.f32 1.0, %v6878_v4  ;;  %v2080_v15 = vmul.f32 %v6878_v4, %v7906_v30  ;;  %v7986_v30 = vpack.c.bf16 %v2192_v28, %v2191_v25  ;;  %v2379_v4 = vld [vmem:[%s9040_s5] sm:$0xff]  ;;  %v2384_v25 = vld [vmem:[%s9040_s5 + $0x28] sm:$0xff] }
0x1568   : > { %v8123_v28 = vpack.c.bf16 %v2384_v25, %v2383_v20 }
0x15cb   : > { %v2077_v11 = vpop.permute.xlu0 %2076 }
0x15cc   : > { %v2079_v12 = vmul.f32 %v2077_v11, %v2074_v7  ;;  %v2380_v7 = vld [vmem:[%s9040_s5 + $0x8] sm:$0xff]  ;;  %v2381_v11 = vld [vmem:[%s9040_s5 + $0x10] sm:$0xff] }
0x15ce   : > { %v7976_v17 = vadd.f32 %v2080_v15, %v2079_v12  ;;  %v8107_v12 = vpack.c.bf16 %v2380_v7, %v2379_v4  ;;  %v2382_v15 = vld [vmem:[%s9040_s5 + $0x18] sm:$0xff] }
0x15cf   : > { %v8113_v18 = vpack.c.bf16 %v2382_v15, %v2381_v11  ;;  %v2485_v15 = vld [vmem:[%s9043_s8] sm:$0x3] }
0x15d0   : > { %2083 = vrot.lane.b32.xlu1 %v7976_v17, %s7239_s12  ;;  %v2188_v34 = vsel %vm602_vm1, %v8000_v2, %v7976_v17  ;;  %v2490_v20 = vrot.slane %v2485_v15, %v7782_v61  ;;  %v2494_v25 = vrot.slane %v2485_v15, %v7788_v1 }
0x1642   : > { %v2084_v31 = vpop.permute.xlu1 %2083 }
0x1643   : > { %5115 = vst.msk [vmem:[%s7822_s22 + $0x10] sm:$0xff] %vm602_vm1, %v2084_v31  ;;  %5762 = vmatmul.mubr.msk.f32.vlgmr.msra.gmra.mrb[12].mxu1 %vm602_vm1, %v2084_v31  ;;  %v2385_v31 = vld [vmem:[%s9040_s5 + $0x30] sm:$0xff] }
0x1644   : > { %6396 = vmatpush3.bf16.msra.mxu1 %v7980_v21  ;;  %5780 = vmatprep.mubr.msk.f32.mxu1 %vm7236_vm0, %v7237_v9  ;;  %v8133_v13 = vpack.c.bf16 %v2386_v63, %v2385_v31 }
0x1645   : > { %6397 = vmatprep.subr.bf16.mxu1 %v7235_v8 }
0x1648   : > { %6399 = vmatpush3.bf16.msra.mxu1 %v7986_v30 }
0x1649   : > { %6400 = vmatprep.subr.bf16.mxu1 %v7235_v8 }
0x164c   : > { %6402 = vmatpush3.bf16.msra.mxu1 %v7992_v19 }
0x164d   : > { %6403 = vmatprep.subr.bf16.mxu1 %v7235_v8 }
0x1650   : > { %6405 = vmatpush3.bf16.msra.mxu1 %v7996_v32 }
0x1651   : > { %6430 = vmatprep.subr.bf16.mxu1 %v7235_v8 }
0x1653   : > { %5781 = vmatmul.mubr.msk.f32.vlgmr.msra.gmra.mrb[14].mxu1 %vm619_vm2, %v2188_v34  ;;  %v8143_v34 = vpack.c.bf16 %v2472_v0, %v2470_v22 }
0x1654   : > { %5834 = vmatprep.mubr.msk.f32.mxu1 %vm7236_vm0, %v7237_v9  ;;  %6432 = vmatpush3.bf16.msra.mxu1 %v8107_v12 }
0x1655   : > { %6433 = vmatprep.subr.bf16.mxu1 %v7235_v8 }
0x1658   : > { %6435 = vmatpush3.bf16.msra.mxu1 %v8113_v18 }
0x1659   : > { %6436 = vmatprep.subr.bf16.mxu1 %v7235_v8 }
0x165c   : > { %6438 = vmatpush3.bf16.msra.mxu1 %v8123_v28 }
0x165d   : > { %6439 = vmatprep.subr.bf16.mxu1 %v7235_v8 }
0x1660   : > { %6441 = vmatpush3.bf16.msra.mxu1 %v8133_v13 }
0x1661   : > { %6443 = vmatprep.subr.bf16.mxu1 %v8143_v34 }
0x1716   : > { %v8010_v36 = vpop.f32.mrb[12].mxu1 }
0x1717   : > { %v5763_v5 = vpop.f32.mrb[13].mxu1 }
0x1726   : > { %v2273_v10 = vpop.f32.mrb[14].mxu1 }
0x1727   : > { %v2274_v45 = vadd.f32 %v8012_v40, %v2273_v10  ;;  %v5782_v26 = vpop.f32.mrb[15].mxu1 }
0x1728   : > { %v2471_v26 = vld [vmem:[%s9042_s7 + $0x10] sm:$0xff] }
0x1729   : > { %2277 = vmax.xlane.f32.xlu0 %v2274_v45 }
0x17b6   : > { %v2278_v35 = vpop.xlane.xlu0 %2277 }
0x17b7   : > { %v2279_v38 = vsub.f32 %v2274_v45, %v2278_v35  ;;  %v2469_v45 = vld [vmem:[%s9042_s7] sm:$0xff]  ;;  %v8179_v35 = vpack.c.bf16 %v2475_v39, %v2473_v29 }
0x17b8   : > { %v8159_v48 = vpack.c.bf16 %v2471_v26, %v2469_v45 }
0x17b9   : > { %v2280_v41 = vmul.f32 1.442695, %v2279_v38  ;;  %v8183_v38 = vpack.c.bf16 %v2480_v50, %v2478_v49  ;;  %v2617_v49 = vld [vmem:[%s9098_s21] sm:$0xff]  ;;  %v2618_v50 = vld [vmem:[%s9098_s21 + $0x8] sm:$0xff] }
0x17bb   : > { %6879 = vpow2.f32 %v2280_v41  ;;  %v2479_v41 = vld [vmem:[%s9042_s7 + $0x50] sm:$0xff] }
0x17c5   : > { %v6880_v44 = vpop.eup %6879 }
0x17c6   : > { %2282 = vadd.xlane.f32.xlu1 %v6880_v44 }
0x1853   : > { %v2283_v62 = vpop.xlane.xlu1 %2282 }
0x1854   : > { %6881 = vrcp.f32 %v2283_v62  ;;  %v8215_v62 = vld [vmem:[#allocation9] ss:$0 sm:$0xff] }
0x185e   : > { %v6882_v3 = vpop.eup %6881 }
0x185f   : > { %v2285_v24 = vmul.f32 %v6882_v3, %v6880_v44 }
0x1861   : > { %5122 = vst [vmem:[%s7636_s17 + $0x18] sm:$0xff] %v2285_v24  ;;  %5816 = vmatmul.mubr.f32.vlgmr.msra.gmra.mrb[16].mxu0 %v2285_v24 }
0x1862   : > { %5845 = vmatprep.mubr.msk.f32.mxu0 %vm7236_vm0, %v7237_v9 }
0x1934   : > { %v2370_v5 = vpop.f32.mrb[16].mxu0 }
0x1935   : > { %2375 = vrot.lane.b32.xlu0 %v2370_v5, %s7238_s19  ;;  %v5817_v10 = vpop.f32.mrb[17].mxu0 }
0x19a7   : > { %v2376_v43 = vpop.permute.xlu0 %2375 }
0x19a8   : > { %v2378_v42 = vsel %vm602_vm1, %v8000_v2, %v2376_v43  ;;  %v2477_v2 = vld [vmem:[%s9042_s7 + $0x40] sm:$0xff] }
0x19a9   : > { %5835 = vmatmul.mubr.msk.f32.vlgmr.msra.gmra.mrb[16].mxu1 %vm619_vm2, %v2378_v42  ;;  %v8192_v44 = vpack.c.bf16 %v2479_v41, %v2477_v2  ;;  %v2619_v2 = vld [vmem:[%s9098_s21 + $0x10] sm:$0xff]  ;;  %v8257_v41 = vpack.c.bf16 %v2618_v50, %v2617_v49 }
0x19aa   : > { %6445 = vmatpush1.bf16.msra.mxu1 %v8159_v48  ;;  %2564 = vmatprep.mubr.f32.mxu1 %v7237_v9  ;;  %v8263_v53 = vpack.c.bf16 %v2620_v51, %v2619_v2 }
0x19ab   : > { %6447 = vmatprep.subr.bf16.mxu1 %v8161_v52  ;;  %6460 = vmatpush3.bf16.msra.mxu0 %v8257_v41 }
0x19ac   : > { %6461 = vmatprep.subr.bf16.mxu0 %v7235_v8 }
0x19ae   : > { %6449 = vmatpush1.bf16.msra.mxu1 %v8179_v35 }
0x19af   : > { %6451 = vmatprep.subr.bf16.mxu1 %v8183_v38  ;;  %6463 = vmatpush3.bf16.msra.mxu0 %v8263_v53 }
0x19b0   : > { %6464 = vmatprep.subr.bf16.mxu0 %v7235_v8 }
0x19b2   : > { %6453 = vmatpush1.bf16.msra.mxu1 %v8192_v44 }
0x19b3   : > { %6455 = vmatprep.subr.bf16.mxu1 %v8202_v57 }
0x19b6   : > { %6457 = vmatpush1.bf16.msra.mxu1 %v8210_v59 }
0x19b7   : > { %6476 = vmatprep.subr.bf16.mxu1 %v7235_v8 }
0x1a7c   : > { %v2463_v3 = vpop.f32.mrb[16].mxu1 }
0x1a7d   : > { %v2464_v24 = vadd.f32 %v8215_v62, %v2463_v3  ;;  %v5836_v4 = vpop.f32.mrb[17].mxu1 }
0x1a7f   : > { %v2467_v7 = vmax.f32 %v2464_v24, 0.0 }
0x1a81   : > { %v2468_v11 = vsel %vm602_vm1, %v2467_v7, %v7976_v17 }
0x1a82   : > { %5125 = vmatmul.mubr.msk.f32.vlgmr.msra.gmra.mrb[18].mxu1 %vm619_vm2, %v2468_v11 }
0x1a83   : > { %6478 = vmatpush3.bf16.msra.mxu1 %v8024_v23  ;;  %5899 = vmatprep.mubr.msk.f32.mxu1 %vm7236_vm0, %v7237_v9 }
0x1a84   : > { %6479 = vmatprep.subr.bf16.mxu1 %v7235_v8 }
0x1a87   : > { %6481 = vmatpush3.bf16.msra.mxu1 %v8030_v27 }
0x1a88   : > { %6482 = vmatprep.subr.bf16.mxu1 %v7235_v8 }
0x1a8b   : > { %6484 = vmatpush3.bf16.msra.mxu1 %v8040_v37 }
0x1a8c   : > { %6485 = vmatprep.subr.bf16.mxu1 %v7235_v8 }
0x1a8f   : > { %6487 = vmatpush3.bf16.msra.mxu1 %v8050_v46 }
0x1a90   : > { %6488 = vmatprep.subr.bf16.mxu1 %v7235_v8 }
0x1a93   : > { %6490 = vmatpush3.bf16.msra.mxu1 %v8060_v33 }
0x1a94   : > { %6491 = vmatprep.subr.bf16.mxu1 %v7235_v8 }
0x1a97   : > { %6493 = vmatpush3.bf16.msra.mxu1 %v8071_v54 }
0x1a98   : > { %6494 = vmatprep.subr.bf16.mxu1 %v7235_v8 }
0x1a9b   : > { %6496 = vmatpush3.bf16.msra.mxu1 %v8080_v56 }
0x1a9c   : > { %6497 = vmatprep.subr.bf16.mxu1 %v7235_v8 }
0x1a9f   : > { %6499 = vmatpush3.bf16.msra.mxu1 %v8090_v60 }
0x1aa0   : > { %6528 = vmatprep.subr.bf16.mxu1 %v7235_v8 }
0x1b55   : > { %v2566_v31 = vpop.f32.mrb[18].mxu1 }
0x1b56   : > { %v2567_v63 = vadd.f32 %v2566_v31, %v2490_v20  ;;  %v2568_v22 = vpop.f32.mrb[19].mxu1 }
0x1b57   : > { %v2569_v0 = vadd.f32 %v2568_v22, %v2494_v25 }
0x1b58   : > { %2572 = vrot.lane.b32.xlu1 %v2567_v63, %s7238_s19 }
0x1b59   : > { %2593 = vrot.lane.b32.xlu0 %v2569_v0, %s7239_s12 }
0x1b5d   : > { %2583 = vrot.lane.b32.xlu0 %v2569_v0, %s7238_s19 }
0x1bca   : > { %v2573_v5 = vpop.permute.xlu1 %2572 }
0x1bcb   : > { %v2575_v10 = vadd.f32 %v2573_v5, %v2567_v63  ;;  %v2594_v43 = vpop.permute.xlu0 %2593 }
0x1bcd   : > { %v5126_v45 = vmul.f32 -1.442695, %v2575_v10 }
0x1bcf   : > { %6883 = vpow2.f32 %v5126_v45  ;;  %v2584_v58 = vpop.permute.xlu0 %2583 }
0x1bd0   : > { %v2586_v3 = vadd.f32 %v2584_v58, %v2567_v63 }
0x1bd2   : > { %v5127_v24 = vmul.f32 -1.442695, %v2586_v3 }
0x1bd9   : > { %v6884_v26 = vpop.eup %6883 }
0x1bda   : > { %v2579_v14 = vadd.f32 1.0, %v6884_v26 }
0x1bdc   : > { %6885 = vrcp.f32 %v2579_v14 }
0x1be6   : > { %v6886_v47 = vpop.eup %6885 }
0x1be7   : > { %v2596_v29 = vmul.f32 %v6886_v47, %v2594_v43 }
0x1be9   : > { %2598 = vrot.lane.b32.xlu1 %v2596_v29, %s7240_s23 }
0x1c5b   : > { %v2599_v39 = vpop.permute.xlu1 %2598 }
0x1c5c   : > { %v2601_v42 = vadd.f32 %v2599_v39, %v2567_v63 }
0x1c5e   : > { %6887 = vtanh.f32 %v2601_v42 }
0x1c5f   : > { %6889 = vpow2.f32 %v5127_v24 }
0x1c68   : > { %v6888_v55 = vpop.eup %6887 }
0x1c69   : > { %2605 = vrot.lane.b32.xlu1 %v6888_v55, %s7239_s12  ;;  %v6890_v4 = vpop.eup %6889 }
0x1c6a   : > { %v2590_v7 = vadd.f32 1.0, %v6890_v4 }
0x1c6c   : > { %6891 = vrcp.f32 %v2590_v7 }
0x1c76   : > { %v6892_v11 = vpop.eup %6891 }
0x1c77   : > { %v2603_v15 = vsub.f32 1.0, %v6892_v11  ;;  %v2609_v31 = vmul.f32 %v6892_v11, %v7976_v17  ;;  %v5132_v17 = vld [vmem:[%s7503_s25 + $0x20] sm:$0xff] }
0x1cdb   : > { %v2606_v20 = vpop.permute.xlu1 %2605 }
0x1cdc   : > { %v2608_v25 = vmul.f32 %v2606_v20, %v2603_v15 }
0x1cde   : > { %v8270_v22 = vadd.f32 %v2609_v31, %v2608_v25 }
0x1ce0   : > { %2612 = vrot.lane.b32.xlu0 %v8270_v22, %s7239_s12  ;;  %v2717_v63 = vsel %vm602_vm1, %v5132_v17, %v8270_v22 }
0x1d52   : > { %v2613_v0 = vpop.permute.xlu0 %2612 }
0x1d53   : > { %5128 = vst.msk [vmem:[%s7822_s22 + $0x18] sm:$0xff] %vm602_vm1, %v2613_v0  ;;  %5846 = vmatmul.mubr.msk.f32.vlgmr.msra.gmra.mrb[18].mxu0 %vm602_vm1, %v2613_v0 }
0x1d54   : > { %6466 = vmatpush3.bf16.msra.mxu0 %v7980_v21  ;;  %5864 = vmatprep.mubr.msk.f32.mxu0 %vm7236_vm0, %v7237_v9 }
0x1d55   : > { %6467 = vmatprep.subr.bf16.mxu0 %v7235_v8 }
0x1d58   : > { %6469 = vmatpush3.bf16.msra.mxu0 %v7986_v30 }
0x1d59   : > { %6470 = vmatprep.subr.bf16.mxu0 %v7235_v8 }
0x1d5c   : > { %6472 = vmatpush3.bf16.msra.mxu0 %v7992_v19 }
0x1d5d   : > { %6473 = vmatprep.subr.bf16.mxu0 %v7235_v8 }
0x1d60   : > { %6475 = vmatpush3.bf16.msra.mxu0 %v7996_v32 }
0x1d61   : > { %6500 = vmatprep.subr.bf16.mxu0 %v7235_v8 }
0x1d63   : > { %5865 = vmatmul.mubr.msk.f32.vlgmr.msra.gmra.mrb[20].mxu0 %vm619_vm2, %v2717_v63 }
0x1d64   : > { %6502 = vmatpush3.bf16.msra.mxu0 %v8107_v12  ;;  %5918 = vmatprep.mubr.msk.f32.mxu0 %vm7236_vm0, %v7237_v9 }
0x1d65   : > { %6503 = vmatprep.subr.bf16.mxu0 %v7235_v8 }
0x1d68   : > { %6505 = vmatpush3.bf16.msra.mxu0 %v8113_v18 }
0x1d69   : > { %6506 = vmatprep.subr.bf16.mxu0 %v7235_v8 }
0x1d6c   : > { %6508 = vmatpush3.bf16.msra.mxu0 %v8123_v28 }
0x1d6d   : > { %6509 = vmatprep.subr.bf16.mxu0 %v7235_v8 }
0x1d70   : > { %6511 = vmatpush3.bf16.msra.mxu0 %v8133_v13 }
0x1d71   : > { %6513 = vmatprep.subr.bf16.mxu0 %v8143_v34 }
0x1e26   : > { %v8301_v5 = vpop.f32.mrb[18].mxu0 }
0x1e27   : > { %v5847_v10 = vpop.f32.mrb[19].mxu0 }
0x1e36   : > { %v2802_v45 = vpop.f32.mrb[20].mxu0 }
0x1e37   : > { %v2803_v26 = vadd.f32 %v8012_v40, %v2802_v45  ;;  %v5866_v14 = vpop.f32.mrb[21].mxu0 }
0x1e39   : > { %2806 = vmax.xlane.f32.xlu1 %v2803_v26 }
0x1ec6   : > { %v2807_v47 = vpop.xlane.xlu1 %2806 }
0x1ec7   : > { %v2808_v43 = vsub.f32 %v2803_v26, %v2807_v47 }
0x1ec9   : > { %v2809_v29 = vmul.f32 1.442695, %v2808_v43 }
0x1ecb   : > { %6893 = vpow2.f32 %v2809_v29 }
0x1ed5   : > { %v6894_v39 = vpop.eup %6893 }
0x1ed6   : > { %2811 = vadd.xlane.f32.xlu0 %v6894_v39 }
0x1f63   : > { %v2812_v42 = vpop.xlane.xlu0 %2811 }
0x1f64   : > { %6895 = vrcp.f32 %v2812_v42 }
0x1f6e   : > { %v6896_v49 = vpop.eup %6895 }
0x1f6f   : > { %v2814_v50 = vmul.f32 %v6896_v49, %v6894_v39 }
0x1f71   : > { %5135 = vst [vmem:[%s7636_s17 + $0x20] sm:$0xff] %v2814_v50  ;;  %5900 = vmatmul.mubr.f32.vlgmr.msra.gmra.mrb[20].mxu1 %v2814_v50 }
0x1f72   : > { %6530 = vmatpush3.bf16.msra.mxu1 %v8257_v41  ;;  %5929 = vmatprep.mubr.msk.f32.mxu1 %vm7236_vm0, %v7237_v9 }
0x1f73   : > { %6531 = vmatprep.subr.bf16.mxu1 %v7235_v8 }
0x1f76   : > { %6533 = vmatpush3.bf16.msra.mxu1 %v8263_v53 }
0x1f77   : > { %6534 = vmatprep.subr.bf16.mxu1 %v7235_v8 }
0x2044   : > { %v2899_v2 = vpop.f32.mrb[20].mxu1 }
0x2045   : > { %2904 = vrot.lane.b32.xlu0 %v2899_v2, %s7238_s19  ;;  %v5901_v51 = vpop.f32.mrb[21].mxu1 }
0x20b7   : > { %v2905_v55 = vpop.permute.xlu0 %2904 }
0x20b8   : > { %v2907_v58 = vsel %vm602_vm1, %v5132_v17, %v2905_v55 }
0x20b9   : > { %5919 = vmatmul.mubr.msk.f32.vlgmr.msra.gmra.mrb[22].mxu0 %vm619_vm2, %v2907_v58 }
0x20ba   : > { %6515 = vmatpush1.bf16.msra.mxu0 %v8159_v48  ;;  %3093 = vmatprep.mubr.f32.mxu0 %v7237_v9 }
0x20bb   : > { %6517 = vmatprep.subr.bf16.mxu0 %v8161_v52 }
0x20be   : > { %6519 = vmatpush1.bf16.msra.mxu0 %v8179_v35 }
0x20bf   : > { %6521 = vmatprep.subr.bf16.mxu0 %v8183_v38 }
0x20c2   : > { %6523 = vmatpush1.bf16.msra.mxu0 %v8192_v44 }
0x20c3   : > { %6525 = vmatprep.subr.bf16.mxu0 %v8202_v57 }
0x20c6   : > { %6527 = vmatpush1.bf16.msra.mxu0 %v8210_v59 }
0x20c7   : > { %6546 = vmatprep.subr.bf16.mxu0 %v7235_v8 }
0x218c   : > { %v2992_v3 = vpop.f32.mrb[22].mxu0 }
0x218d   : > { %v2993_v24 = vadd.f32 %v8215_v62, %v2992_v3  ;;  %v5920_v4 = vpop.f32.mrb[23].mxu0 }
0x218f   : > { %v2996_v7 = vmax.f32 %v2993_v24, 0.0 }
0x2191   : > { %v2997_v11 = vsel %vm602_vm1, %v2996_v7, %v8270_v22 }
0x2192   : > { %5138 = vmatmul.mubr.msk.f32.vlgmr.msra.gmra.mrb[24].mxu0 %vm619_vm2, %v2997_v11 }
0x2193   : > { %6548 = vmatpush3.bf16.msra.mxu0 %v8024_v23  ;;  %5983 = vmatprep.mubr.msk.f32.mxu0 %vm7236_vm0, %v7237_v9  ;;  %v3014_v23 = vld [vmem:[%s9043_s8] sm:$0x3] }
0x2194   : > { %6549 = vmatprep.subr.bf16.mxu0 %v7235_v8 }
0x2197   : > { %6551 = vmatpush3.bf16.msra.mxu0 %v8030_v27  ;;  %v3019_v27 = vrot.slane %v3014_v23, %v7782_v61 }
0x2198   : > { %6552 = vmatprep.subr.bf16.mxu0 %v7235_v8 }
0x219b   : > { %6554 = vmatpush3.bf16.msra.mxu0 %v8040_v37 }
0x219c   : > { %6555 = vmatprep.subr.bf16.mxu0 %v7235_v8 }
0x219f   : > { %6557 = vmatpush3.bf16.msra.mxu0 %v8050_v46 }
0x21a0   : > { %6558 = vmatprep.subr.bf16.mxu0 %v7235_v8 }
0x21a3   : > { %6560 = vmatpush3.bf16.msra.mxu0 %v8060_v33  ;;  %v3023_v33 = vrot.slane %v3014_v23, %v7788_v1 }
0x21a4   : > { %6561 = vmatprep.subr.bf16.mxu0 %v7235_v8 }
0x21a7   : > { %6563 = vmatpush3.bf16.msra.mxu0 %v8071_v54 }
0x21a8   : > { %6564 = vmatprep.subr.bf16.mxu0 %v7235_v8 }
0x21ab   : > { %6566 = vmatpush3.bf16.msra.mxu0 %v8080_v56 }
0x21ac   : > { %6567 = vmatprep.subr.bf16.mxu0 %v7235_v8 }
0x21af   : > { %6569 = vmatpush3.bf16.msra.mxu0 %v8090_v60 }
0x21b0   : > { %6598 = vmatprep.subr.bf16.mxu0 %v7235_v8 }
0x2265   : > { %v3095_v37 = vpop.f32.mrb[24].mxu0 }
0x2266   : > { %v3096_v46 = vadd.f32 %v3095_v37, %v3019_v27  ;;  %v3097_v54 = vpop.f32.mrb[25].mxu0 }
0x2267   : > { %v3098_v56 = vadd.f32 %v3097_v54, %v3023_v33 }
0x2268   : > { %3101 = vrot.lane.b32.xlu1 %v3096_v46, %s7238_s19 }
0x226c   : > { %3122 = vrot.lane.b32.xlu1 %v3098_v56, %s7239_s12 }
0x2270   : > { %3112 = vrot.lane.b32.xlu1 %v3098_v56, %s7238_s19 }
0x22da   : > { %v3102_v60 = vpop.permute.xlu1 %3101 }
0x22db   : > { %v3104_v15 = vadd.f32 %v3102_v60, %v3096_v46 }
0x22dd   : > { %v5139_v20 = vmul.f32 -1.442695, %v3104_v15 }
0x22de   : > { %v3123_v17 = vpop.permute.xlu1 %3122 }
0x22df   : > { %6897 = vpow2.f32 %v5139_v20 }
0x22e2   : > { %v3113_v14 = vpop.permute.xlu1 %3112 }
0x22e3   : > { %v3115_v47 = vadd.f32 %v3113_v14, %v3096_v46 }
0x22e5   : > { %v5140_v43 = vmul.f32 -1.442695, %v3115_v47 }
0x22e9   : > { %v6898_v25 = vpop.eup %6897 }
0x22ea   : > { %v3108_v31 = vadd.f32 1.0, %v6898_v25 }
0x22ec   : > { %6899 = vrcp.f32 %v3108_v31 }
0x22f6   : > { %v6900_v0 = vpop.eup %6899 }
0x22f7   : > { %v3125_v63 = vmul.f32 %v6900_v0, %v3123_v17 }
0x22f9   : > { %3127 = vrot.lane.b32.xlu0 %v3125_v63, %s7240_s23 }
0x236b   : > { %v3128_v10 = vpop.permute.xlu0 %3127 }
0x236c   : > { %v3130_v45 = vadd.f32 %v3128_v10, %v3096_v46 }
0x236e   : > { %6901 = vtanh.f32 %v3130_v45 }
0x236f   : > { %6903 = vpow2.f32 %v5140_v43 }
0x2378   : > { %v6902_v26 = vpop.eup %6901 }
0x2379   : > { %3134 = vrot.lane.b32.xlu0 %v6902_v26, %s7239_s12  ;;  %v6904_v29 = vpop.eup %6903 }
0x237a   : > { %v3119_v39 = vadd.f32 1.0, %v6904_v29 }
0x237c   : > { %6905 = vrcp.f32 %v3119_v39 }
0x2386   : > { %v6906_v42 = vpop.eup %6905 }
0x2387   : > { %v3132_v49 = vsub.f32 1.0, %v6906_v42  ;;  %v3138_v51 = vmul.f32 %v6906_v42, %v8270_v22  ;;  %v5145_v22 = vld [vmem:[%s7503_s25 + $0x28] sm:$0xff] }
0x23eb   : > { %v3135_v50 = vpop.permute.xlu0 %3134 }
0x23ec   : > { %v3137_v2 = vmul.f32 %v3135_v50, %v3132_v49 }
0x23ee   : > { %v8356_v55 = vadd.f32 %v3138_v51, %v3137_v2  ;;  %v3776_v2 = vld [vmem:[#allocation6] sm:$0xff]  ;;  %v3777_v51 = vld [vmem:[#allocation6 + $0x8] sm:$0xff] }
0x23f0   : > { %3141 = vrot.lane.b32.xlu1 %v8356_v55, %s7239_s12 }
0x2462   : > { %v3142_v58 = vpop.permute.xlu1 %3141 }
0x2463   : > { %5141 = vst.msk [vmem:[%s7822_s22 + $0x20] sm:$0xff] %vm602_vm1, %v3142_v58  ;;  %5930 = vmatmul.mubr.msk.f32.vlgmr.msra.gmra.mrb[22].mxu1 %vm602_vm1, %v3142_v58  ;;  %v8430_v58 = vpack.c.bf16 %v3777_v51, %v3776_v2  ;;  %v3968_v2 = vld [vmem:[%s9040_s5 + $0x10] sm:$0xff] }
0x2464   : > { %6536 = vmatpush3.bf16.msra.mxu1 %v7980_v21  ;;  %5948 = vmatprep.mubr.msk.f32.mxu1 %vm7236_vm0, %v7237_v9  ;;  %v3246_v21 = vsel %vm602_vm1, %v5145_v22, %v8356_v55 }
0x2465   : > { %6537 = vmatprep.subr.bf16.mxu1 %v7235_v8 }
0x2468   : > { %6539 = vmatpush3.bf16.msra.mxu1 %v7986_v30 }
0x2469   : > { %6540 = vmatprep.subr.bf16.mxu1 %v7235_v8 }
0x246c   : > { %6542 = vmatpush3.bf16.msra.mxu1 %v7992_v19 }
0x246d   : > { %6543 = vmatprep.subr.bf16.mxu1 %v7235_v8 }
0x2470   : > { %6545 = vmatpush3.bf16.msra.mxu1 %v7996_v32 }
0x2471   : > { %6570 = vmatprep.subr.bf16.mxu1 %v7235_v8 }
0x2473   : > { %5949 = vmatmul.mubr.msk.f32.vlgmr.msra.gmra.mrb[24].mxu1 %vm619_vm2, %v3246_v21  ;;  %v3779_v21 = vld [vmem:[#allocation6 + $0x18] sm:$0xff] }
0x2474   : > { %6572 = vmatpush3.bf16.msra.mxu1 %v8107_v12  ;;  %6002 = vmatprep.mubr.msk.f32.mxu1 %vm7236_vm0, %v7237_v9 }
0x2475   : > { %6573 = vmatprep.subr.bf16.mxu1 %v7235_v8 }
0x2478   : > { %6575 = vmatpush3.bf16.msra.mxu1 %v8113_v18 }
0x2479   : > { %6576 = vmatprep.subr.bf16.mxu1 %v7235_v8 }
0x247c   : > { %6578 = vmatpush3.bf16.msra.mxu1 %v8123_v28 }
0x247d   : > { %6579 = vmatprep.subr.bf16.mxu1 %v7235_v8 }
0x2480   : > { %6581 = vmatpush3.bf16.msra.mxu1 %v8133_v13 }
0x2481   : > { %6583 = vmatprep.subr.bf16.mxu1 %v8143_v34 }
0x2536   : > { %v8387_v30 = vpop.f32.mrb[22].mxu1 }
0x2537   : > { %v5931_v19 = vpop.f32.mrb[23].mxu1 }
0x2546   : > { %v3331_v32 = vpop.f32.mrb[24].mxu1 }
0x2547   : > { %v3332_v12 = vadd.f32 %v8012_v40, %v3331_v32  ;;  %v5950_v3 = vpop.f32.mrb[25].mxu1  ;;  %v3780_v32 = vld [vmem:[#allocation6 + $0x20] sm:$0xff] }
0x2549   : > { %3335 = vmax.xlane.f32.xlu0 %v3332_v12 }
0x25d6   : > { %v3336_v18 = vpop.xlane.xlu0 %3335 }
0x25d7   : > { %v3337_v24 = vsub.f32 %v3332_v12, %v3336_v18  ;;  %v3781_v12 = vld [vmem:[#allocation6 + $0x28] sm:$0xff]  ;;  %v3782_v18 = vld [vmem:[#allocation6 + $0x30] sm:$0xff] }
0x25d8   : > { %v8442_v3 = vpack.c.bf16 %v3781_v12, %v3780_v32  ;;  %v3971_v32 = vld [vmem:[%s9040_s5 + $0x28] sm:$0xff] }
0x25d9   : > { %v3338_v4 = vmul.f32 1.442695, %v3337_v24  ;;  %v3783_v24 = vld [vmem:[#allocation6 + $0x38] sm:$0xff] }
0x25db   : > { %6907 = vpow2.f32 %v3338_v4  ;;  %v8446_v4 = vpack.c.bf16 %v3783_v24, %v3782_v18  ;;  %v3972_v18 = vld [vmem:[%s9040_s5 + $0x30] sm:$0xff]  ;;  %v3973_v24 = vld [vmem:[%s9040_s5 + $0x38] sm:$0xff] }
0x25e5   : > { %v6908_v28 = vpop.eup %6907 }
0x25e6   : > { %3340 = vadd.xlane.f32.xlu1 %v6908_v28 }
0x2673   : > { %v3341_v7 = vpop.xlane.xlu1 %3340 }
0x2674   : > { %6909 = vrcp.f32 %v3341_v7 }
0x267e   : > { %v6910_v13 = vpop.eup %6909 }
0x267f   : > { %v3343_v11 = vmul.f32 %v6910_v13, %v6908_v28  ;;  %v8450_v28 = vld [vmem:[%s7503_s25 + $0x30] sm:$0xff] }
0x2681   : > { %5148 = vst [vmem:[%s7636_s17 + $0x28] sm:$0xff] %v3343_v11  ;;  %5984 = vmatmul.mubr.f32.vlgmr.msra.gmra.mrb[26].mxu0 %v3343_v11 }
0x2682   : > { %6600 = vmatpush3.bf16.msra.mxu0 %v8257_v41  ;;  %6013 = vmatprep.mubr.msk.f32.mxu0 %vm7236_vm0, %v7237_v9 }
0x2683   : > { %6601 = vmatprep.subr.bf16.mxu0 %v7235_v8 }
0x2686   : > { %6603 = vmatpush3.bf16.msra.mxu0 %v8263_v53 }
0x2687   : > { %6604 = vmatprep.subr.bf16.mxu0 %v7235_v8 }
0x2754   : > { %v3428_v40 = vpop.f32.mrb[26].mxu0 }
0x2755   : > { %3433 = vrot.lane.b32.xlu0 %v3428_v40, %s7238_s19  ;;  %v5985_v34 = vpop.f32.mrb[27].mxu0  ;;  %v8462_v40 = vld [vmem:[#allocation8] ss:$0 sm:$0xff] }
0x27c7   : > { %v3434_v23 = vpop.permute.xlu0 %3433 }
0x27c8   : > { %v3436_v27 = vsel %vm602_vm1, %v5145_v22, %v3434_v23  ;;  %v3778_v22 = vld [vmem:[#allocation6 + $0x10] sm:$0xff] }
0x27c9   : > { %6003 = vmatmul.mubr.msk.f32.vlgmr.msra.gmra.mrb[26].mxu1 %vm619_vm2, %v3436_v27 }
0x27ca   : > { %6585 = vmatpush1.bf16.msra.mxu1 %v8159_v48  ;;  %3622 = vmatprep.mubr.f32.mxu1 %v7237_v9 }
0x27cb   : > { %6587 = vmatprep.subr.bf16.mxu1 %v8161_v52 }
0x27ce   : > { %6589 = vmatpush1.bf16.msra.mxu1 %v8179_v35  ;;  %v3543_v35 = vld [vmem:[%s9043_s8] sm:$0x3] }
0x27cf   : > { %6591 = vmatprep.subr.bf16.mxu1 %v8183_v38  ;;  %v3548_v38 = vrot.slane %v3543_v35, %v7782_v61 }
0x27d2   : > { %6593 = vmatpush1.bf16.msra.mxu1 %v8192_v44  ;;  %v3552_v44 = vrot.slane %v3543_v35, %v7788_v1 }
0x27d3   : > { %6595 = vmatprep.subr.bf16.mxu1 %v8202_v57 }
0x27d6   : > { %6597 = vmatpush1.bf16.msra.mxu1 %v8210_v59 }
0x27d7   : > { %6616 = vmatprep.subr.bf16.mxu1 %v7235_v8 }
0x289c   : > { %v3521_v41 = vpop.f32.mrb[26].mxu1 }
0x289d   : > { %v3522_v53 = vadd.f32 %v8215_v62, %v3521_v41  ;;  %v6004_v48 = vpop.f32.mrb[27].mxu1  ;;  %v3875_v41 = vld [vmem:[%s9097_s2] sm:$0xff] }
0x289e   : > { %v3877_v48 = vld [vmem:[%s9097_s2 + $0x10] sm:$0xff] }
0x289f   : > { %v3525_v37 = vmax.f32 %v3522_v53, 0.0  ;;  %v3876_v53 = vld [vmem:[%s9097_s2 + $0x8] sm:$0xff] }
0x28a1   : > { %v3526_v52 = vsel %vm602_vm1, %v3525_v37, %v8356_v55  ;;  %v8474_v37 = vpack.c.bf16 %v3876_v53, %v3875_v41  ;;  %v4056_v53 = vld [vmem:[%s9042_s7] sm:$0xff] }
0x28a2   : > { %5151 = vmatmul.mubr.msk.f32.vlgmr.msra.gmra.mrb[28].mxu1 %vm619_vm2, %v3526_v52  ;;  %v3878_v52 = vld [vmem:[%s9097_s2 + $0x18] sm:$0xff] }
0x28a3   : > { %6067 = vmatprep.mubr.msk.f32.mxu1 %vm7236_vm0, %v7237_v9  ;;  %6618 = vmatpush3.bf16.msra.mxu1 %v8474_v37  ;;  %v8480_v35 = vpack.c.bf16 %v3878_v52, %v3877_v48  ;;  %v4058_v48 = vld [vmem:[%s9042_s7 + $0x10] sm:$0xff]  ;;  %v4061_v52 = vld [vmem:[%s9042_s7 + $0x28] sm:$0xff] }
0x28a4   : > { %6619 = vmatprep.subr.bf16.mxu1 %v7235_v8 }
0x28a7   : > { %6621 = vmatpush3.bf16.msra.mxu1 %v8480_v35 }
0x28a8   : > { %6622 = vmatprep.subr.bf16.mxu1 %v7235_v8 }
0x2975   : > { %v3624_v57 = vpop.f32.mrb[28].mxu1 }
0x2976   : > { %v3625_v59 = vadd.f32 %v3624_v57, %v3548_v38  ;;  %v3626_v62 = vpop.f32.mrb[29].mxu1  ;;  %v3879_v38 = vld [vmem:[%s9097_s2 + $0x20] sm:$0xff] }
0x2977   : > { %v3627_v46 = vadd.f32 %v3626_v62, %v3552_v44  ;;  %v3880_v44 = vld [vmem:[%s9097_s2 + $0x28] sm:$0xff]  ;;  %v3882_v62 = vld [vmem:[%s9097_s2 + $0x38] sm:$0xff] }
0x2978   : > { %3630 = vrot.lane.b32.xlu1 %v3625_v59, %s7238_s19  ;;  %v8490_v57 = vpack.c.bf16 %v3880_v44, %v3879_v38  ;;  %v4063_v38 = vld [vmem:[%s9042_s7 + $0x38] sm:$0xff]  ;;  %v8609_v44 = vpack.c.bf16 %v4058_v48, %v4056_v53 }
0x2979   : > { %3651 = vrot.lane.b32.xlu0 %v3627_v46, %s7239_s12 }
0x297a   : > { %6624 = vmatpush3.bf16.msra.mxu1 %v8490_v57 }
0x297b   : > { %6625 = vmatprep.subr.bf16.mxu1 %v7235_v8 }
0x297d   : > { %3641 = vrot.lane.b32.xlu0 %v3627_v46, %s7238_s19 }
0x29ea   : > { %v3631_v33 = vpop.permute.xlu1 %3630 }
0x29eb   : > { %v3633_v54 = vadd.f32 %v3631_v33, %v3625_v59  ;;  %v3652_v25 = vpop.permute.xlu0 %3651  ;;  %v3883_v33 = vld [vmem:[%s9097_s2 + $0x40] sm:$0xff] }
0x29ed   : > { %v5152_v56 = vmul.f32 -1.442695, %v3633_v54  ;;  %v3884_v54 = vld [vmem:[%s9097_s2 + $0x48] sm:$0xff] }
0x29ef   : > { %6911 = vpow2.f32 %v5152_v56  ;;  %v3642_v10 = vpop.permute.xlu0 %3641  ;;  %v8510_v56 = vpack.c.bf16 %v3884_v54, %v3883_v33  ;;  %v4060_v33 = vld [vmem:[%s9042_s7 + $0x20] sm:$0xff]  ;;  %v4062_v54 = vld [vmem:[%s9042_s7 + $0x30] sm:$0xff] }
0x29f0   : > { %v3644_v45 = vadd.f32 %v3642_v10, %v3625_v59  ;;  %v3888_v10 = vld [vmem:[%s9097_s2 + $0x68] sm:$0xff] }
0x29f2   : > { %v5153_v26 = vmul.f32 -1.442695, %v3644_v45 }
0x29f9   : > { %v6912_v60 = vpop.eup %6911 }
0x29fa   : > { %v3637_v15 = vadd.f32 1.0, %v6912_v60 }
0x29fc   : > { %6913 = vrcp.f32 %v3637_v15 }
0x2a06   : > { %v6914_v20 = vpop.eup %6913 }
0x2a07   : > { %v3654_v31 = vmul.f32 %v6914_v20, %v3652_v25 }
0x2a09   : > { %3656 = vrot.lane.b32.xlu1 %v3654_v31, %s7240_s23  ;;  %v3885_v31 = vld [vmem:[%s9097_s2 + $0x50] sm:$0xff] }
0x2a7b   : > { %v3657_v0 = vpop.permute.xlu1 %3656 }
0x2a7c   : > { %v3659_v17 = vadd.f32 %v3657_v0, %v3625_v59  ;;  %v3881_v59 = vld [vmem:[%s9097_s2 + $0x30] sm:$0xff]  ;;  %v3886_v0 = vld [vmem:[%s9097_s2 + $0x58] sm:$0xff] }
0x2a7d   : > { %v8500_v46 = vpack.c.bf16 %v3882_v62, %v3881_v59  ;;  %v8611_v62 = vpack.c.bf16 %v4063_v38, %v4061_v52  ;;  %v4204_v38 = vld [vmem:[%s9098_s21] sm:$0xff] }
0x2a7e   : > { %6915 = vtanh.f32 %v3659_v17  ;;  %v8521_v17 = vpack.c.bf16 %v3886_v0, %v3885_v31  ;;  %v4066_v0 = vld [vmem:[%s9042_s7 + $0x50] sm:$0xff] }
0x2a7f   : > { %6917 = vpow2.f32 %v5153_v26  ;;  %6627 = vmatpush3.bf16.msra.mxu1 %v8500_v46  ;;  %v3889_v26 = vld [vmem:[%s9097_s2 + $0x70] sm:$0xff] }
0x2a80   : > { %6628 = vmatprep.subr.bf16.mxu1 %v7235_v8 }
0x2a83   : > { %6630 = vmatpush3.bf16.msra.mxu1 %v8510_v56 }
0x2a84   : > { %6631 = vmatprep.subr.bf16.mxu1 %v7235_v8 }
0x2a87   : > { %6633 = vmatpush3.bf16.msra.mxu1 %v8521_v17 }
0x2a88   : > { %v6916_v63 = vpop.eup %6915  ;;  %6634 = vmatprep.subr.bf16.mxu1 %v7235_v8 }
0x2a89   : > { %3663 = vrot.lane.b32.xlu1 %v6916_v63, %s7239_s12  ;;  %v6918_v14 = vpop.eup %6917  ;;  %v3887_v63 = vld [vmem:[%s9097_s2 + $0x60] sm:$0xff] }
0x2a8a   : > { %v3648_v47 = vadd.f32 1.0, %v6918_v14  ;;  %v8530_v45 = vpack.c.bf16 %v3888_v10, %v3887_v63  ;;  %v3890_v14 = vld [vmem:[%s9097_s2 + $0x78] sm:$0xff]  ;;  %v4069_v10 = vld [vmem:[%s9042_s7 + $0x68] sm:$0xff] }
0x2a8c   : > { %6919 = vrcp.f32 %v3648_v47  ;;  %6636 = vmatpush3.bf16.msra.mxu1 %v8530_v45  ;;  %v8540_v47 = vpack.c.bf16 %v3890_v14, %v3889_v26  ;;  %v4071_v26 = vld [vmem:[%s9042_s7 + $0x78] sm:$0xff] }
0x2a8d   : > { %6637 = vmatprep.subr.bf16.mxu1 %v7235_v8  ;;  %v8652_v14 = vpack.c.bf16 %v4071_v26, %v4069_v10 }
0x2a90   : > { %6639 = vmatpush3.bf16.msra.mxu1 %v8540_v47 }
0x2a91   : > { %6668 = vmatprep.subr.bf16.mxu1 %v7235_v8 }
0x2a96   : > { %v6920_v43 = vpop.eup %6919 }
0x2a97   : > { %v3661_v29 = vsub.f32 1.0, %v6920_v43  ;;  %v3667_v49 = vmul.f32 %v6920_v43, %v8356_v55  ;;  %v8436_v55 = vpack.c.bf16 %v3779_v21, %v3778_v22  ;;  %v3969_v22 = vld [vmem:[%s9040_s5 + $0x18] sm:$0xff] }
0x2a98   : > { %v8563_v21 = vpack.c.bf16 %v3969_v22, %v3968_v2 }
0x2afb   : > { %v3664_v39 = vpop.permute.xlu1 %3663 }
0x2afc   : > { %v3666_v42 = vmul.f32 %v3664_v39, %v3661_v29 }
0x2afe   : > { %v8426_v50 = vadd.f32 %v3667_v49, %v3666_v42  ;;  %v3966_v42 = vld [vmem:[%s9040_s5] sm:$0xff]  ;;  %v3967_v49 = vld [vmem:[%s9040_s5 + $0x8] sm:$0xff] }
0x2aff   : > { %v8557_v51 = vpack.c.bf16 %v3967_v49, %v3966_v42  ;;  %v8665_v42 = vld [vmem:[#allocation9] ss:$0 sm:$0xff] }
0x2b00   : > { %3670 = vrot.lane.b32.xlu0 %v8426_v50, %s7239_s12  ;;  %v3775_v7 = vsel %vm602_vm1, %v8450_v28, %v8426_v50 }
0x2b72   : > { %v3671_v19 = vpop.permute.xlu0 %3670 }
0x2b73   : > { %5154 = vst.msk [vmem:[%s7822_s22 + $0x28] sm:$0xff] %vm602_vm1, %v3671_v19  ;;  %6014 = vmatmul.mubr.msk.f32.vlgmr.msra.gmra.mrb[28].mxu0 %vm602_vm1, %v3671_v19  ;;  %v3970_v19 = vld [vmem:[%s9040_s5 + $0x20] sm:$0xff] }
0x2b74   : > { %6606 = vmatpush3.bf16.msra.mxu0 %v8430_v58  ;;  %6032 = vmatprep.mubr.msk.f32.mxu0 %vm7236_vm0, %v7237_v9  ;;  %v8573_v12 = vpack.c.bf16 %v3971_v32, %v3970_v19 }
0x2b75   : > { %6607 = vmatprep.subr.bf16.mxu0 %v7235_v8 }
0x2b78   : > { %6609 = vmatpush3.bf16.msra.mxu0 %v8436_v55 }
0x2b79   : > { %6610 = vmatprep.subr.bf16.mxu0 %v7235_v8 }
0x2b7c   : > { %6612 = vmatpush3.bf16.msra.mxu0 %v8442_v3 }
0x2b7d   : > { %6613 = vmatprep.subr.bf16.mxu0 %v7235_v8 }
0x2b80   : > { %6615 = vmatpush3.bf16.msra.mxu0 %v8446_v4 }
0x2b81   : > { %6640 = vmatprep.subr.bf16.mxu0 %v7235_v8 }
0x2b83   : > { %6033 = vmatmul.mubr.msk.f32.vlgmr.msra.gmra.mrb[30].mxu0 %vm619_vm2, %v3775_v7  ;;  %v8583_v7 = vpack.c.bf16 %v3973_v24, %v3972_v18 }
0x2b84   : > { %6086 = vmatprep.mubr.msk.f32.mxu0 %vm7236_vm0, %v7237_v9  ;;  %6642 = vmatpush3.bf16.msra.mxu0 %v8557_v51 }
0x2b85   : > { %6643 = vmatprep.subr.bf16.mxu0 %v7235_v8 }
0x2b88   : > { %6645 = vmatpush3.bf16.msra.mxu0 %v8563_v21 }
0x2b89   : > { %6646 = vmatprep.subr.bf16.mxu0 %v7235_v8 }
0x2b8c   : > { %6648 = vmatpush3.bf16.msra.mxu0 %v8573_v12 }
0x2b8d   : > { %6649 = vmatprep.subr.bf16.mxu0 %v7235_v8 }
0x2b90   : > { %6651 = vmatpush3.bf16.msra.mxu0 %v8583_v7 }
0x2c46   : > { %v8460_v13 = vpop.f32.mrb[28].mxu0 }
0x2c47   : > { %v6015_v11 = vpop.f32.mrb[29].mxu0 }
0x2c48   : > { %v4057_v11 = vld [vmem:[%s9042_s7 + $0x8] sm:$0xff] }
0x2c56   : > { %v3860_v34 = vpop.f32.mrb[30].mxu0 }
0x2c57   : > { %v3861_v23 = vadd.f32 %v8462_v40, %v3860_v34  ;;  %v6034_v27 = vpop.f32.mrb[31].mxu0  ;;  %v4059_v34 = vld [vmem:[%s9042_s7 + $0x18] sm:$0xff] }
0x2c59   : > { %3864 = vmax.xlane.f32.xlu1 %v3861_v23 }
0x2ce6   : > { %v3865_v60 = vpop.xlane.xlu1 %3864 }
0x2ce7   : > { %v3866_v15 = vsub.f32 %v3861_v23, %v3865_v60  ;;  %v8593_v23 = vpack.c.bf16 %v4059_v34, %v4057_v11 }
0x2ce9   : > { %v3867_v20 = vmul.f32 1.442695, %v3866_v15  ;;  %6653 = vmatprep.subr.bf16.mxu0 %v8593_v23  ;;  %v4065_v15 = vld [vmem:[%s9042_s7 + $0x48] sm:$0xff] }
0x2ceb   : > { %6921 = vpow2.f32 %v3867_v20  ;;  %v4067_v20 = vld [vmem:[%s9042_s7 + $0x58] sm:$0xff] }
0x2cec   : > { %v8633_v31 = vpack.c.bf16 %v4067_v20, %v4065_v15 }
0x2cf5   : > { %v6922_v25 = vpop.eup %6921 }
0x2cf6   : > { %3869 = vadd.xlane.f32.xlu0 %v6922_v25 }
0x2d83   : > { %v3870_v43 = vpop.xlane.xlu0 %3869 }
0x2d84   : > { %6923 = vrcp.f32 %v3870_v43  ;;  %v4068_v43 = vld [vmem:[%s9042_s7 + $0x60] sm:$0xff] }
0x2d8e   : > { %v6924_v29 = vpop.eup %6923 }
0x2d8f   : > { %v3872_v39 = vmul.f32 %v6924_v29, %v6922_v25  ;;  %v8629_v25 = vpack.c.bf16 %v4062_v54, %v4060_v33  ;;  %v4070_v29 = vld [vmem:[%s9042_s7 + $0x70] sm:$0xff] }
0x2d90   : > { %v4206_v33 = vld [vmem:[%s9098_s21 + $0x10] sm:$0xff] }
0x2d91   : > { %5161 = vst [vmem:[%s7636_s17 + $0x30] sm:$0xff] %v3872_v39  ;;  %6068 = vmatmul.mubr.f32.vlgmr.msra.gmra.mrb[30].mxu1 %v3872_v39  ;;  %v8660_v39 = vpack.c.bf16 %v4070_v29, %v4068_v43 }
0x2d92   : > { %6097 = vmatprep.mubr.msk.f32.mxu1 %vm7236_vm0, %v7237_v9 }
0x2e64   : > { %v3957_v27 = vpop.f32.mrb[30].mxu1 }
0x2e65   : > { %3962 = vrot.lane.b32.xlu0 %v3957_v27, %s7238_s19  ;;  %v6069_v41 = vpop.f32.mrb[31].mxu1 }
0x2ed7   : > { %v3963_v59 = vpop.permute.xlu0 %3962 }
0x2ed8   : > { %v3965_v60 = vsel %vm602_vm1, %v8450_v28, %v3963_v59  ;;  %v4064_v28 = vld [vmem:[%s9042_s7 + $0x40] sm:$0xff]  ;;  %v4205_v59 = vld [vmem:[%s9098_s21 + $0x8] sm:$0xff] }
0x2ed9   : > { %6087 = vmatmul.mubr.msk.f32.vlgmr.msra.gmra.mrb[32].mxu0 %vm619_vm2, %v3965_v60  ;;  %v8642_v63 = vpack.c.bf16 %v4066_v0, %v4064_v28  ;;  %v8707_v54 = vpack.c.bf16 %v4205_v59, %v4204_v38  ;;  %v4207_v60 = vld [vmem:[%s9098_s21 + $0x18] sm:$0xff] }
0x2eda   : > { %6655 = vmatpush1.bf16.msra.mxu0 %v8609_v44  ;;  %4151 = vmatprep.mubr.f32.mxu0 %v7237_v9  ;;  %v8713_v15 = vpack.c.bf16 %v4207_v60, %v4206_v33  ;;  %v5091_v33 = vld [vmem:[%s9099_s15] ss:$0 sm:$0xff] }
0x2edb   : > { %6657 = vmatprep.subr.bf16.mxu0 %v8611_v62  ;;  %6670 = vmatpush3.bf16.msra.mxu1 %v8707_v54  ;;  %v5129_v60 = vld [vmem:[%s9099_s15] ss:$0 sm:$0xff] }
0x2edc   : > { %6671 = vmatprep.subr.bf16.mxu1 %v7235_v8 }
0x2ede   : > { %6659 = vmatpush1.bf16.msra.mxu0 %v8629_v25 }
0x2edf   : > { %6661 = vmatprep.subr.bf16.mxu0 %v8633_v31  ;;  %6673 = vmatpush3.bf16.msra.mxu1 %v8713_v15 }
0x2ee0   : > { %6674 = vmatprep.subr.bf16.mxu1 %v7235_v8 }
0x2ee2   : > { %6663 = vmatpush1.bf16.msra.mxu0 %v8642_v63 }
0x2ee3   : > { %6665 = vmatprep.subr.bf16.mxu0 %v8652_v14 }
0x2ee6   : > { %6667 = vmatpush1.bf16.msra.mxu0 %v8660_v39 }
0x2ee7   : > { %6686 = vmatprep.subr.bf16.mxu0 %v7235_v8 }
0x2fac   : > { %v4050_v49 = vpop.f32.mrb[32].mxu0 }
0x2fad   : > { %v4051_v2 = vadd.f32 %v8665_v42, %v4050_v49  ;;  %v6088_v22 = vpop.f32.mrb[33].mxu0 }
0x2faf   : > { %v4054_v19 = vmax.f32 %v4051_v2, 0.0 }
0x2fb1   : > { %v4055_v32 = vsel %vm602_vm1, %v4054_v19, %v8426_v50 }
0x2fb2   : > { %5164 = vmatmul.mubr.msk.f32.vlgmr.msra.gmra.mrb[34].mxu0 %vm619_vm2, %v4055_v32 }
0x2fb3   : > { %6688 = vmatpush3.bf16.msra.mxu0 %v8474_v37  ;;  %6151 = vmatprep.mubr.msk.f32.mxu0 %vm7236_vm0, %v7237_v9  ;;  %v4072_v37 = vld [vmem:[%s9043_s8] sm:$0x3] }
0x2fb4   : > { %6689 = vmatprep.subr.bf16.mxu0 %v7235_v8 }
0x2fb7   : > { %6691 = vmatpush3.bf16.msra.mxu0 %v8480_v35  ;;  %v4077_v35 = vrot.slane %v4072_v37, %v7782_v61 }
0x2fb8   : > { %6692 = vmatprep.subr.bf16.mxu0 %v7235_v8 }
0x2fbb   : > { %6694 = vmatpush3.bf16.msra.mxu0 %v8490_v57 }
0x2fbc   : > { %6695 = vmatprep.subr.bf16.mxu0 %v7235_v8 }
0x2fbf   : > { %6697 = vmatpush3.bf16.msra.mxu0 %v8500_v46 }
0x2fc0   : > { %6698 = vmatprep.subr.bf16.mxu0 %v7235_v8 }
0x2fc3   : > { %6700 = vmatpush3.bf16.msra.mxu0 %v8510_v56  ;;  %v4081_v56 = vrot.slane %v4072_v37, %v7788_v1 }
0x2fc4   : > { %6701 = vmatprep.subr.bf16.mxu0 %v7235_v8 }
0x2fc7   : > { %6703 = vmatpush3.bf16.msra.mxu0 %v8521_v17 }
0x2fc8   : > { %6704 = vmatprep.subr.bf16.mxu0 %v7235_v8 }
0x2fcb   : > { %6706 = vmatpush3.bf16.msra.mxu0 %v8530_v45 }
0x2fcc   : > { %6707 = vmatprep.subr.bf16.mxu0 %v7235_v8 }
0x2fcf   : > { %6709 = vmatpush3.bf16.msra.mxu0 %v8540_v47 }
0x2fd0   : > { %6738 = vmatprep.subr.bf16.mxu0 %v7235_v8 }
0x3085   : > { %v4153_v57 = vpop.f32.mrb[34].mxu0 }
0x3086   : > { %v4154_v46 = vadd.f32 %v4153_v57, %v4077_v35  ;;  %v4155_v17 = vpop.f32.mrb[35].mxu0 }
0x3087   : > { %v4156_v45 = vadd.f32 %v4155_v17, %v4081_v56 }
0x3088   : > { %4159 = vrot.lane.b32.xlu1 %v4154_v46, %s7238_s19 }
0x308c   : > { %4180 = vrot.lane.b32.xlu1 %v4156_v45, %s7239_s12 }
0x3090   : > { %4170 = vrot.lane.b32.xlu1 %v4156_v45, %s7238_s19 }
0x30fa   : > { %v4160_v47 = vpop.permute.xlu1 %4159 }
0x30fb   : > { %v4162_v18 = vadd.f32 %v4160_v47, %v4154_v46 }
0x30fd   : > { %v5165_v24 = vmul.f32 -1.442695, %v4162_v18 }
0x30fe   : > { %v4181_v41 = vpop.permute.xlu1 %4180 }
0x30ff   : > { %6925 = vpow2.f32 %v5165_v24 }
0x3102   : > { %v4171_v28 = vpop.permute.xlu1 %4170 }
0x3103   : > { %v4173_v0 = vadd.f32 %v4171_v28, %v4154_v46  ;;  %v8800_v28 = vadd.f32 %v5129_v60, %v8460_v13 }
0x3105   : > { %v5166_v10 = vmul.f32 -1.442695, %v4173_v0 }
0x3109   : > { %v6926_v11 = vpop.eup %6925 }
0x310a   : > { %v4166_v34 = vadd.f32 1.0, %v6926_v11 }
0x310c   : > { %6927 = vrcp.f32 %v4166_v34 }
0x3116   : > { %v6928_v27 = vpop.eup %6927 }
0x3117   : > { %v4183_v53 = vmul.f32 %v6928_v27, %v4181_v41 }
0x3119   : > { %4185 = vrot.lane.b32.xlu0 %v4183_v53, %s7240_s23 }
0x318b   : > { %v4186_v48 = vpop.permute.xlu0 %4185 }
0x318c   : > { %v4188_v52 = vadd.f32 %v4186_v48, %v4154_v46 }
0x318e   : > { %6929 = vtanh.f32 %v4188_v52 }
0x318f   : > { %6931 = vpow2.f32 %v5166_v10 }
0x3198   : > { %v6930_v20 = vpop.eup %6929 }
0x3199   : > { %4192 = vrot.lane.b32.xlu0 %v6930_v20, %s7239_s12  ;;  %v6932_v26 = vpop.eup %6931 }
0x319a   : > { %v4177_v43 = vadd.f32 1.0, %v6932_v26 }
0x319c   : > { %6933 = vrcp.f32 %v4177_v43 }
0x31a6   : > { %v6934_v29 = vpop.eup %6933 }
0x31a7   : > { %v4190_v49 = vsub.f32 1.0, %v6934_v29  ;;  %v4196_v19 = vmul.f32 %v6934_v29, %v8426_v50  ;;  %v5171_v50 = vld [vmem:[%s7503_s25 + $0x38] sm:$0xff]  ;;  %s8909_s25 = sshll.u32 %s7338_s29, 7  ;;  %s7241_s29 = smov [#allocation12]  }
0x31a8   : > { %s7097_s1 = sshll.u32 %s7241_s29, 4  ;;  %s7098_s1 = int_to_ptr.vmem [resolvable:$false] %s7097_s1 }
0x31a9   : > { %s7099_s2 = scalar_lea.vmem %s7098_s1, 2048  ;;  %p7100_p3 = scmp.lt.s32.totalorder %s8905_s20, %s7098_s1 }
0x31aa   : > { %p7101_p2 = scmp.lt.s32.totalorder %s7099_s2, %s7093_s0 }
0x31ac   : > { %p7102_p5 = por %p7101_p2, %p7100_p3 }
0x320b   : > { %v4193_v2 = vpop.permute.xlu0 %4192 }
0x320c   : > { %v4195_v22 = vmul.f32 %v4193_v2, %v4190_v49 }
0x320e   : > { %v8720_v32 = vadd.f32 %v4196_v19, %v4195_v22 }
0x3210   : > { %4199 = vrot.lane.b32.xlu1 %v8720_v32, %s7239_s12 }
0x3282   : > { %v4200_v37 = vpop.permute.xlu1 %4199 }
0x3283   : > { %5167 = vst.msk [vmem:[%s7822_s22 + $0x30] sm:$0xff] %vm602_vm1, %v4200_v37  ;;  %6098 = vmatmul.mubr.msk.f32.vlgmr.msra.gmra.mrb[32].mxu1 %vm602_vm1, %v4200_v37 }
0x3284   : > { %6676 = vmatpush3.bf16.msra.mxu1 %v8430_v58  ;;  %6116 = vmatprep.mubr.msk.f32.mxu1 %vm7236_vm0, %v7237_v9  ;;  %v4304_v58 = vsel %vm602_vm1, %v5171_v50, %v8720_v32 }
0x3285   : > { %6677 = vmatprep.subr.bf16.mxu1 %v7235_v8 }
0x3288   : > { %6679 = vmatpush3.bf16.msra.mxu1 %v8436_v55 }
0x3289   : > { %6680 = vmatprep.subr.bf16.mxu1 %v7235_v8 }
0x328c   : > { %6682 = vmatpush3.bf16.msra.mxu1 %v8442_v3 }
0x328d   : > { %6683 = vmatprep.subr.bf16.mxu1 %v7235_v8 }
0x3290   : > { %6685 = vmatpush3.bf16.msra.mxu1 %v8446_v4 }
0x3291   : > { %6710 = vmatprep.subr.bf16.mxu1 %v7235_v8 }
0x3293   : > { %6117 = vmatmul.mubr.msk.f32.vlgmr.msra.gmra.mrb[34].mxu1 %vm619_vm2, %v4304_v58  ;;  %v8812_v58 = vadd.f32 %v5091_v33, %v8010_v36 }
0x3294   : > { %6712 = vmatpush3.bf16.msra.mxu1 %v8557_v51  ;;  %6170 = vmatprep.mubr.msk.f32.mxu1 %vm7236_vm0, %v7237_v9 }
0x3295   : > { %6713 = vmatprep.subr.bf16.mxu1 %v7235_v8 }
0x3298   : > { %6715 = vmatpush3.bf16.msra.mxu1 %v8563_v21 }
0x3299   : > { %6716 = vmatprep.subr.bf16.mxu1 %v7235_v8 }
0x329c   : > { %6718 = vmatpush3.bf16.msra.mxu1 %v8573_v12 }
0x329d   : > { %6719 = vmatprep.subr.bf16.mxu1 %v7235_v8 }
0x32a0   : > { %6721 = vmatpush3.bf16.msra.mxu1 %v8583_v7 }
0x32a1   : > { %6723 = vmatprep.subr.bf16.mxu1 %v8593_v23 }
0x3356   : > { %v8751_v55 = vpop.f32.mrb[32].mxu1 }
0x3357   : > { %v6099_v3 = vpop.f32.mrb[33].mxu1 }
0x3366   : > { %v4389_v4 = vpop.f32.mrb[34].mxu1 }
0x3367   : > { %v4390_v51 = vadd.f32 %v8462_v40, %v4389_v4  ;;  %v6118_v35 = vpop.f32.mrb[35].mxu1  ;;  %v8817_v4 = vadd.f32 %v5129_v60, %v8387_v30 }
0x3369   : > { %4393 = vmax.xlane.f32.xlu0 %v4390_v51  ;;  %v3229_v36 = vsel %vm619_vm2, %v8817_v4, -inf }
0x33f6   : > { %v4394_v21 = vpop.xlane.xlu0 %4393 }
0x33f7   : > { %v4395_v57 = vsub.f32 %v4390_v51, %v4394_v21  ;;  %v2171_v51 = vsel %vm619_vm2, %v8812_v58, -inf }
0x33f9   : > { %v4396_v46 = vmul.f32 1.442695, %v4395_v57 }
0x33fb   : > { %6935 = vpow2.f32 %v4396_v46 }
0x3405   : > { %v6936_v12 = vpop.eup %6935 }
0x3406   : > { %4398 = vadd.xlane.f32.xlu1 %v6936_v12 }
0x3493   : > { %v4399_v56 = vpop.xlane.xlu1 %4398 }
0x3494   : > { %6937 = vrcp.f32 %v4399_v56 }
0x349e   : > { %v6938_v7 = vpop.eup %6937 }
0x349f   : > { %v4401_v17 = vmul.f32 %v6938_v7, %v6936_v12 }
0x34a1   : > { %5174 = vst [vmem:[%s7636_s17 + $0x38] sm:$0xff] %v4401_v17  ;;  %6152 = vmatmul.mubr.f32.vlgmr.msra.gmra.mrb[36].mxu0 %v4401_v17 }
0x34a2   : > { %6740 = vmatpush3.bf16.msra.mxu0 %v8707_v54  ;;  %6181 = vmatprep.mubr.msk.f32.mxu0 %vm7236_vm0, %v7237_v9  ;;  %v8789_v54 = vadd.f32 %v5091_v33, %v7851_v6  ;;  %v3758_v6 = vsel %vm619_vm2, %v8800_v28, -inf }
0x34a3   : > { %6741 = vmatprep.subr.bf16.mxu0 %v7235_v8 }
0x34a4   : > { %v1114_v20 = vsel %vm619_vm2, %v8789_v54, -inf }
0x34a6   : > { %6743 = vmatpush3.bf16.msra.mxu0 %v8713_v15  ;;  %v8795_v15 = vadd.f32 %v5129_v60, %v8301_v5 }
0x34a8   : > { %v2700_v0 = vsel %vm619_vm2, %v8795_v15, -inf }
0x3574   : > { %v4486_v40 = vpop.f32.mrb[36].mxu0 }
0x3575   : > { %4491 = vrot.lane.b32.xlu0 %v4486_v40, %s7238_s19  ;;  %v6153_v23 = vpop.f32.mrb[37].mxu0 }
0x35e7   : > { %v4492_v45 = vpop.permute.xlu0 %4491 }
0x35e8   : > { %v4494_v47 = vsel %vm602_vm1, %v5171_v50, %v4492_v45  ;;  %v8809_v50 = vadd.f32 %v5091_v33, %v7937_v16 }
0x35e9   : > { %6171 = vmatmul.mubr.msk.f32.vlgmr.msra.gmra.mrb[36].mxu1 %vm619_vm2, %v4494_v47 }
0x35ea   : > { %6725 = vmatpush1.bf16.msra.mxu1 %v8609_v44  ;;  %4680 = vmatprep.mubr.f32.mxu1 %v7237_v9  ;;  %v4601_v44 = vld [vmem:[%s9043_s8] sm:$0x3]  ;;  %v1642_v3 = vsel %vm619_vm2, %v8809_v50, -inf }
0x35eb   : > { %6727 = vmatprep.subr.bf16.mxu1 %v8611_v62  ;;  %v4606_v62 = vrot.slane %v4601_v44, %v7782_v61 }
0x35ee   : > { %6729 = vmatpush1.bf16.msra.mxu1 %v8629_v25  ;;  %v4610_v25 = vrot.slane %v4601_v44, %v7788_v1 }
0x35ef   : > { %6731 = vmatprep.subr.bf16.mxu1 %v8633_v31 }
0x35f2   : > { %6733 = vmatpush1.bf16.msra.mxu1 %v8642_v63 }
0x35f3   : > { %6735 = vmatprep.subr.bf16.mxu1 %v8652_v14 }
0x35f6   : > { %6737 = vmatpush1.bf16.msra.mxu1 %v8660_v39 }
0x36bc   : > { %v4579_v8 = vpop.f32.mrb[36].mxu1 }
0x36bd   : > { %v4580_v18 = vadd.f32 %v8665_v42, %v4579_v8  ;;  %v6172_v24 = vpop.f32.mrb[37].mxu1 }
0x36bf   : > { %v4583_v11 = vmax.f32 %v4580_v18, 0.0 }
0x36c1   : > { %v4584_v9 = vsel %vm602_vm1, %v4583_v11, %v8720_v32 }
0x36c2   : > { %5177 = vmatmul.mubr.msk.f32.vlgmr.msra.gmra.mrb[38].mxu1 %vm619_vm2, %v4584_v9 }
0x3795   : > { %v4682_v31 = vpop.f32.mrb[38].mxu1 }
0x3796   : > { %v4683_v63 = vadd.f32 %v4682_v31, %v4606_v62  ;;  %v4684_v14 = vpop.f32.mrb[39].mxu1 }
0x3797   : > { %v4685_v39 = vadd.f32 %v4684_v14, %v4610_v25 }
0x3798   : > { %4688 = vrot.lane.b32.xlu1 %v4683_v63, %s7238_s19 }
0x3799   : > { %4709 = vrot.lane.b32.xlu0 %v4685_v39, %s7239_s12 }
0x379d   : > { %4699 = vrot.lane.b32.xlu0 %v4685_v39, %s7238_s19  ;;  %s9101_s19 = sld [smem:[#allocation31_spill]] }
0x37a3   : > { %s8915_s11 = scalar_lea.hbm %s9101_s19, %s8909_s25 }
0x380a   : > { %v4689_v42 = vpop.permute.xlu1 %4688 }
0x380b   : > { %v4691_v34 = vadd.f32 %v4689_v42, %v4683_v63  ;;  %v4710_v48 = vpop.permute.xlu0 %4709 }
0x380d   : > { %v5178_v27 = vmul.f32 -1.442695, %v4691_v34 }
0x380f   : > { %6939 = vpow2.f32 %v5178_v27  ;;  %v4700_v10 = vpop.permute.xlu0 %4699 }
0x3810   : > { %v4702_v26 = vadd.f32 %v4700_v10, %v4683_v63 }
0x3812   : > { %v5179_v43 = vmul.f32 -1.442695, %v4702_v26 }
0x3819   : > { %v6940_v41 = vpop.eup %6939 }
0x381a   : > { %v4695_v53 = vadd.f32 1.0, %v6940_v41 }
0x381c   : > { %6941 = vrcp.f32 %v4695_v53 }
0x3826   : > { %v6942_v61 = vpop.eup %6941 }
0x3827   : > { %v4712_v1 = vmul.f32 %v6942_v61, %v4710_v48 }
0x3829   : > { %4714 = vrot.lane.b32.xlu1 %v4712_v1, %s7240_s23 }
0x389b   : > { %v4715_v52 = vpop.permute.xlu1 %4714 }
0x389c   : > { %v4717_v38 = vadd.f32 %v4715_v52, %v4683_v63 }
0x389e   : > { %6943 = vtanh.f32 %v4717_v38 }
0x389f   : > { %6945 = vpow2.f32 %v5179_v43 }
0x38a8   : > { %v6944_v59 = vpop.eup %6943 }
0x38a9   : > { %4721 = vrot.lane.b32.xlu1 %v6944_v59, %s7239_s12  ;;  %v6946_v5 = vpop.eup %6945 }
0x38aa   : > { %v4706_v29 = vadd.f32 1.0, %v6946_v5 }
0x38ac   : > { %6947 = vrcp.f32 %v4706_v29 }
0x38b6   : > { %v6948_v49 = vpop.eup %6947 }
0x38b7   : > { %v4719_v2 = vsub.f32 1.0, %v6948_v49  ;;  %v4725_v19 = vmul.f32 %v6948_v49, %v8720_v32  ;;  %v5168_v32 = vld [vmem:[%s9099_s15] ss:$0 sm:$0xff] }
0x38b8   : > { %v8825_v16 = vadd.f32 %v5168_v32, %v8751_v55 }
0x38ba   : > { %v4287_v30 = vsel %vm619_vm2, %v8825_v16, -inf }
0x38cd   : > { %1115 = vmax.xlane.f32.xlu1 %v1114_v20 }
0x38d1   : > { %2701 = vmax.xlane.f32.xlu1 %v2700_v0 }
0x38d5   : > { %3759 = vmax.xlane.f32.xlu1 %v3758_v6 }
0x391b   : > { %v4722_v22 = vpop.permute.xlu1 %4721 }
0x391c   : > { %v4724_v13 = vmul.f32 %v4722_v22, %v4719_v2 }
0x391e   : > { %v4726_v37 = vadd.f32 %v4725_v19, %v4724_v13 }
0x3920   : > { %4728 = vrot.lane.b32.xlu0 %v4726_v37, %s7239_s12  ;;  %s8852_s12 = scalar_lea.vmem [#allocation11], %s7499_s9  ;;  %s9100_s9 = sld [smem:[#allocation23_spill]] }
0x3926   : > { %p9103_p9 = scmp.ne.s32.totalorder %s9100_s9, 0 }
0x3928   : > { %p7095_p10 = pnand %p7094_p8, %p9103_p9 }
0x392a   : > { %p7096_p1 = pneg %p7095_p10 }
0x392c   : > { %p7103_p12 = pnand %p7102_p5, %p7096_p1 }
0x393f   : > { %1643 = vmax.xlane.f32.xlu0 %v1642_v3 }
0x3943   : > { %2172 = vmax.xlane.f32.xlu0 %v2171_v51 }
0x3947   : > { %3230 = vmax.xlane.f32.xlu0 %v3229_v36 }
0x394b   : > { %4288 = vmax.xlane.f32.xlu0 %v4287_v30 }
0x395a   : > { %v1116_v35 = vpop.xlane.xlu1 %1115 }
0x395b   : > { %v1117_v21 = vsub.f32 %v8789_v54, %v1116_v35 }
0x395d   : > { %v1118_v57 = vmul.f32 1.442695, %v1117_v21 }
0x395e   : > { %v8856_v27 = vpop.xlane.xlu1 %2701 }
0x395f   : > { %6949 = vpow2.f32 %v1118_v57  ;;  %v2703_v53 = vsub.f32 %v8795_v15, %v8856_v27 }
0x3961   : > { %v2704_v1 = vmul.f32 1.442695, %v2703_v53 }
0x3962   : > { %v8862_v48 = vpop.xlane.xlu1 %3759 }
0x3963   : > { %v3761_v52 = vsub.f32 %v8800_v28, %v8862_v48 }
0x3965   : > { %v3762_v38 = vmul.f32 1.442695, %v3761_v52 }
0x3969   : > { %v6950_v46 = vpop.eup %6949 }
0x396a   : > { %v1120_v12 = vsel %vm619_vm2, %v6950_v46, 0.0 }
0x396b   : > { %1121 = vadd.xlane.f32.xlu0 %v1120_v12 }
0x3992   : > { %v4729_v56 = vpop.permute.xlu0 %4728 }
0x3993   : > { %5180 = vst.msk [vmem:[%s7822_s22 + $0x38] sm:$0xff] %vm602_vm1, %v4729_v56  ;;  %6182 = vmatmul.mubr.msk.f32.vlgmr.msra.gmra.mrb[38].mxu0 %vm602_vm1, %v4729_v56  ;;  %s9102_s22 = sld [smem:[#allocation32_spill]] }
0x3999   : > { %s8921_s23 = scalar_lea.hbm %s9102_s22, %s8909_s25 }
0x39cc   : > { %v8836_v55 = vpop.xlane.xlu0 %1643 }
0x39cd   : > { %v1645_v41 = vsub.f32 %v8809_v50, %v8836_v55 }
0x39cf   : > { %v1646_v61 = vmul.f32 1.442695, %v1645_v41 }
0x39d0   : > { %v2173_v7 = vpop.xlane.xlu0 %2172 }
0x39d1   : > { %v2174_v17 = vsub.f32 %v8812_v58, %v2173_v7 }
0x39d3   : > { %v2175_v40 = vmul.f32 1.442695, %v2174_v17 }
0x39d4   : > { %v8839_v23 = vpop.xlane.xlu0 %3230 }
0x39d5   : > { %6951 = vpow2.f32 %v2175_v40  ;;  %v3232_v45 = vsub.f32 %v8817_v4, %v8839_v23 }
0x39d7   : > { %v3233_v47 = vmul.f32 1.442695, %v3232_v45 }
0x39d8   : > { %v8843_v8 = vpop.xlane.xlu0 %4288 }
0x39d9   : > { %6953 = vpow2.f32 %v3233_v47  ;;  %v4290_v18 = vsub.f32 %v8825_v16, %v8843_v8 }
0x39db   : > { %v4291_v24 = vmul.f32 1.442695, %v4290_v18 }
0x39dd   : > { %6955 = vpow2.f32 %v4291_v24 }
0x39df   : > { %v6952_v11 = vpop.eup %6951 }
0x39e0   : > { %v2177_v9 = vsel %vm619_vm2, %v6952_v11, 0.0 }
0x39e1   : > { %2178 = vadd.xlane.f32.xlu0 %v2177_v9 }
0x39e3   : > { %v6954_v44 = vpop.eup %6953 }
0x39e4   : > { %v3235_v62 = vsel %vm619_vm2, %v6954_v44, 0.0 }
0x39e5   : > { %3236 = vadd.xlane.f32.xlu0 %v3235_v62 }
0x39e7   : > { %v6956_v25 = vpop.eup %6955 }
0x39e8   : > { %v4293_v31 = vsel %vm619_vm2, %v6956_v25, 0.0 }
0x39e9   : > { %4294 = vadd.xlane.f32.xlu0 %v4293_v31 }
0x39f8   : > { %v1122_v63 = vpop.xlane.xlu0 %1121 }
0x39f9   : > { %6957 = vlog2.f32 %v1122_v63 }
0x39fa   : > { %6959 = vpow2.f32 %v1646_v61 }
0x39fb   : > { %6961 = vpow2.f32 %v2704_v1 }
0x39fc   : > { %6963 = vpow2.f32 %v3762_v38 }
0x3a03   : > { %v6958_v14 = vpop.eup %6957 }
0x3a04   : > { %v1124_v39 = vmul.f32 0.6931472, %v6958_v14  ;;  %v6960_v20 = vpop.eup %6959 }
0x3a05   : > { %v1648_v0 = vsel %vm619_vm2, %v6960_v20, 0.0  ;;  %v6962_v6 = vpop.eup %6961 }
0x3a06   : > { %v1125_v42 = vadd.f32 %v1124_v39, %v1116_v35  ;;  %v2706_v26 = vsel %vm619_vm2, %v6962_v6, 0.0  ;;  %v6964_v43 = vpop.eup %6963 }
0x3a07   : > { %v3764_v29 = vsel %vm619_vm2, %v6964_v43, 0.0 }
0x3a08   : > { %v1126_v34 = vsub.f32 %v8789_v54, %v1125_v42 }
0x3a0a   : > { %1127 = vst.msk [vmem:[%s8852_s12] sm:$0xff] %vm619_vm2, %v1126_v34 }
0x3a66   : > { %v4812_v59 = vpop.f32.mrb[38].mxu0 }
0x3a67   : > { %v8866_v33 = vadd.f32 %v5168_v32, %v4812_v59  ;;  %v6183_v54 = vpop.f32.mrb[39].mxu0 }
0x3a69   : > { %v4816_v60 = vsel %vm619_vm2, %v8866_v33, -inf }
0x3a6a   : > { %4817 = vmax.xlane.f32.xlu1 %v4816_v60 }
0x3a6e   : > { %1649 = vadd.xlane.f32.xlu1 %v1648_v0  ;;  %v2179_v10 = vpop.xlane.xlu0 %2178 }
0x3a6f   : > { %6965 = vlog2.f32 %v2179_v10 }
0x3a72   : > { %2707 = vadd.xlane.f32.xlu1 %v2706_v26  ;;  %v3237_v5 = vpop.xlane.xlu0 %3236 }
0x3a73   : > { %6967 = vlog2.f32 %v3237_v5 }
0x3a76   : > { %3765 = vadd.xlane.f32.xlu1 %v3764_v29  ;;  %v4295_v49 = vpop.xlane.xlu0 %4294 }
0x3a77   : > { %6969 = vlog2.f32 %v4295_v49 }
0x3a79   : > { %v6966_v2 = vpop.eup %6965 }
0x3a7a   : > { %v2181_v22 = vmul.f32 0.6931472, %v6966_v2 }
0x3a7c   : > { %v2182_v13 = vadd.f32 %v2181_v22, %v2173_v7 }
0x3a7d   : > { %v6968_v19 = vpop.eup %6967 }
0x3a7e   : > { %v2183_v37 = vsub.f32 %v8812_v58, %v2182_v13  ;;  %v3239_v3 = vmul.f32 0.6931472, %v6968_v19 }
0x3a80   : > { %5118 = vst.msk [vmem:[%s8852_s12 + $0x10] sm:$0xff] %vm619_vm2, %v2183_v37  ;;  %v3240_v51 = vadd.f32 %v3239_v3, %v8839_v23 }
0x3a81   : > { %v6970_v32 = vpop.eup %6969 }
0x3a82   : > { %v3241_v36 = vsub.f32 %v8817_v4, %v3240_v51  ;;  %v4297_v30 = vmul.f32 0.6931472, %v6970_v32 }
0x3a84   : > { %5144 = vst.msk [vmem:[%s8852_s12 + $0x20] sm:$0xff] %vm619_vm2, %v3241_v36  ;;  %v4298_v35 = vadd.f32 %v4297_v30, %v8843_v8 }
0x3a86   : > { %v4299_v21 = vsub.f32 %v8825_v16, %v4298_v35 }
0x3a88   : > { %5170 = vst.msk [vmem:[%s8852_s12 + $0x30] sm:$0xff] %vm619_vm2, %v4299_v21 }
0x3af7   : > { %v8884_v57 = vpop.xlane.xlu1 %4817 }
0x3af8   : > { %v4819_v58 = vsub.f32 %v8866_v33, %v8884_v57 }
0x3afa   : > { %v4820_v46 = vmul.f32 1.442695, %v4819_v58 }
0x3afb   : > { %v1650_v12 = vpop.xlane.xlu1 %1649 }
0x3afc   : > { %6971 = vpow2.f32 %v4820_v46 }
0x3afd   : > { %6973 = vlog2.f32 %v1650_v12 }
0x3aff   : > { %v2708_v4 = vpop.xlane.xlu1 %2707 }
0x3b00   : > { %6975 = vlog2.f32 %v2708_v4 }
0x3b03   : > { %v3766_v56 = vpop.xlane.xlu1 %3765 }
0x3b04   : > { %6977 = vlog2.f32 %v3766_v56 }
0x3b06   : > { %v6972_v7 = vpop.eup %6971 }
0x3b07   : > { %v6974_v17 = vpop.eup %6973  ;;  %v4822_v16 = vsel %vm619_vm2, %v6972_v7, 0.0 }
0x3b08   : > { %v1652_v40 = vmul.f32 0.6931472, %v6974_v17  ;;  %4823 = vadd.xlane.f32.xlu1 %v4822_v16 }
0x3b0a   : > { %v6976_v23 = vpop.eup %6975  ;;  %v1653_v45 = vadd.f32 %v1652_v40, %v8836_v55 }
0x3b0b   : > { %v2710_v47 = vmul.f32 0.6931472, %v6976_v23 }
0x3b0c   : > { %v1654_v8 = vsub.f32 %v8809_v50, %v1653_v45 }
0x3b0d   : > { %v2711_v18 = vadd.f32 %v2710_v47, %v8856_v27 }
0x3b0e   : > { %v6978_v24 = vpop.eup %6977  ;;  %5105 = vst.msk [vmem:[%s8852_s12 + $0x8] sm:$0xff] %vm619_vm2, %v1654_v8 }
0x3b0f   : > { %v2712_v11 = vsub.f32 %v8795_v15, %v2711_v18  ;;  %v3768_v9 = vmul.f32 0.6931472, %v6978_v24 }
0x3b11   : > { %5131 = vst.msk [vmem:[%s8852_s12 + $0x18] sm:$0xff] %vm619_vm2, %v2712_v11  ;;  %v3769_v44 = vadd.f32 %v3768_v9, %v8862_v48 }
0x3b13   : > { %v3770_v55 = vsub.f32 %v8800_v28, %v3769_v44 }
0x3b15   : > { %5157 = vst.msk [vmem:[%s8852_s12 + $0x28] sm:$0xff] %vm619_vm2, %v3770_v55 }
0x3b16   : > { %7106 = shalt.err (!%p7103_p12)
}
0x3b17   : > { %s7107_s18 = scalar_lea.hbm %s8915_s11, 1024  ;;  %s7111_s16 = scalar_lea.hbm %s9101_s19, 2048 }
0x3b18   : > { %p7108_p11 = scmp.ne.s32.totalorder %s8915_s11, %s7107_s18  ;;  %p7112_p13 = scmp.lt.u32.totalorder %s8915_s11, %s9101_s19 }
0x3b19   : > { %p7113_p0 = scmp.lt.u32.totalorder %s7111_s16, %s7107_s18  ;;  %p7115_p8 = scmp.lt.u32.totalorder %s7107_s18, %s8915_s11 }
0x3b1a   : > { %p7109_p4 = pnand %p7108_p11, %p9103_p9 }
0x3b1b   : > { %p7114_p7 = por %p7113_p0, %p7112_p13 }
0x3b1c   : > { %p7110_p6 = pneg %p7109_p4 }
0x3b1d   : > { %p7116_p10 = por %p7115_p8, %p7114_p7 }
0x3b1f   : > { %p7117_p1 = pnand %p7116_p10, %p7110_p6 }
0x3b21   : > { %7120 = shalt.err (!%p7117_p1)
}
0x3b22   : > { %s7242_s0 = smov 128   ;;  %s7243_s2 = smov 256  }
0x3b23   : > { %s7244_s29 = smov 8   ;;  %s7121_s18 = scalar_lea.vmem %s8903_s24, 1024 }
0x3b24   : > { %6759 = dma.vmem_to_hbm [thread:$0]  (%p9103_p9), %s8905_s20, 1024, %s8915_s11, %s8923_s14, %s7242_s0, %s7243_s2, %s7244_s29  }
0x3b25   : > { %p7122_p3 = scmp.ne.s32.totalorder %s8903_s24, %s7121_s18  ;;  %s7245_s13 = smov [#allocation14]  }
0x3b26   : > { %s7125_s10 = sshll.u32 %s7245_s13, 4  ;;  %s7126_s10 = int_to_ptr.vmem [resolvable:$false] %s7125_s10 }
0x3b27   : > { %p7123_p2 = pnand %p7122_p3, %p9103_p9  ;;  %s7127_s16 = scalar_lea.vmem %s7126_s10, 2048 }
0x3b28   : > { %p7128_p12 = scmp.lt.s32.totalorder %s8903_s24, %s7126_s10  ;;  %p7129_p11 = scmp.lt.s32.totalorder %s7127_s16, %s7121_s18 }
0x3b29   : > { %p7124_p5 = pneg %p7123_p2 }
0x3b2a   : > { %p7130_p4 = por %p7129_p11, %p7128_p12 }
0x3b2c   : > { %p7131_p6 = pnand %p7130_p4, %p7124_p5 }
0x3b2e   : > { %7134 = shalt.err (!%p7131_p6)
}
0x3b2f   : > { %s7135_s20 = scalar_lea.hbm %s8921_s23, 1024  ;;  %s7139_s1 = scalar_lea.hbm %s9102_s22, 2048 }
0x3b30   : > { %p7136_p13 = scmp.ne.s32.totalorder %s8921_s23, %s7135_s20  ;;  %p7140_p8 = scmp.lt.u32.totalorder %s8921_s23, %s9102_s22 }
0x3b31   : > { %p7141_p10 = scmp.lt.u32.totalorder %s7139_s1, %s7135_s20  ;;  %p7143_p3 = scmp.lt.u32.totalorder %s7135_s20, %s8921_s23 }
0x3b32   : > { %p7137_p0 = pnand %p7136_p13, %p9103_p9 }
0x3b33   : > { %p7142_p1 = por %p7141_p10, %p7140_p8 }
0x3b34   : > { %p7138_p7 = pneg %p7137_p0 }
0x3b35   : > { %p7144_p2 = por %p7143_p3, %p7142_p1 }
0x3b37   : > { %p7145_p5 = pnand %p7144_p2, %p7138_p7 }
0x3b39   : > { %7148 = shalt.err (!%p7145_p5)
}
0x3b3a   : > { %6760 = dma.vmem_to_hbm [thread:$0]  (%p9103_p9), %s8903_s24, 1024, %s8921_s23, %s8923_s14, %s7242_s0, %s7243_s2, %s7244_s29  }
0x3b3b   : > { %s4854_s18 = sshll.u32 %s8852_s12, 4  ;;  %s9104_s11 = sld [smem:[#allocation30_spill]]  ;;  %s8984_s18 = int_to_ptr.vmem [resolvable:$true] %s4854_s18 }
0x3b3c   : > { %s4832_s24 = scalar_lea.sflag [#allocation5], %s7496_s30  ;;  %s7149_s23 = scalar_lea.vmem %s8984_s18, 1024 }
0x3b3d   : > { %p7150_p12 = scmp.ne.s32.totalorder %s8984_s18, %s7149_s23  ;;  %s7246_s14 = smov [#allocation11]  }
0x3b3e   : > { %s7153_s1 = sshll.u32 %s7246_s14, 4  ;;  %s7154_s1 = int_to_ptr.vmem [resolvable:$false] %s7153_s1 }
0x3b3f   : > { %p7151_p11 = pnand %p7150_p12, %p9103_p9  ;;  %s7155_s13 = scalar_lea.vmem %s7154_s1, 2048 }
0x3b40   : > { %p7156_p6 = scmp.lt.s32.totalorder %s8984_s18, %s7154_s1  ;;  %p7157_p13 = scmp.lt.s32.totalorder %s7155_s13, %s7149_s23 }
0x3b41   : > { %s8982_s17 = scalar_lea.hbm %s9104_s11, %s8909_s25  ;;  %p7152_p4 = pneg %p7151_p11 }
0x3b42   : > { %p7158_p0 = por %p7157_p13, %p7156_p6 }
0x3b44   : > { %p7159_p7 = pnand %p7158_p0, %p7152_p4 }
0x3b95   : > { %v4824_v15 = vpop.xlane.xlu1 %4823 }
0x3b96   : > { %6979 = vlog2.f32 %v4824_v15 }
0x3ba0   : > { %v6980_v28 = vpop.eup %6979 }
0x3ba1   : > { %v4826_v50 = vmul.f32 0.6931472, %v6980_v28 }
0x3ba3   : > { %v4827_v62 = vadd.f32 %v4826_v50, %v8884_v57 }
0x3ba5   : > { %v4828_v25 = vsub.f32 %v8866_v33, %v4827_v62 }
0x3ba7   : > { %5183 = vst.msk [vmem:[%s8852_s12 + $0x38] sm:$0xff] %vm619_vm2, %v4828_v25 }
0x3ba8   : > { %7162 = shalt.err (!%p7159_p7)
}
0x3ba9   : > { %s7163_s12 = scalar_lea.hbm %s8982_s17, 1024  ;;  %s7167_s16 = scalar_lea.hbm %s9104_s11, 2048 }
0x3baa   : > { %p7164_p8 = scmp.ne.s32.totalorder %s8982_s17, %s7163_s12  ;;  %p7168_p3 = scmp.lt.u32.totalorder %s8982_s17, %s9104_s11 }
0x3bab   : > { %p7169_p2 = scmp.lt.u32.totalorder %s7167_s16, %s7163_s12  ;;  %p7171_p12 = scmp.lt.u32.totalorder %s7163_s12, %s8982_s17 }
0x3bac   : > { %p7165_p10 = pnand %p7164_p8, %p9103_p9 }
0x3bad   : > { %p7170_p5 = por %p7169_p2, %p7168_p3 }
0x3bae   : > { %p7166_p1 = pneg %p7165_p10 }
0x3baf   : > { %p7172_p11 = por %p7171_p12, %p7170_p5 }
0x3bb1   : > { %p7173_p4 = pnand %p7172_p11, %p7166_p1 }
0x3bb3   : > { %7176 = shalt.err (!%p7173_p4)
}
0x3bb4   : > { %6758 = dma.vmem_to_hbm [thread:$0]  (%p9103_p9), %s8984_s18, 1024, %s8982_s17, %s4832_s24, %s7242_s0, %s7243_s2, %s7244_s29  }
0x3bb5 PF: > { %s9105_s23 = sld [smem:[#allocation20_spill]]  ;;  %s9106_s1 = sld [smem:[#allocation24_spill]] }
0x3bb6   : > { %p9108_p13 = scmp.ge.s32.totalorder %s7227_s28, 2 }
0x3bbb   : > { %s4899_s13 = sand.u32 1, %s9105_s23   ;;  %p9107_p6 = scmp.ne.s32.totalorder %s9106_s1, 0 }
0x3bbc   : > { %s4900_s12 = scalar_lea.sflag [#allocation5], %s4899_s13 }
0x3bbd   : > { %p6775_p0 = pnand %p9108_p13, %p9107_p6 }
0x3bbf   : > { %7206 = dma.done.wait (!%p6775_p0), %s4900_s12, 1024  }
0x3bc0   : > { %7208 = vsyncadd (!%p6775_p0), %s4900_s12, 4294966272  ;;  %s9109_s9 = sadd.s32 4294967294, %s7227_s28  }
0x3bc1   : > { %s4908_s25 = sand.u32 1, %s9109_s9  }
0x3bc2   : > { %s4909_s10 = scalar_lea.sflag [#allocation13], %s4908_s25 }
0x3bc3   : > { %7210 = dma.done.wait (!%p6775_p0), %s4909_s10, 2048  }
0x3bc4   : > { %7212 = vsyncadd (!%p6775_p0), %s4909_s10, 4294965248  ;;  %s9110_s28 = sld [smem:[#allocation21_spill]]  ;;  %s9111_s30 = sld [smem:[#allocation22_spill]] }
0x3bc5   : > { %s9112_s25 = smov %s7219_s26  ;;  %s9113_s26 = smov %s7223_s27 }
0x3bca   : > { %p32_p9 = scmp.ge.s32.totalorder %s9110_s28, 4   ;;  %s9114_s27 = smov %s9111_s30 }
0x3bcc   :  { %34 = sbr.rel (!%p32_p9) target bundleno = 18 (0x12), region = 227 }
0x3bd3   :  { %4923 = vsyncpa [#allocation4], 1 }
0x3bd4   :  { %4925 = vsyncpa [#allocation4 + $0x1], 1 }
0x3bd5   :  { %4926 = vsyncpa [#allocation7], 1 }
0x3bd6   :  { %4927 = vsyncpa [#allocation10], 1 }
0x3bd7   :  { %4928 = vsyncpa [#allocation5], 1 }
0x3bd8   :  { %4930 = vsyncpa [#allocation5 + $0x1], 1 }
0x3bd9   :  { %4931 = vsyncpa [#allocation13], 1 }
0x3bda   :  { %4933 = vsyncpa [#allocation13 + $0x1], 1 }

</bundles_post_ra>
